<compile_context>
chip_gen: v6e
topology: v6e:2x2x1
jax: 0.10.0
libtpu: 0.0.40
codegen_flags: <defaults>
</compile_context>

<pallas_src>
import functools

import jax
import jax.numpy as jnp
from jax import lax
from jax.experimental import pallas as pl
from jax.experimental.pallas import tpu as pltpu


_VMEM_LIMIT = 32 * 1024 * 1024  # safe on v5e (128 MiB), v6e (128 MiB), v7x (64 MiB)


# ---------------------------------------------------------------------------
# Kernel 1: fused [BN+ReLU prologue] -> matmul (bf16 MXU, f32 acc)
#           -> [BN+ReLU epilogue].
# Used for: conv0 (epilogue only), dense-layer bottleneck 1x1 conv
# (prologue + epilogue), transition 1x1 conv (prologue only).
# ---------------------------------------------------------------------------

def _fused_matmul_kernel(*refs, pre, post):
    refs = list(refs)
    o_ref = refs.pop()            # output ref is last
    x_ref = refs.pop(0)
    w_ref = refs.pop(0)
    if pre:
        s1_ref = refs.pop(0)
        b1_ref = refs.pop(0)
    if post:
        s2_ref = refs.pop(0)
        b2_ref = refs.pop(0)

    x = x_ref[...]                                            # (tm, K) f32
    if pre:                                                   # fused BN + ReLU
        x = jnp.maximum(x * s1_ref[...] + b1_ref[...], 0.0)
    acc = jnp.dot(x.astype(jnp.bfloat16),
                  w_ref[...].astype(jnp.bfloat16),
                  preferred_element_type=jnp.float32)         # f32 accumulate
    if post:
        acc = jnp.maximum(acc * s2_ref[...] + b2_ref[...], 0.0)
    o_ref[...] = acc


def fused_matmul(x2d, w, pre=None, post=None, tm_max=256):
    """(M, K) @ (K, Cout) with optional fused BN(+ReLU) on input / output."""
    M, K = x2d.shape
    Kw, Cout = w.shape
    assert K == Kw
    tm = M if M <= tm_max else tm_max
    assert M % tm == 0 and tm % 8 == 0

    inputs = [x2d, w]
    in_specs = [pl.BlockSpec((tm, K), lambda i: (i, 0)),
                pl.BlockSpec((K, Cout), lambda i: (0, 0))]
    if pre is not None:
        inputs += [pre[0], pre[1]]
        in_specs += [pl.BlockSpec((1, K), lambda i: (0, 0)),
                     pl.BlockSpec((1, K), lambda i: (0, 0))]
    if post is not None:
        inputs += [post[0], post[1]]
        in_specs += [pl.BlockSpec((1, Cout), lambda i: (0, 0)),
                     pl.BlockSpec((1, Cout), lambda i: (0, 0))]

    kernel = functools.partial(_fused_matmul_kernel,
                               pre=pre is not None, post=post is not None)
    return pl.pallas_call(
        kernel,
        out_shape=jax.ShapeDtypeStruct((M, Cout), jnp.float32),
        grid=(M // tm,),
        in_specs=in_specs,
        out_specs=pl.BlockSpec((tm, Cout), lambda i: (i, 0)),
        compiler_params=pltpu.CompilerParams(
            dimension_semantics=("parallel",),
            vmem_limit_bytes=_VMEM_LIMIT),
    )(*inputs)


# ---------------------------------------------------------------------------
# Kernel 2: 3x3 conv (pad=1) via in-kernel tap accumulation over the padded
# VMEM tile, with the DenseNet channel-concat fused into the (lane-dense)
# output store.  Grid over batch ("parallel") -> uses both v7x TensorCores.
# ---------------------------------------------------------------------------

def _conv3x3_concat_kernel(x_ref, yp_ref, w_ref, o_ref):
    # x_ref : (1, H, W, Cin)      existing dense-block features (passthrough)
    # yp_ref: (1, H+2, W+2, Cm)   zero-padded, already BN+ReLU'd bottleneck act.
    # w_ref : (3, 3, Cm, G)
    # o_ref : (1, H, W, Cin+G)
    _, H, W, _ = x_ref.shape
    Cm, G = w_ref.shape[2], w_ref.shape[3]
    w = w_ref[...].astype(jnp.bfloat16)
    acc = jnp.zeros((H * W, G), jnp.float32)
    for kh in range(3):                      # unrolled: 9 shifted-slice dots
        for kw in range(3):
            patch = yp_ref[:, kh:kh + H, kw:kw + W, :].reshape(H * W, Cm)
            acc = acc + jnp.dot(patch.astype(jnp.bfloat16), w[kh, kw],
                                preferred_element_type=jnp.float32)
    y = acc.reshape(1, H, W, G)
    o_ref[...] = jnp.concatenate([x_ref[...], y], axis=-1)   # fused concat


def dense_conv3x3_concat(x_slab, y_pad, w):
    N, H, W, Cin = x_slab.shape
    _, Hp, Wp, Cm = y_pad.shape
    G = w.shape[-1]
    return pl.pallas_call(
        _conv3x3_concat_kernel,
        out_shape=jax.ShapeDtypeStruct((N, H, W, Cin + G), jnp.float32),
        grid=(N,),
        in_specs=[pl.BlockSpec((1, H, W, Cin), lambda b: (b, 0, 0, 0)),
                  pl.BlockSpec((1, Hp, Wp, Cm), lambda b: (b, 0, 0, 0)),
                  pl.BlockSpec((3, 3, Cm, G), lambda b: (0, 0, 0, 0))],
        out_specs=pl.BlockSpec((1, H, W, Cin + G), lambda b: (b, 0, 0, 0)),
        compiler_params=pltpu.CompilerParams(
            dimension_semantics=("parallel",),
            vmem_limit_bytes=_VMEM_LIMIT),
    )(x_slab, y_pad, w)


# ---------------------------------------------------------------------------
# Kernel 3: fused norm5 + ReLU + global average pool (+ flatten).
# ---------------------------------------------------------------------------

def _bn_relu_gap_kernel(x_ref, s_ref, b_ref, o_ref):
    y = jnp.maximum(x_ref[...] * s_ref[...] + b_ref[...], 0.0)   # (N, HW, C)
    o_ref[...] = jnp.sum(y, axis=1) * (1.0 / x_ref.shape[1])     # (N, C)


def pallas_bn_relu_global_avg_pool(x, scale, shift):
    N, HW, C = x.shape
    return pl.pallas_call(
        _bn_relu_gap_kernel,
        out_shape=jax.ShapeDtypeStruct((N, C), jnp.float32),
        grid=(1,),
        in_specs=[pl.BlockSpec((N, HW, C), lambda i: (0, 0, 0)),
                  pl.BlockSpec((1, 1, C), lambda i: (0, 0, 0)),
                  pl.BlockSpec((1, 1, C), lambda i: (0, 0, 0))],
        out_specs=pl.BlockSpec((N, C), lambda i: (0, 0)),
        compiler_params=pltpu.CompilerParams(
            dimension_semantics=("arbitrary",),
            vmem_limit_bytes=_VMEM_LIMIT),
    )(x, scale.reshape(1, 1, C), shift.reshape(1, 1, C))


# --------------------------- Glue (plain JAX) -------------------------------

def conv0_bn_relu(x, w, scale, shift):
    """7x7 s2 p3 conv fused with BN0+ReLU epilogue.

    im2col for this one-time stem conv stays host-side (strided value slices
    are not worth the in-kernel lowering risk for a single 300 KB operand).
    """
    N, H, W, Cin = x.shape
    KH, KW, _, Cout = w.shape
    stride, padding = 2, 3
    xp = jnp.pad(x, ((0, 0), (padding, padding), (padding, padding), (0, 0)))
    OH = (H + 2 * padding - KH) // stride + 1
    OW = (W + 2 * padding - KW) // stride + 1
    cols = []
    for kh in range(KH):
        for kw in range(KW):
            cols.append(xp[:, kh:kh + stride * OH:stride,
                           kw:kw + stride * OW:stride, :])
    pmat = jnp.concatenate(cols, axis=-1).reshape(N * OH * OW, KH * KW * Cin)
    wmat = w.reshape(KH * KW * Cin, Cout)
    out = fused_matmul(pmat, wmat, pre=None, post=(scale, shift))
    return out.reshape(N, OH, OW, Cout)


def max_pool_3x3_s2_p1(x):
    return lax.reduce_window(
        x, -jnp.inf, lax.max,
        window_dimensions=(1, 3, 3, 1), window_strides=(1, 2, 2, 1),
        padding=[(0, 0), (1, 1), (1, 1), (0, 0)])


def dense_layer(x, p):
    """BN1+ReLU -> 1x1 conv -> BN2+ReLU (one kernel), then 3x3 conv with
    fused concat into the growing feature slab (second kernel)."""
    N, H, W, Cin = x.shape
    cmid = p["conv1"].shape[-1]
    y = fused_matmul(x.reshape(N * H * W, Cin),
                     p["conv1"].reshape(Cin, cmid),
                     pre=p["bn1"], post=p["bn2"])
    y = y.reshape(N, H, W, cmid)
    y_pad = jnp.pad(y, ((0, 0), (1, 1), (1, 1), (0, 0)))  # zero pad is exact
    return dense_conv3x3_concat(x, y_pad, p["conv2"])


def transition(x, p):
    """BN+ReLU+1x1-conv in one kernel, then 2x2 average pool."""
    N, H, W, C = x.shape
    cout = p["conv"].shape[-1]
    y = fused_matmul(x.reshape(N * H * W, C), p["conv"].reshape(C, cout),
                     pre=p["bn"], post=None)
    y = y.reshape(N, H, W, cout)
    # TODO(synk): pool-before-conv fully-fused-in-kernel variant skipped; the
    #             2x2 avg-pool stays a tiny XLA reshape-mean (sublane-splitting
    #             reshapes inside Mosaic are a lowering risk at no gain here).
    return y.reshape(N, H // 2, 2, W // 2, 2, cout).mean(axis=(2, 4))


# ------------------------- Mini-DenseNet definition --------------------------

GROWTH_RATE = 8
BN_SIZE = 2
INIT_FEATURES = 16
BLOCK_CONFIG = (2, 2)
IN_CHANNELS = 3


def _init_conv(key, kh, kw, cin, cout):
    w = jax.random.normal(key, (kh, kw, cin, cout), jnp.float32)
    return w * (1.0 / jnp.sqrt(float(kh * kw * cin)))


def _init_bn(key, c):
    k1, k2, k3, k4 = jax.random.split(key, 4)
    gamma = 1.0 + 0.1 * jax.random.normal(k1, (c,), jnp.float32)
    beta = 0.1 * jax.random.normal(k2, (c,), jnp.float32)
    mean = 0.1 * jax.random.normal(k3, (c,), jnp.float32)
    var = 1.0 + 0.1 * jax.random.uniform(k4, (c,), jnp.float32)
    eps = 1e-5
    scale = gamma / jnp.sqrt(var + eps)
    shift = beta - mean * scale
    return scale.reshape(1, c), shift.reshape(1, c)


def init_params(key):
    keys = iter(jax.random.split(key, 256))
    params = {
        "conv0": _init_conv(next(keys), 7, 7, IN_CHANNELS, INIT_FEATURES),
        "norm0": _init_bn(next(keys), INIT_FEATURES),
        "blocks": [],
        "transitions": [],
    }
    c = INIT_FEATURES
    for bi, n_layers in enumerate(BLOCK_CONFIG):
        block = []
        for _ in range(n_layers):
            layer = {
                "bn1": _init_bn(next(keys), c),
                "conv1": _init_conv(next(keys), 1, 1, c, BN_SIZE * GROWTH_RATE),
                "bn2": _init_bn(next(keys), BN_SIZE * GROWTH_RATE),
                "conv2": _init_conv(next(keys), 3, 3, BN_SIZE * GROWTH_RATE,
                                    GROWTH_RATE),
            }
            block.append(layer)
            c += GROWTH_RATE
        params["blocks"].append(block)
        if bi != len(BLOCK_CONFIG) - 1:
            params["transitions"].append({
                "bn": _init_bn(next(keys), c),
                "conv": _init_conv(next(keys), 1, 1, c, c // 2),
            })
            c //= 2
    params["norm5"] = _init_bn(next(keys), c)
    return params, c


def encoder_forward(params, images_nchw):
    """Matches EncoderCNNdensenet.forward: features -> relu -> GAP(1,1) -> flatten."""
    x = jnp.transpose(images_nchw, (0, 2, 3, 1)).astype(jnp.float32)  # NCHW->NHWC
    # densenet "features":
    x = conv0_bn_relu(x, params["conv0"], *params["norm0"])
    x = max_pool_3x3_s2_p1(x)
    for bi, block in enumerate(params["blocks"]):
        for layer in block:
            x = dense_layer(x, layer)
        if bi < len(params["transitions"]):
            x = transition(x, params["transitions"][bi])
    # norm5 + F.relu + adaptive_avg_pool2d((1,1)) + flatten(1)  (fused kernel)
    N, H, W, C = x.shape
    s5, b5 = params["norm5"]
    return pallas_bn_relu_global_avg_pool(x.reshape(N, H * W, C), s5, b5)


# --------------------------------- main --------------------------------------

if __name__ == "__main__":
    key = jax.random.PRNGKey(0)
    k_params, k_img = jax.random.split(key)
    params, out_dim = init_params(k_params)

    images = jax.random.normal(k_img, (2, IN_CHANNELS, 32, 32), jnp.float32)

    fwd = jax.jit(encoder_forward)
    out = fwd(params, images)
    out = jax.block_until_ready(out)

    assert out.shape == (2, out_dim), out.shape
    assert out.dtype == jnp.float32
    assert bool(jnp.all(jnp.isfinite(out)))
    print("KERNEL_OK")
</pallas_src>

<mosaic_0001>
module attributes {stable_mosaic.version = 11 : i64} {
  func.func @_fused_matmul_kernel(%arg0: i32, %arg1: memref<256x147xf32, #tpu.memory_space<vmem>>, %arg2: memref<147x16xf32, #tpu.memory_space<vmem>>, %arg3: memref<1x16xf32, #tpu.memory_space<vmem>>, %arg4: memref<1x16xf32, #tpu.memory_space<vmem>>, %arg5: memref<256x16xf32, #tpu.memory_space<vmem>>) attributes {dimension_semantics = [#tpu.dimension_semantics<parallel>], iteration_bounds = array<i64: 2>, scalar_prefetch = 0 : i64, scratch_operands = 0 : i64, tpu.core_type = #tpu.core_type<tc>, window_params = [{transform_indices = @transform_0, window_bounds = array<i64: 256, 147>}, {pipeline_mode = #tpu.pipeline_mode<synchronous>, transform_indices = @transform_1, window_bounds = array<i64: 147, 16>}, {pipeline_mode = #tpu.pipeline_mode<synchronous>, transform_indices = @transform_2, window_bounds = array<i64: 1, 16>}, {pipeline_mode = #tpu.pipeline_mode<synchronous>, transform_indices = @transform_3, window_bounds = array<i64: 1, 16>}, {transform_indices = @transform_4, window_bounds = array<i64: 256, 16>}]} {
    %c0 = arith.constant 0 : index
    %c0_0 = arith.constant 0 : index
    %0 = vector.load %arg1[%c0, %c0_0] : memref<256x147xf32, #tpu.memory_space<vmem>>, vector<256x147xf32>
    %1 = arith.truncf %0 : vector<256x147xf32> to vector<256x147xbf16>
    %c0_1 = arith.constant 0 : index
    %c0_2 = arith.constant 0 : index
    %2 = vector.load %arg2[%c0_1, %c0_2] : memref<147x16xf32, #tpu.memory_space<vmem>>, vector<147x16xf32>
    %3 = arith.truncf %2 : vector<147x16xf32> to vector<147x16xbf16>
    %cst = arith.constant dense<0.000000e+00> : vector<256x16xf32>
    %4 = tpu.matmul %1, %3, %cst {dimension_numbers = #tpu.dot_dimension_numbers<[1], [0], [0], [1], [0, 0, 1, 1], [], []>} : vector<256x147xbf16>, vector<147x16xbf16>, vector<256x16xf32> -> vector<256x16xf32>
    %c0_3 = arith.constant 0 : index
    %c0_4 = arith.constant 0 : index
    %5 = vector.load %arg3[%c0_3, %c0_4] : memref<1x16xf32, #tpu.memory_space<vmem>>, vector<1x16xf32>
    %6 = vector.broadcast %5 : vector<1x16xf32> to vector<256x16xf32>
    %7 = arith.mulf %4, %6 : vector<256x16xf32>
    %c0_5 = arith.constant 0 : index
    %c0_6 = arith.constant 0 : index
    %8 = vector.load %arg4[%c0_5, %c0_6] : memref<1x16xf32, #tpu.memory_space<vmem>>, vector<1x16xf32>
    %9 = vector.broadcast %8 : vector<1x16xf32> to vector<256x16xf32>
    %10 = arith.addf %7, %9 : vector<256x16xf32>
    %cst_7 = arith.constant 0.000000e+00 : f32
    %11 = vector.broadcast %cst_7 : f32 to vector<256x16xf32>
    %12 = arith.maximumf %10, %11 : vector<256x16xf32>
    %c0_8 = arith.constant 0 : index
    %c0_9 = arith.constant 0 : index
    %13 = vector.load %arg5[%c0_8, %c0_9] : memref<256x16xf32, #tpu.memory_space<vmem>>, vector<256x16xf32>
    tpu.vector_store %arg5[%c0_8, %c0_9], %12 {strides = array<i32>} : memref<256x16xf32, #tpu.memory_space<vmem>>, vector<256x16xf32>,
    return
  }
  func.func @transform_0(%arg0: i32) -> (i32, i32) {
    %c0_i32 = arith.constant 0 : i32
    %c0_i32_0 = arith.constant 0 : i32
    return %arg0, %c0_i32 : i32, i32
  }
  func.func @transform_1(%arg0: i32) -> (i32, i32) {
    %c0_i32 = arith.constant 0 : i32
    %c0_i32_0 = arith.constant 0 : i32
    %c0_i32_1 = arith.constant 0 : i32
    return %c0_i32, %c0_i32_0 : i32, i32
  }
  func.func @transform_2(%arg0: i32) -> (i32, i32) {
    %c0_i32 = arith.constant 0 : i32
    %c0_i32_0 = arith.constant 0 : i32
    %c0_i32_1 = arith.constant 0 : i32
    return %c0_i32, %c0_i32_0 : i32, i32
  }
  func.func @transform_3(%arg0: i32) -> (i32, i32) {
    %c0_i32 = arith.constant 0 : i32
    %c0_i32_0 = arith.constant 0 : i32
    %c0_i32_1 = arith.constant 0 : i32
    return %c0_i32, %c0_i32_0 : i32, i32
  }
  func.func @transform_4(%arg0: i32) -> (i32, i32) {
    %c0_i32 = arith.constant 0 : i32
    %c0_i32_0 = arith.constant 0 : i32
    return %arg0, %c0_i32 : i32, i32
  }
}

module attributes {stable_mosaic.version = 11 : i64} {
  func.func @_fused_matmul_kernel(%arg0: i32, %arg1: memref<128x16xf32, #tpu.memory_space<vmem>>, %arg2: memref<16x16xf32, #tpu.memory_space<vmem>>, %arg3: memref<1x16xf32, #tpu.memory_space<vmem>>, %arg4: memref<1x16xf32, #tpu.memory_space<vmem>>, %arg5: memref<1x16xf32, #tpu.memory_space<vmem>>, %arg6: memref<1x16xf32, #tpu.memory_space<vmem>>, %arg7: memref<128x16xf32, #tpu.memory_space<vmem>>) attributes {dimension_semantics = [#tpu.dimension_semantics<parallel>], iteration_bounds = array<i64: 1>, scalar_prefetch = 0 : i64, scratch_operands = 0 : i64, tpu.core_type = #tpu.core_type<tc>, window_params = [{transform_indices = @transform_0, window_bounds = array<i64: 128, 16>}, {pipeline_mode = #tpu.pipeline_mode<synchronous>, transform_indices = @transform_1, window_bounds = array<i64: 16, 16>}, {pipeline_mode = #tpu.pipeline_mode<synchronous>, transform_indices = @transform_2, window_bounds = array<i64: 1, 16>}, {pipeline_mode = #tpu.pipeline_mode<synchronous>, transform_indices = @transform_3, window_bounds = array<i64: 1, 16>}, {pipeline_mode = #tpu.pipeline_mode<synchronous>, transform_indices = @transform_4, window_bounds = array<i64: 1, 16>}, {pipeline_mode = #tpu.pipeline_mode<synchronous>, transform_indices = @transform_5, window_bounds = array<i64: 1, 16>}, {transform_indices = @transform_6, window_bounds = array<i64: 128, 16>}]} {
    %c0 = arith.constant 0 : index
    %c0_0 = arith.constant 0 : index
    %0 = vector.load %arg1[%c0, %c0_0] : memref<128x16xf32, #tpu.memory_space<vmem>>, vector<128x16xf32>
    %c0_1 = arith.constant 0 : index
    %c0_2 = arith.constant 0 : index
    %1 = vector.load %arg3[%c0_1, %c0_2] : memref<1x16xf32, #tpu.memory_space<vmem>>, vector<1x16xf32>
    %2 = vector.broadcast %1 : vector<1x16xf32> to vector<128x16xf32>
    %3 = arith.mulf %0, %2 : vector<128x16xf32>
    %c0_3 = arith.constant 0 : index
    %c0_4 = arith.constant 0 : index
    %4 = vector.load %arg4[%c0_3, %c0_4] : memref<1x16xf32, #tpu.memory_space<vmem>>, vector<1x16xf32>
    %5 = vector.broadcast %4 : vector<1x16xf32> to vector<128x16xf32>
    %6 = arith.addf %3, %5 : vector<128x16xf32>
    %cst = arith.constant 0.000000e+00 : f32
    %7 = vector.broadcast %cst : f32 to vector<128x16xf32>
    %8 = arith.maximumf %6, %7 : vector<128x16xf32>
    %9 = arith.truncf %8 : vector<128x16xf32> to vector<128x16xbf16>
    %c0_5 = arith.constant 0 : index
    %c0_6 = arith.constant 0 : index
    %10 = vector.load %arg2[%c0_5, %c0_6] : memref<16x16xf32, #tpu.memory_space<vmem>>, vector<16x16xf32>
    %11 = arith.truncf %10 : vector<16x16xf32> to vector<16x16xbf16>
    %cst_7 = arith.constant dense<0.000000e+00> : vector<128x16xf32>
    %12 = tpu.matmul %9, %11, %cst_7 {dimension_numbers = #tpu.dot_dimension_numbers<[1], [0], [0], [1], [0, 0, 1, 1], [], []>} : vector<128x16xbf16>, vector<16x16xbf16>, vector<128x16xf32> -> vector<128x16xf32>
    %c0_8 = arith.constant 0 : index
    %c0_9 = arith.constant 0 : index
    %13 = vector.load %arg5[%c0_8, %c0_9] : memref<1x16xf32, #tpu.memory_space<vmem>>, vector<1x16xf32>
    %14 = vector.broadcast %13 : vector<1x16xf32> to vector<128x16xf32>
    %15 = arith.mulf %12, %14 : vector<128x16xf32>
    %c0_10 = arith.constant 0 : index
    %c0_11 = arith.constant 0 : index
    %16 = vector.load %arg6[%c0_10, %c0_11] : memref<1x16xf32, #tpu.memory_space<vmem>>, vector<1x16xf32>
    %17 = vector.broadcast %16 : vector<1x16xf32> to vector<128x16xf32>
    %18 = arith.addf %15, %17 : vector<128x16xf32>
    %cst_12 = arith.constant 0.000000e+00 : f32
    %19 = vector.broadcast %cst_12 : f32 to vector<128x16xf32>
    %20 = arith.maximumf %18, %19 : vector<128x16xf32>
    %c0_13 = arith.constant 0 : index
    %c0_14 = arith.constant 0 : index
    %21 = vector.load %arg7[%c0_13, %c0_14] : memref<128x16xf32, #tpu.memory_space<vmem>>, vector<128x16xf32>
    tpu.vector_store %arg7[%c0_13, %c0_14], %20 {strides = array<i32>} : memref<128x16xf32, #tpu.memory_space<vmem>>, vector<128x16xf32>,
    return
  }
  func.func @transform_0(%arg0: i32) -> (i32, i32) {
    %c0_i32 = arith.constant 0 : i32
    %c0_i32_0 = arith.constant 0 : i32
    return %arg0, %c0_i32 : i32, i32
  }
  func.func @transform_1(%arg0: i32) -> (i32, i32) {
    %c0_i32 = arith.constant 0 : i32
    %c0_i32_0 = arith.constant 0 : i32
    %c0_i32_1 = arith.constant 0 : i32
    return %c0_i32, %c0_i32_0 : i32, i32
  }
  func.func @transform_2(%arg0: i32) -> (i32, i32) {
    %c0_i32 = arith.constant 0 : i32
    %c0_i32_0 = arith.constant 0 : i32
    %c0_i32_1 = arith.constant 0 : i32
    return %c0_i32, %c0_i32_0 : i32, i32
  }
  func.func @transform_3(%arg0: i32) -> (i32, i32) {
    %c0_i32 = arith.constant 0 : i32
    %c0_i32_0 = arith.constant 0 : i32
    %c0_i32_1 = arith.constant 0 : i32
    return %c0_i32, %c0_i32_0 : i32, i32
  }
  func.func @transform_4(%arg0: i32) -> (i32, i32) {
    %c0_i32 = arith.constant 0 : i32
    %c0_i32_0 = arith.constant 0 : i32
    %c0_i32_1 = arith.constant 0 : i32
    return %c0_i32, %c0_i32_0 : i32, i32
  }
  func.func @transform_5(%arg0: i32) -> (i32, i32) {
    %c0_i32 = arith.constant 0 : i32
    %c0_i32_0 = arith.constant 0 : i32
    %c0_i32_1 = arith.constant 0 : i32
    return %c0_i32, %c0_i32_0 : i32, i32
  }
  func.func @transform_6(%arg0: i32) -> (i32, i32) {
    %c0_i32 = arith.constant 0 : i32
    %c0_i32_0 = arith.constant 0 : i32
    return %arg0, %c0_i32 : i32, i32
  }
}

module attributes {stable_mosaic.version = 11 : i64} {
  func.func @_conv3x3_concat_kernel(%arg0: i32, %arg1: memref<1x8x8x16xf32, #tpu.memory_space<vmem>>, %arg2: memref<1x10x10x16xf32, #tpu.memory_space<vmem>>, %arg3: memref<3x3x16x8xf32, #tpu.memory_space<vmem>>, %arg4: memref<1x8x8x24xf32, #tpu.memory_space<vmem>>) attributes {dimension_semantics = [#tpu.dimension_semantics<parallel>], iteration_bounds = array<i64: 2>, scalar_prefetch = 0 : i64, scratch_operands = 0 : i64, tpu.core_type = #tpu.core_type<tc>, window_params = [{transform_indices = @transform_0, window_bounds = array<i64: 1, 8, 8, 16>}, {transform_indices = @transform_1, window_bounds = array<i64: 1, 10, 10, 16>}, {pipeline_mode = #tpu.pipeline_mode<synchronous>, transform_indices = @transform_2, window_bounds = array<i64: 3, 3, 16, 8>}, {transform_indices = @transform_3, window_bounds = array<i64: 1, 8, 8, 24>}]} {
    %c0 = arith.constant 0 : index
    %c0_0 = arith.constant 0 : index
    %c0_1 = arith.constant 0 : index
    %c0_2 = arith.constant 0 : index
    %0 = vector.load %arg3[%c0, %c0_0, %c0_1, %c0_2] : memref<3x3x16x8xf32, #tpu.memory_space<vmem>>, vector<3x3x16x8xf32>
    %1 = arith.truncf %0 : vector<3x3x16x8xf32> to vector<3x3x16x8xbf16>
    %cst = arith.constant 0.000000e+00 : f32
    %2 = vector.broadcast %cst : f32 to vector<64x8xf32>
    %c0_3 = arith.constant 0 : index
    %c0_4 = arith.constant 0 : index
    %c0_5 = arith.constant 0 : index
    %c0_6 = arith.constant 0 : index
    %3 = vector.load %arg2[%c0_3, %c0_4, %c0_5, %c0_6] : memref<1x10x10x16xf32, #tpu.memory_space<vmem>>, vector<1x8x8x16xf32>
    %4 = vector.shape_cast %3 : vector<1x8x8x16xf32> to vector<64x16xf32>
    %5 = arith.truncf %4 : vector<64x16xf32> to vector<64x16xbf16>
    %6 = vector.extract_strided_slice %1 {offsets = [0, 0, 0, 0], sizes = [1, 1, 16, 8], strides = [1, 1, 1, 1]} : vector<3x3x16x8xbf16> to vector<1x1x16x8xbf16>
    %7 = vector.shape_cast %6 : vector<1x1x16x8xbf16> to vector<16x8xbf16>
    %cst_7 = arith.constant dense<0.000000e+00> : vector<64x8xf32>
    %8 = tpu.matmul %5, %7, %cst_7 {dimension_numbers = #tpu.dot_dimension_numbers<[1], [0], [0], [1], [0, 0, 1, 1], [], []>} : vector<64x16xbf16>, vector<16x8xbf16>, vector<64x8xf32> -> vector<64x8xf32>
    %9 = arith.addf %2, %8 : vector<64x8xf32>
    %c0_8 = arith.constant 0 : index
    %c0_9 = arith.constant 0 : index
    %c1 = arith.constant 1 : index
    %c0_10 = arith.constant 0 : index
    %10 = vector.load %arg2[%c0_8, %c0_9, %c1, %c0_10] : memref<1x10x10x16xf32, #tpu.memory_space<vmem>>, vector<1x8x8x16xf32>
    %11 = vector.shape_cast %10 : vector<1x8x8x16xf32> to vector<64x16xf32>
    %12 = arith.truncf %11 : vector<64x16xf32> to vector<64x16xbf16>
    %13 = vector.extract_strided_slice %1 {offsets = [0, 1, 0, 0], sizes = [1, 1, 16, 8], strides = [1, 1, 1, 1]} : vector<3x3x16x8xbf16> to vector<1x1x16x8xbf16>
    %14 = vector.shape_cast %13 : vector<1x1x16x8xbf16> to vector<16x8xbf16>
    %cst_11 = arith.constant dense<0.000000e+00> : vector<64x8xf32>
    %15 = tpu.matmul %12, %14, %cst_11 {dimension_numbers = #tpu.dot_dimension_numbers<[1], [0], [0], [1], [0, 0, 1, 1], [], []>} : vector<64x16xbf16>, vector<16x8xbf16>, vector<64x8xf32> -> vector<64x8xf32>
    %16 = arith.addf %9, %15 : vector<64x8xf32>
    %c0_12 = arith.constant 0 : index
    %c0_13 = arith.constant 0 : index
    %c2 = arith.constant 2 : index
    %c0_14 = arith.constant 0 : index
    %17 = vector.load %arg2[%c0_12, %c0_13, %c2, %c0_14] : memref<1x10x10x16xf32, #tpu.memory_space<vmem>>, vector<1x8x8x16xf32>
    %18 = vector.shape_cast %17 : vector<1x8x8x16xf32> to vector<64x16xf32>
    %19 = arith.truncf %18 : vector<64x16xf32> to vector<64x16xbf16>
    %20 = vector.extract_strided_slice %1 {offsets = [0, 2, 0, 0], sizes = [1, 1, 16, 8], strides = [1, 1, 1, 1]} : vector<3x3x16x8xbf16> to vector<1x1x16x8xbf16>
    %21 = vector.shape_cast %20 : vector<1x1x16x8xbf16> to vector<16x8xbf16>
    %cst_15 = arith.constant dense<0.000000e+00> : vector<64x8xf32>
    %22 = tpu.matmul %19, %21, %cst_15 {dimension_numbers = #tpu.dot_dimension_numbers<[1], [0], [0], [1], [0, 0, 1, 1], [], []>} : vector<64x16xbf16>, vector<16x8xbf16>, vector<64x8xf32> -> vector<64x8xf32>
    %23 = arith.addf %16, %22 : vector<64x8xf32>
    %c0_16 = arith.constant 0 : index
    %c1_17 = arith.constant 1 : index
    %c0_18 = arith.constant 0 : index
    %c0_19 = arith.constant 0 : index
    %24 = vector.load %arg2[%c0_16, %c1_17, %c0_18, %c0_19] : memref<1x10x10x16xf32, #tpu.memory_space<vmem>>, vector<1x8x8x16xf32>
    %25 = vector.shape_cast %24 : vector<1x8x8x16xf32> to vector<64x16xf32>
    %26 = arith.truncf %25 : vector<64x16xf32> to vector<64x16xbf16>
    %27 = vector.extract_strided_slice %1 {offsets = [1, 0, 0, 0], sizes = [1, 1, 16, 8], strides = [1, 1, 1, 1]} : vector<3x3x16x8xbf16> to vector<1x1x16x8xbf16>
    %28 = vector.shape_cast %27 : vector<1x1x16x8xbf16> to vector<16x8xbf16>
    %cst_20 = arith.constant dense<0.000000e+00> : vector<64x8xf32>
    %29 = tpu.matmul %26, %28, %cst_20 {dimension_numbers = #tpu.dot_dimension_numbers<[1], [0], [0], [1], [0, 0, 1, 1], [], []>} : vector<64x16xbf16>, vector<16x8xbf16>, vector<64x8xf32> -> vector<64x8xf32>
    %30 = arith.addf %23, %29 : vector<64x8xf32>
    %c0_21 = arith.constant 0 : index
    %c1_22 = arith.constant 1 : index
    %c1_23 = arith.constant 1 : index
    %c0_24 = arith.constant 0 : index
    %31 = vector.load %arg2[%c0_21, %c1_22, %c1_23, %c0_24] : memref<1x10x10x16xf32, #tpu.memory_space<vmem>>, vector<1x8x8x16xf32>
    %32 = vector.shape_cast %31 : vector<1x8x8x16xf32> to vector<64x16xf32>
    %33 = arith.truncf %32 : vector<64x16xf32> to vector<64x16xbf16>
    %34 = vector.extract_strided_slice %1 {offsets = [1, 1, 0, 0], sizes = [1, 1, 16, 8], strides = [1, 1, 1, 1]} : vector<3x3x16x8xbf16> to vector<1x1x16x8xbf16>
    %35 = vector.shape_cast %34 : vector<1x1x16x8xbf16> to vector<16x8xbf16>
    %cst_25 = arith.constant dense<0.000000e+00> : vector<64x8xf32>
    %36 = tpu.matmul %33, %35, %cst_25 {dimension_numbers = #tpu.dot_dimension_numbers<[1], [0], [0], [1], [0, 0, 1, 1], [], []>} : vector<64x16xbf16>, vector<16x8xbf16>, vector<64x8xf32> -> vector<64x8xf32>
    %37 = arith.addf %30, %36 : vector<64x8xf32>
    %c0_26 = arith.constant 0 : index
    %c1_27 = arith.constant 1 : index
    %c2_28 = arith.constant 2 : index
    %c0_29 = arith.constant 0 : index
    %38 = vector.load %arg2[%c0_26, %c1_27, %c2_28, %c0_29] : memref<1x10x10x16xf32, #tpu.memory_space<vmem>>, vector<1x8x8x16xf32>
    %39 = vector.shape_cast %38 : vector<1x8x8x16xf32> to vector<64x16xf32>
    %40 = arith.truncf %39 : vector<64x16xf32> to vector<64x16xbf16>
    %41 = vector.extract_strided_slice %1 {offsets = [1, 2, 0, 0], sizes = [1, 1, 16, 8], strides = [1, 1, 1, 1]} : vector<3x3x16x8xbf16> to vector<1x1x16x8xbf16>
    %42 = vector.shape_cast %41 : vector<1x1x16x8xbf16> to vector<16x8xbf16>
    %cst_30 = arith.constant dense<0.000000e+00> : vector<64x8xf32>
    %43 = tpu.matmul %40, %42, %cst_30 {dimension_numbers = #tpu.dot_dimension_numbers<[1], [0], [0], [1], [0, 0, 1, 1], [], []>} : vector<64x16xbf16>, vector<16x8xbf16>, vector<64x8xf32> -> vector<64x8xf32>
    %44 = arith.addf %37, %43 : vector<64x8xf32>
    %c0_31 = arith.constant 0 : index
    %c2_32 = arith.constant 2 : index
    %c0_33 = arith.constant 0 : index
    %c0_34 = arith.constant 0 : index
    %45 = vector.load %arg2[%c0_31, %c2_32, %c0_33, %c0_34] : memref<1x10x10x16xf32, #tpu.memory_space<vmem>>, vector<1x8x8x16xf32>
    %46 = vector.shape_cast %45 : vector<1x8x8x16xf32> to vector<64x16xf32>
    %47 = arith.truncf %46 : vector<64x16xf32> to vector<64x16xbf16>
    %48 = vector.extract_strided_slice %1 {offsets = [2, 0, 0, 0], sizes = [1, 1, 16, 8], strides = [1, 1, 1, 1]} : vector<3x3x16x8xbf16> to vector<1x1x16x8xbf16>
    %49 = vector.shape_cast %48 : vector<1x1x16x8xbf16> to vector<16x8xbf16>
    %cst_35 = arith.constant dense<0.000000e+00> : vector<64x8xf32>
    %50 = tpu.matmul %47, %49, %cst_35 {dimension_numbers = #tpu.dot_dimension_numbers<[1], [0], [0], [1], [0, 0, 1, 1], [], []>} : vector<64x16xbf16>, vector<16x8xbf16>, vector<64x8xf32> -> vector<64x8xf32>
    %51 = arith.addf %44, %50 : vector<64x8xf32>
    %c0_36 = arith.constant 0 : index
    %c2_37 = arith.constant 2 : index
    %c1_38 = arith.constant 1 : index
    %c0_39 = arith.constant 0 : index
    %52 = vector.load %arg2[%c0_36, %c2_37, %c1_38, %c0_39] : memref<1x10x10x16xf32, #tpu.memory_space<vmem>>, vector<1x8x8x16xf32>
    %53 = vector.shape_cast %52 : vector<1x8x8x16xf32> to vector<64x16xf32>
    %54 = arith.truncf %53 : vector<64x16xf32> to vector<64x16xbf16>
    %55 = vector.extract_strided_slice %1 {offsets = [2, 1, 0, 0], sizes = [1, 1, 16, 8], strides = [1, 1, 1, 1]} : vector<3x3x16x8xbf16> to vector<1x1x16x8xbf16>
    %56 = vector.shape_cast %55 : vector<1x1x16x8xbf16> to vector<16x8xbf16>
    %cst_40 = arith.constant dense<0.000000e+00> : vector<64x8xf32>
    %57 = tpu.matmul %54, %56, %cst_40 {dimension_numbers = #tpu.dot_dimension_numbers<[1], [0], [0], [1], [0, 0, 1, 1], [], []>} : vector<64x16xbf16>, vector<16x8xbf16>, vector<64x8xf32> -> vector<64x8xf32>
    %58 = arith.addf %51, %57 : vector<64x8xf32>
    %c0_41 = arith.constant 0 : index
    %c2_42 = arith.constant 2 : index
    %c2_43 = arith.constant 2 : index
    %c0_44 = arith.constant 0 : index
    %59 = vector.load %arg2[%c0_41, %c2_42, %c2_43, %c0_44] : memref<1x10x10x16xf32, #tpu.memory_space<vmem>>, vector<1x8x8x16xf32>
    %60 = vector.shape_cast %59 : vector<1x8x8x16xf32> to vector<64x16xf32>
    %61 = arith.truncf %60 : vector<64x16xf32> to vector<64x16xbf16>
    %62 = vector.extract_strided_slice %1 {offsets = [2, 2, 0, 0], sizes = [1, 1, 16, 8], strides = [1, 1, 1, 1]} : vector<3x3x16x8xbf16> to vector<1x1x16x8xbf16>
    %63 = vector.shape_cast %62 : vector<1x1x16x8xbf16> to vector<16x8xbf16>
    %cst_45 = arith.constant dense<0.000000e+00> : vector<64x8xf32>
    %64 = tpu.matmul %61, %63, %cst_45 {dimension_numbers = #tpu.dot_dimension_numbers<[1], [0], [0], [1], [0, 0, 1, 1], [], []>} : vector<64x16xbf16>, vector<16x8xbf16>, vector<64x8xf32> -> vector<64x8xf32>
    %65 = arith.addf %58, %64 : vector<64x8xf32>
    %66 = vector.shape_cast %65 : vector<64x8xf32> to vector<1x8x8x8xf32>
    %c0_46 = arith.constant 0 : index
    %c0_47 = arith.constant 0 : index
    %c0_48 = arith.constant 0 : index
    %c0_49 = arith.constant 0 : index
    %67 = vector.load %arg1[%c0_46, %c0_47, %c0_48, %c0_49] : memref<1x8x8x16xf32, #tpu.memory_space<vmem>>, vector<1x8x8x16xf32>
    %68 = tpu.concatenate %67, %66 in 3 : vector<1x8x8x16xf32>, vector<1x8x8x8xf32> -> vector<1x8x8x24xf32>
    %c0_50 = arith.constant 0 : index
    %c0_51 = arith.constant 0 : index
    %c0_52 = arith.constant 0 : index
    %c0_53 = arith.constant 0 : index
    %69 = vector.load %arg4[%c0_50, %c0_51, %c0_52, %c0_53] : memref<1x8x8x24xf32, #tpu.memory_space<vmem>>, vector<1x8x8x24xf32>
    tpu.vector_store %arg4[%c0_50, %c0_51, %c0_52, %c0_53], %68 {strides = array<i32>} : memref<1x8x8x24xf32, #tpu.memory_space<vmem>>, vector<1x8x8x24xf32>,
    return
  }
  func.func @transform_0(%arg0: i32) -> (i32, i32, i32, i32) {
    %c0_i32 = arith.constant 0 : i32
    %c0_i32_0 = arith.constant 0 : i32
    %c0_i32_1 = arith.constant 0 : i32
    %c0_i32_2 = arith.constant 0 : i32
    return %arg0, %c0_i32, %c0_i32_0, %c0_i32_1 : i32, i32, i32, i32
  }
  func.func @transform_1(%arg0: i32) -> (i32, i32, i32, i32) {
    %c0_i32 = arith.constant 0 : i32
    %c0_i32_0 = arith.constant 0 : i32
    %c0_i32_1 = arith.constant 0 : i32
    %c0_i32_2 = arith.constant 0 : i32
    return %arg0, %c0_i32, %c0_i32_0, %c0_i32_1 : i32, i32, i32, i32
  }
  func.func @transform_2(%arg0: i32) -> (i32, i32, i32, i32) {
    %c0_i32 = arith.constant 0 : i32
    %c0_i32_0 = arith.constant 0 : i32
    %c0_i32_1 = arith.constant 0 : i32
    %c0_i32_2 = arith.constant 0 : i32
    %c0_i32_3 = arith.constant 0 : i32
    return %c0_i32, %c0_i32_0, %c0_i32_1, %c0_i32_2 : i32, i32, i32, i32
  }
  func.func @transform_3(%arg0: i32) -> (i32, i32, i32, i32) {
    %c0_i32 = arith.constant 0 : i32
    %c0_i32_0 = arith.constant 0 : i32
    %c0_i32_1 = arith.constant 0 : i32
    %c0_i32_2 = arith.constant 0 : i32
    return %arg0, %c0_i32, %c0_i32_0, %c0_i32_1 : i32, i32, i32, i32
  }
}

module attributes {stable_mosaic.version = 11 : i64} {
  func.func @_fused_matmul_kernel(%arg0: i32, %arg1: memref<128x24xf32, #tpu.memory_space<vmem>>, %arg2: memref<24x16xf32, #tpu.memory_space<vmem>>, %arg3: memref<1x24xf32, #tpu.memory_space<vmem>>, %arg4: memref<1x24xf32, #tpu.memory_space<vmem>>, %arg5: memref<1x16xf32, #tpu.memory_space<vmem>>, %arg6: memref<1x16xf32, #tpu.memory_space<vmem>>, %arg7: memref<128x16xf32, #tpu.memory_space<vmem>>) attributes {dimension_semantics = [#tpu.dimension_semantics<parallel>], iteration_bounds = array<i64: 1>, scalar_prefetch = 0 : i64, scratch_operands = 0 : i64, tpu.core_type = #tpu.core_type<tc>, window_params = [{transform_indices = @transform_0, window_bounds = array<i64: 128, 24>}, {pipeline_mode = #tpu.pipeline_mode<synchronous>, transform_indices = @transform_1, window_bounds = array<i64: 24, 16>}, {pipeline_mode = #tpu.pipeline_mode<synchronous>, transform_indices = @transform_2, window_bounds = array<i64: 1, 24>}, {pipeline_mode = #tpu.pipeline_mode<synchronous>, transform_indices = @transform_3, window_bounds = array<i64: 1, 24>}, {pipeline_mode = #tpu.pipeline_mode<synchronous>, transform_indices = @transform_4, window_bounds = array<i64: 1, 16>}, {pipeline_mode = #tpu.pipeline_mode<synchronous>, transform_indices = @transform_5, window_bounds = array<i64: 1, 16>}, {transform_indices = @transform_6, window_bounds = array<i64: 128, 16>}]} {
    %c0 = arith.constant 0 : index
    %c0_0 = arith.constant 0 : index
    %0 = vector.load %arg1[%c0, %c0_0] : memref<128x24xf32, #tpu.memory_space<vmem>>, vector<128x24xf32>
    %c0_1 = arith.constant 0 : index
    %c0_2 = arith.constant 0 : index
    %1 = vector.load %arg3[%c0_1, %c0_2] : memref<1x24xf32, #tpu.memory_space<vmem>>, vector<1x24xf32>
    %2 = vector.broadcast %1 : vector<1x24xf32> to vector<128x24xf32>
    %3 = arith.mulf %0, %2 : vector<128x24xf32>
    %c0_3 = arith.constant 0 : index
    %c0_4 = arith.constant 0 : index
    %4 = vector.load %arg4[%c0_3, %c0_4] : memref<1x24xf32, #tpu.memory_space<vmem>>, vector<1x24xf32>
    %5 = vector.broadcast %4 : vector<1x24xf32> to vector<128x24xf32>
    %6 = arith.addf %3, %5 : vector<128x24xf32>
    %cst = arith.constant 0.000000e+00 : f32
    %7 = vector.broadcast %cst : f32 to vector<128x24xf32>
    %8 = arith.maximumf %6, %7 : vector<128x24xf32>
    %9 = arith.truncf %8 : vector<128x24xf32> to vector<128x24xbf16>
    %c0_5 = arith.constant 0 : index
    %c0_6 = arith.constant 0 : index
    %10 = vector.load %arg2[%c0_5, %c0_6] : memref<24x16xf32, #tpu.memory_space<vmem>>, vector<24x16xf32>
    %11 = arith.truncf %10 : vector<24x16xf32> to vector<24x16xbf16>
    %cst_7 = arith.constant dense<0.000000e+00> : vector<128x16xf32>
    %12 = tpu.matmul %9, %11, %cst_7 {dimension_numbers = #tpu.dot_dimension_numbers<[1], [0], [0], [1], [0, 0, 1, 1], [], []>} : vector<128x24xbf16>, vector<24x16xbf16>, vector<128x16xf32> -> vector<128x16xf32>
    %c0_8 = arith.constant 0 : index
    %c0_9 = arith.constant 0 : index
    %13 = vector.load %arg5[%c0_8, %c0_9] : memref<1x16xf32, #tpu.memory_space<vmem>>, vector<1x16xf32>
    %14 = vector.broadcast %13 : vector<1x16xf32> to vector<128x16xf32>
    %15 = arith.mulf %12, %14 : vector<128x16xf32>
    %c0_10 = arith.constant 0 : index
    %c0_11 = arith.constant 0 : index
    %16 = vector.load %arg6[%c0_10, %c0_11] : memref<1x16xf32, #tpu.memory_space<vmem>>, vector<1x16xf32>
    %17 = vector.broadcast %16 : vector<1x16xf32> to vector<128x16xf32>
    %18 = arith.addf %15, %17 : vector<128x16xf32>
    %cst_12 = arith.constant 0.000000e+00 : f32
    %19 = vector.broadcast %cst_12 : f32 to vector<128x16xf32>
    %20 = arith.maximumf %18, %19 : vector<128x16xf32>
    %c0_13 = arith.constant 0 : index
    %c0_14 = arith.constant 0 : index
    %21 = vector.load %arg7[%c0_13, %c0_14] : memref<128x16xf32, #tpu.memory_space<vmem>>, vector<128x16xf32>
    tpu.vector_store %arg7[%c0_13, %c0_14], %20 {strides = array<i32>} : memref<128x16xf32, #tpu.memory_space<vmem>>, vector<128x16xf32>,
    return
  }
  func.func @transform_0(%arg0: i32) -> (i32, i32) {
    %c0_i32 = arith.constant 0 : i32
    %c0_i32_0 = arith.constant 0 : i32
    return %arg0, %c0_i32 : i32, i32
  }
  func.func @transform_1(%arg0: i32) -> (i32, i32) {
    %c0_i32 = arith.constant 0 : i32
    %c0_i32_0 = arith.constant 0 : i32
    %c0_i32_1 = arith.constant 0 : i32
    return %c0_i32, %c0_i32_0 : i32, i32
  }
  func.func @transform_2(%arg0: i32) -> (i32, i32) {
    %c0_i32 = arith.constant 0 : i32
    %c0_i32_0 = arith.constant 0 : i32
    %c0_i32_1 = arith.constant 0 : i32
    return %c0_i32, %c0_i32_0 : i32, i32
  }
  func.func @transform_3(%arg0: i32) -> (i32, i32) {
    %c0_i32 = arith.constant 0 : i32
    %c0_i32_0 = arith.constant 0 : i32
    %c0_i32_1 = arith.constant 0 : i32
    return %c0_i32, %c0_i32_0 : i32, i32
  }
  func.func @transform_4(%arg0: i32) -> (i32, i32) {
    %c0_i32 = arith.constant 0 : i32
    %c0_i32_0 = arith.constant 0 : i32
    %c0_i32_1 = arith.constant 0 : i32
    return %c0_i32, %c0_i32_0 : i32, i32
  }
  func.func @transform_5(%arg0: i32) -> (i32, i32) {
    %c0_i32 = arith.constant 0 : i32
    %c0_i32_0 = arith.constant 0 : i32
    %c0_i32_1 = arith.constant 0 : i32
    return %c0_i32, %c0_i32_0 : i32, i32
  }
  func.func @transform_6(%arg0: i32) -> (i32, i32) {
    %c0_i32 = arith.constant 0 : i32
    %c0_i32_0 = arith.constant 0 : i32
    return %arg0, %c0_i32 : i32, i32
  }
}

module attributes {stable_mosaic.version = 11 : i64} {
  func.func @_conv3x3_concat_kernel(%arg0: i32, %arg1: memref<1x8x8x24xf32, #tpu.memory_space<vmem>>, %arg2: memref<1x10x10x16xf32, #tpu.memory_space<vmem>>, %arg3: memref<3x3x16x8xf32, #tpu.memory_space<vmem>>, %arg4: memref<1x8x8x32xf32, #tpu.memory_space<vmem>>) attributes {dimension_semantics = [#tpu.dimension_semantics<parallel>], iteration_bounds = array<i64: 2>, scalar_prefetch = 0 : i64, scratch_operands = 0 : i64, tpu.core_type = #tpu.core_type<tc>, window_params = [{transform_indices = @transform_0, window_bounds = array<i64: 1, 8, 8, 24>}, {transform_indices = @transform_1, window_bounds = array<i64: 1, 10, 10, 16>}, {pipeline_mode = #tpu.pipeline_mode<synchronous>, transform_indices = @transform_2, window_bounds = array<i64: 3, 3, 16, 8>}, {transform_indices = @transform_3, window_bounds = array<i64: 1, 8, 8, 32>}]} {
    %c0 = arith.constant 0 : index
    %c0_0 = arith.constant 0 : index
    %c0_1 = arith.constant 0 : index
    %c0_2 = arith.constant 0 : index
    %0 = vector.load %arg3[%c0, %c0_0, %c0_1, %c0_2] : memref<3x3x16x8xf32, #tpu.memory_space<vmem>>, vector<3x3x16x8xf32>
    %1 = arith.truncf %0 : vector<3x3x16x8xf32> to vector<3x3x16x8xbf16>
    %cst = arith.constant 0.000000e+00 : f32
    %2 = vector.broadcast %cst : f32 to vector<64x8xf32>
    %c0_3 = arith.constant 0 : index
    %c0_4 = arith.constant 0 : index
    %c0_5 = arith.constant 0 : index
    %c0_6 = arith.constant 0 : index
    %3 = vector.load %arg2[%c0_3, %c0_4, %c0_5, %c0_6] : memref<1x10x10x16xf32, #tpu.memory_space<vmem>>, vector<1x8x8x16xf32>
    %4 = vector.shape_cast %3 : vector<1x8x8x16xf32> to vector<64x16xf32>
    %5 = arith.truncf %4 : vector<64x16xf32> to vector<64x16xbf16>
    %6 = vector.extract_strided_slice %1 {offsets = [0, 0, 0, 0], sizes = [1, 1, 16, 8], strides = [1, 1, 1, 1]} : vector<3x3x16x8xbf16> to vector<1x1x16x8xbf16>
    %7 = vector.shape_cast %6 : vector<1x1x16x8xbf16> to vector<16x8xbf16>
    %cst_7 = arith.constant dense<0.000000e+00> : vector<64x8xf32>
    %8 = tpu.matmul %5, %7, %cst_7 {dimension_numbers = #tpu.dot_dimension_numbers<[1], [0], [0], [1], [0, 0, 1, 1], [], []>} : vector<64x16xbf16>, vector<16x8xbf16>, vector<64x8xf32> -> vector<64x8xf32>
    %9 = arith.addf %2, %8 : vector<64x8xf32>
    %c0_8 = arith.constant 0 : index
    %c0_9 = arith.constant 0 : index
    %c1 = arith.constant 1 : index
    %c0_10 = arith.constant 0 : index
    %10 = vector.load %arg2[%c0_8, %c0_9, %c1, %c0_10] : memref<1x10x10x16xf32, #tpu.memory_space<vmem>>, vector<1x8x8x16xf32>
    %11 = vector.shape_cast %10 : vector<1x8x8x16xf32> to vector<64x16xf32>
    %12 = arith.truncf %11 : vector<64x16xf32> to vector<64x16xbf16>
    %13 = vector.extract_strided_slice %1 {offsets = [0, 1, 0, 0], sizes = [1, 1, 16, 8], strides = [1, 1, 1, 1]} : vector<3x3x16x8xbf16> to vector<1x1x16x8xbf16>
    %14 = vector.shape_cast %13 : vector<1x1x16x8xbf16> to vector<16x8xbf16>
    %cst_11 = arith.constant dense<0.000000e+00> : vector<64x8xf32>
    %15 = tpu.matmul %12, %14, %cst_11 {dimension_numbers = #tpu.dot_dimension_numbers<[1], [0], [0], [1], [0, 0, 1, 1], [], []>} : vector<64x16xbf16>, vector<16x8xbf16>, vector<64x8xf32> -> vector<64x8xf32>
    %16 = arith.addf %9, %15 : vector<64x8xf32>
    %c0_12 = arith.constant 0 : index
    %c0_13 = arith.constant 0 : index
    %c2 = arith.constant 2 : index
    %c0_14 = arith.constant 0 : index
    %17 = vector.load %arg2[%c0_12, %c0_13, %c2, %c0_14] : memref<1x10x10x16xf32, #tpu.memory_space<vmem>>, vector<1x8x8x16xf32>
    %18 = vector.shape_cast %17 : vector<1x8x8x16xf32> to vector<64x16xf32>
    %19 = arith.truncf %18 : vector<64x16xf32> to vector<64x16xbf16>
    %20 = vector.extract_strided_slice %1 {offsets = [0, 2, 0, 0], sizes = [1, 1, 16, 8], strides = [1, 1, 1, 1]} : vector<3x3x16x8xbf16> to vector<1x1x16x8xbf16>
    %21 = vector.shape_cast %20 : vector<1x1x16x8xbf16> to vector<16x8xbf16>
    %cst_15 = arith.constant dense<0.000000e+00> : vector<64x8xf32>
    %22 = tpu.matmul %19, %21, %cst_15 {dimension_numbers = #tpu.dot_dimension_numbers<[1], [0], [0], [1], [0, 0, 1, 1], [], []>} : vector<64x16xbf16>, vector<16x8xbf16>, vector<64x8xf32> -> vector<64x8xf32>
    %23 = arith.addf %16, %22 : vector<64x8xf32>
    %c0_16 = arith.constant 0 : index
    %c1_17 = arith.constant 1 : index
    %c0_18 = arith.constant 0 : index
    %c0_19 = arith.constant 0 : index
    %24 = vector.load %arg2[%c0_16, %c1_17, %c0_18, %c0_19] : memref<1x10x10x16xf32, #tpu.memory_space<vmem>>, vector<1x8x8x16xf32>
    %25 = vector.shape_cast %24 : vector<1x8x8x16xf32> to vector<64x16xf32>
    %26 = arith.truncf %25 : vector<64x16xf32> to vector<64x16xbf16>
    %27 = vector.extract_strided_slice %1 {offsets = [1, 0, 0, 0], sizes = [1, 1, 16, 8], strides = [1, 1, 1, 1]} : vector<3x3x16x8xbf16> to vector<1x1x16x8xbf16>
    %28 = vector.shape_cast %27 : vector<1x1x16x8xbf16> to vector<16x8xbf16>
    %cst_20 = arith.constant dense<0.000000e+00> : vector<64x8xf32>
    %29 = tpu.matmul %26, %28, %cst_20 {dimension_numbers = #tpu.dot_dimension_numbers<[1], [0], [0], [1], [0, 0, 1, 1], [], []>} : vector<64x16xbf16>, vector<16x8xbf16>, vector<64x8xf32> -> vector<64x8xf32>
    %30 = arith.addf %23, %29 : vector<64x8xf32>
    %c0_21 = arith.constant 0 : index
    %c1_22 = arith.constant 1 : index
    %c1_23 = arith.constant 1 : index
    %c0_24 = arith.constant 0 : index
    %31 = vector.load %arg2[%c0_21, %c1_22, %c1_23, %c0_24] : memref<1x10x10x16xf32, #tpu.memory_space<vmem>>, vector<1x8x8x16xf32>
    %32 = vector.shape_cast %31 : vector<1x8x8x16xf32> to vector<64x16xf32>
    %33 = arith.truncf %32 : vector<64x16xf32> to vector<64x16xbf16>
    %34 = vector.extract_strided_slice %1 {offsets = [1, 1, 0, 0], sizes = [1, 1, 16, 8], strides = [1, 1, 1, 1]} : vector<3x3x16x8xbf16> to vector<1x1x16x8xbf16>
    %35 = vector.shape_cast %34 : vector<1x1x16x8xbf16> to vector<16x8xbf16>
    %cst_25 = arith.constant dense<0.000000e+00> : vector<64x8xf32>
    %36 = tpu.matmul %33, %35, %cst_25 {dimension_numbers = #tpu.dot_dimension_numbers<[1], [0], [0], [1], [0, 0, 1, 1], [], []>} : vector<64x16xbf16>, vector<16x8xbf16>, vector<64x8xf32> -> vector<64x8xf32>
    %37 = arith.addf %30, %36 : vector<64x8xf32>
    %c0_26 = arith.constant 0 : index
    %c1_27 = arith.constant 1 : index
    %c2_28 = arith.constant 2 : index
    %c0_29 = arith.constant 0 : index
    %38 = vector.load %arg2[%c0_26, %c1_27, %c2_28, %c0_29] : memref<1x10x10x16xf32, #tpu.memory_space<vmem>>, vector<1x8x8x16xf32>
    %39 = vector.shape_cast %38 : vector<1x8x8x16xf32> to vector<64x16xf32>
    %40 = arith.truncf %39 : vector<64x16xf32> to vector<64x16xbf16>
    %41 = vector.extract_strided_slice %1 {offsets = [1, 2, 0, 0], sizes = [1, 1, 16, 8], strides = [1, 1, 1, 1]} : vector<3x3x16x8xbf16> to vector<1x1x16x8xbf16>
    %42 = vector.shape_cast %41 : vector<1x1x16x8xbf16> to vector<16x8xbf16>
    %cst_30 = arith.constant dense<0.000000e+00> : vector<64x8xf32>
    %43 = tpu.matmul %40, %42, %cst_30 {dimension_numbers = #tpu.dot_dimension_numbers<[1], [0], [0], [1], [0, 0, 1, 1], [], []>} : vector<64x16xbf16>, vector<16x8xbf16>, vector<64x8xf32> -> vector<64x8xf32>
    %44 = arith.addf %37, %43 : vector<64x8xf32>
    %c0_31 = arith.constant 0 : index
    %c2_32 = arith.constant 2 : index
    %c0_33 = arith.constant 0 : index
    %c0_34 = arith.constant 0 : index
    %45 = vector.load %arg2[%c0_31, %c2_32, %c0_33, %c0_34] : memref<1x10x10x16xf32, #tpu.memory_space<vmem>>, vector<1x8x8x16xf32>
    %46 = vector.shape_cast %45 : vector<1x8x8x16xf32> to vector<64x16xf32>
    %47 = arith.truncf %46 : vector<64x16xf32> to vector<64x16xbf16>
    %48 = vector.extract_strided_slice %1 {offsets = [2, 0, 0, 0], sizes = [1, 1, 16, 8], strides = [1, 1, 1, 1]} : vector<3x3x16x8xbf16> to vector<1x1x16x8xbf16>
    %49 = vector.shape_cast %48 : vector<1x1x16x8xbf16> to vector<16x8xbf16>
    %cst_35 = arith.constant dense<0.000000e+00> : vector<64x8xf32>
    %50 = tpu.matmul %47, %49, %cst_35 {dimension_numbers = #tpu.dot_dimension_numbers<[1], [0], [0], [1], [0, 0, 1, 1], [], []>} : vector<64x16xbf16>, vector<16x8xbf16>, vector<64x8xf32> -> vector<64x8xf32>
    %51 = arith.addf %44, %50 : vector<64x8xf32>
    %c0_36 = arith.constant 0 : index
    %c2_37 = arith.constant 2 : index
    %c1_38 = arith.constant 1 : index
    %c0_39 = arith.constant 0 : index
    %52 = vector.load %arg2[%c0_36, %c2_37, %c1_38, %c0_39] : memref<1x10x10x16xf32, #tpu.memory_space<vmem>>, vector<1x8x8x16xf32>
    %53 = vector.shape_cast %52 : vector<1x8x8x16xf32> to vector<64x16xf32>
    %54 = arith.truncf %53 : vector<64x16xf32> to vector<64x16xbf16>
    %55 = vector.extract_strided_slice %1 {offsets = [2, 1, 0, 0], sizes = [1, 1, 16, 8], strides = [1, 1, 1, 1]} : vector<3x3x16x8xbf16> to vector<1x1x16x8xbf16>
    %56 = vector.shape_cast %55 : vector<1x1x16x8xbf16> to vector<16x8xbf16>
    %cst_40 = arith.constant dense<0.000000e+00> : vector<64x8xf32>
    %57 = tpu.matmul %54, %56, %cst_40 {dimension_numbers = #tpu.dot_dimension_numbers<[1], [0], [0], [1], [0, 0, 1, 1], [], []>} : vector<64x16xbf16>, vector<16x8xbf16>, vector<64x8xf32> -> vector<64x8xf32>
    %58 = arith.addf %51, %57 : vector<64x8xf32>
    %c0_41 = arith.constant 0 : index
    %c2_42 = arith.constant 2 : index
    %c2_43 = arith.constant 2 : index
    %c0_44 = arith.constant 0 : index
    %59 = vector.load %arg2[%c0_41, %c2_42, %c2_43, %c0_44] : memref<1x10x10x16xf32, #tpu.memory_space<vmem>>, vector<1x8x8x16xf32>
    %60 = vector.shape_cast %59 : vector<1x8x8x16xf32> to vector<64x16xf32>
    %61 = arith.truncf %60 : vector<64x16xf32> to vector<64x16xbf16>
    %62 = vector.extract_strided_slice %1 {offsets = [2, 2, 0, 0], sizes = [1, 1, 16, 8], strides = [1, 1, 1, 1]} : vector<3x3x16x8xbf16> to vector<1x1x16x8xbf16>
    %63 = vector.shape_cast %62 : vector<1x1x16x8xbf16> to vector<16x8xbf16>
    %cst_45 = arith.constant dense<0.000000e+00> : vector<64x8xf32>
    %64 = tpu.matmul %61, %63, %cst_45 {dimension_numbers = #tpu.dot_dimension_numbers<[1], [0], [0], [1], [0, 0, 1, 1], [], []>} : vector<64x16xbf16>, vector<16x8xbf16>, vector<64x8xf32> -> vector<64x8xf32>
    %65 = arith.addf %58, %64 : vector<64x8xf32>
    %66 = vector.shape_cast %65 : vector<64x8xf32> to vector<1x8x8x8xf32>
    %c0_46 = arith.constant 0 : index
    %c0_47 = arith.constant 0 : index
    %c0_48 = arith.constant 0 : index
    %c0_49 = arith.constant 0 : index
    %67 = vector.load %arg1[%c0_46, %c0_47, %c0_48, %c0_49] : memref<1x8x8x24xf32, #tpu.memory_space<vmem>>, vector<1x8x8x24xf32>
    %68 = tpu.concatenate %67, %66 in 3 : vector<1x8x8x24xf32>, vector<1x8x8x8xf32> -> vector<1x8x8x32xf32>
    %c0_50 = arith.constant 0 : index
    %c0_51 = arith.constant 0 : index
    %c0_52 = arith.constant 0 : index
    %c0_53 = arith.constant 0 : index
    %69 = vector.load %arg4[%c0_50, %c0_51, %c0_52, %c0_53] : memref<1x8x8x32xf32, #tpu.memory_space<vmem>>, vector<1x8x8x32xf32>
    tpu.vector_store %arg4[%c0_50, %c0_51, %c0_52, %c0_53], %68 {strides = array<i32>} : memref<1x8x8x32xf32, #tpu.memory_space<vmem>>, vector<1x8x8x32xf32>,
    return
  }
  func.func @transform_0(%arg0: i32) -> (i32, i32, i32, i32) {
    %c0_i32 = arith.constant 0 : i32
    %c0_i32_0 = arith.constant 0 : i32
    %c0_i32_1 = arith.constant 0 : i32
    %c0_i32_2 = arith.constant 0 : i32
    return %arg0, %c0_i32, %c0_i32_0, %c0_i32_1 : i32, i32, i32, i32
  }
  func.func @transform_1(%arg0: i32) -> (i32, i32, i32, i32) {
    %c0_i32 = arith.constant 0 : i32
    %c0_i32_0 = arith.constant 0 : i32
    %c0_i32_1 = arith.constant 0 : i32
    %c0_i32_2 = arith.constant 0 : i32
    return %arg0, %c0_i32, %c0_i32_0, %c0_i32_1 : i32, i32, i32, i32
  }
  func.func @transform_2(%arg0: i32) -> (i32, i32, i32, i32) {
    %c0_i32 = arith.constant 0 : i32
    %c0_i32_0 = arith.constant 0 : i32
    %c0_i32_1 = arith.constant 0 : i32
    %c0_i32_2 = arith.constant 0 : i32
    %c0_i32_3 = arith.constant 0 : i32
    return %c0_i32, %c0_i32_0, %c0_i32_1, %c0_i32_2 : i32, i32, i32, i32
  }
  func.func @transform_3(%arg0: i32) -> (i32, i32, i32, i32) {
    %c0_i32 = arith.constant 0 : i32
    %c0_i32_0 = arith.constant 0 : i32
    %c0_i32_1 = arith.constant 0 : i32
    %c0_i32_2 = arith.constant 0 : i32
    return %arg0, %c0_i32, %c0_i32_0, %c0_i32_1 : i32, i32, i32, i32
  }
}

module attributes {stable_mosaic.version = 11 : i64} {
  func.func @_fused_matmul_kernel(%arg0: i32, %arg1: memref<128x32xf32, #tpu.memory_space<vmem>>, %arg2: memref<32x16xf32, #tpu.memory_space<vmem>>, %arg3: memref<1x32xf32, #tpu.memory_space<vmem>>, %arg4: memref<1x32xf32, #tpu.memory_space<vmem>>, %arg5: memref<128x16xf32, #tpu.memory_space<vmem>>) attributes {dimension_semantics = [#tpu.dimension_semantics<parallel>], iteration_bounds = array<i64: 1>, scalar_prefetch = 0 : i64, scratch_operands = 0 : i64, tpu.core_type = #tpu.core_type<tc>, window_params = [{transform_indices = @transform_0, window_bounds = array<i64: 128, 32>}, {pipeline_mode = #tpu.pipeline_mode<synchronous>, transform_indices = @transform_1, window_bounds = array<i64: 32, 16>}, {pipeline_mode = #tpu.pipeline_mode<synchronous>, transform_indices = @transform_2, window_bounds = array<i64: 1, 32>}, {pipeline_mode = #tpu.pipeline_mode<synchronous>, transform_indices = @transform_3, window_bounds = array<i64: 1, 32>}, {transform_indices = @transform_4, window_bounds = array<i64: 128, 16>}]} {
    %c0 = arith.constant 0 : index
    %c0_0 = arith.constant 0 : index
    %0 = vector.load %arg1[%c0, %c0_0] : memref<128x32xf32, #tpu.memory_space<vmem>>, vector<128x32xf32>
    %c0_1 = arith.constant 0 : index
    %c0_2 = arith.constant 0 : index
    %1 = vector.load %arg3[%c0_1, %c0_2] : memref<1x32xf32, #tpu.memory_space<vmem>>, vector<1x32xf32>
    %2 = vector.broadcast %1 : vector<1x32xf32> to vector<128x32xf32>
    %3 = arith.mulf %0, %2 : vector<128x32xf32>
    %c0_3 = arith.constant 0 : index
    %c0_4 = arith.constant 0 : index
    %4 = vector.load %arg4[%c0_3, %c0_4] : memref<1x32xf32, #tpu.memory_space<vmem>>, vector<1x32xf32>
    %5 = vector.broadcast %4 : vector<1x32xf32> to vector<128x32xf32>
    %6 = arith.addf %3, %5 : vector<128x32xf32>
    %cst = arith.constant 0.000000e+00 : f32
    %7 = vector.broadcast %cst : f32 to vector<128x32xf32>
    %8 = arith.maximumf %6, %7 : vector<128x32xf32>
    %9 = arith.truncf %8 : vector<128x32xf32> to vector<128x32xbf16>
    %c0_5 = arith.constant 0 : index
    %c0_6 = arith.constant 0 : index
    %10 = vector.load %arg2[%c0_5, %c0_6] : memref<32x16xf32, #tpu.memory_space<vmem>>, vector<32x16xf32>
    %11 = arith.truncf %10 : vector<32x16xf32> to vector<32x16xbf16>
    %cst_7 = arith.constant dense<0.000000e+00> : vector<128x16xf32>
    %12 = tpu.matmul %9, %11, %cst_7 {dimension_numbers = #tpu.dot_dimension_numbers<[1], [0], [0], [1], [0, 0, 1, 1], [], []>} : vector<128x32xbf16>, vector<32x16xbf16>, vector<128x16xf32> -> vector<128x16xf32>
    %c0_8 = arith.constant 0 : index
    %c0_9 = arith.constant 0 : index
    %13 = vector.load %arg5[%c0_8, %c0_9] : memref<128x16xf32, #tpu.memory_space<vmem>>, vector<128x16xf32>
    tpu.vector_store %arg5[%c0_8, %c0_9], %12 {strides = array<i32>} : memref<128x16xf32, #tpu.memory_space<vmem>>, vector<128x16xf32>,
    return
  }
  func.func @transform_0(%arg0: i32) -> (i32, i32) {
    %c0_i32 = arith.constant 0 : i32
    %c0_i32_0 = arith.constant 0 : i32
    return %arg0, %c0_i32 : i32, i32
  }
  func.func @transform_1(%arg0: i32) -> (i32, i32) {
    %c0_i32 = arith.constant 0 : i32
    %c0_i32_0 = arith.constant 0 : i32
    %c0_i32_1 = arith.constant 0 : i32
    return %c0_i32, %c0_i32_0 : i32, i32
  }
  func.func @transform_2(%arg0: i32) -> (i32, i32) {
    %c0_i32 = arith.constant 0 : i32
    %c0_i32_0 = arith.constant 0 : i32
    %c0_i32_1 = arith.constant 0 : i32
    return %c0_i32, %c0_i32_0 : i32, i32
  }
  func.func @transform_3(%arg0: i32) -> (i32, i32) {
    %c0_i32 = arith.constant 0 : i32
    %c0_i32_0 = arith.constant 0 : i32
    %c0_i32_1 = arith.constant 0 : i32
    return %c0_i32, %c0_i32_0 : i32, i32
  }
  func.func @transform_4(%arg0: i32) -> (i32, i32) {
    %c0_i32 = arith.constant 0 : i32
    %c0_i32_0 = arith.constant 0 : i32
    return %arg0, %c0_i32 : i32, i32
  }
}

module attributes {stable_mosaic.version = 11 : i64} {
  func.func @_fused_matmul_kernel(%arg0: i32, %arg1: memref<32x16xf32, #tpu.memory_space<vmem>>, %arg2: memref<16x16xf32, #tpu.memory_space<vmem>>, %arg3: memref<1x16xf32, #tpu.memory_space<vmem>>, %arg4: memref<1x16xf32, #tpu.memory_space<vmem>>, %arg5: memref<1x16xf32, #tpu.memory_space<vmem>>, %arg6: memref<1x16xf32, #tpu.memory_space<vmem>>, %arg7: memref<32x16xf32, #tpu.memory_space<vmem>>) attributes {dimension_semantics = [#tpu.dimension_semantics<parallel>], iteration_bounds = array<i64: 1>, scalar_prefetch = 0 : i64, scratch_operands = 0 : i64, tpu.core_type = #tpu.core_type<tc>, window_params = [{transform_indices = @transform_0, window_bounds = array<i64: 32, 16>}, {pipeline_mode = #tpu.pipeline_mode<synchronous>, transform_indices = @transform_1, window_bounds = array<i64: 16, 16>}, {pipeline_mode = #tpu.pipeline_mode<synchronous>, transform_indices = @transform_2, window_bounds = array<i64: 1, 16>}, {pipeline_mode = #tpu.pipeline_mode<synchronous>, transform_indices = @transform_3, window_bounds = array<i64: 1, 16>}, {pipeline_mode = #tpu.pipeline_mode<synchronous>, transform_indices = @transform_4, window_bounds = array<i64: 1, 16>}, {pipeline_mode = #tpu.pipeline_mode<synchronous>, transform_indices = @transform_5, window_bounds = array<i64: 1, 16>}, {transform_indices = @transform_6, window_bounds = array<i64: 32, 16>}]} {
    %c0 = arith.constant 0 : index
    %c0_0 = arith.constant 0 : index
    %0 = vector.load %arg1[%c0, %c0_0] : memref<32x16xf32, #tpu.memory_space<vmem>>, vector<32x16xf32>
    %c0_1 = arith.constant 0 : index
    %c0_2 = arith.constant 0 : index
    %1 = vector.load %arg3[%c0_1, %c0_2] : memref<1x16xf32, #tpu.memory_space<vmem>>, vector<1x16xf32>
    %2 = vector.broadcast %1 : vector<1x16xf32> to vector<32x16xf32>
    %3 = arith.mulf %0, %2 : vector<32x16xf32>
    %c0_3 = arith.constant 0 : index
    %c0_4 = arith.constant 0 : index
    %4 = vector.load %arg4[%c0_3, %c0_4] : memref<1x16xf32, #tpu.memory_space<vmem>>, vector<1x16xf32>
    %5 = vector.broadcast %4 : vector<1x16xf32> to vector<32x16xf32>
    %6 = arith.addf %3, %5 : vector<32x16xf32>
    %cst = arith.constant 0.000000e+00 : f32
    %7 = vector.broadcast %cst : f32 to vector<32x16xf32>
    %8 = arith.maximumf %6, %7 : vector<32x16xf32>
    %9 = arith.truncf %8 : vector<32x16xf32> to vector<32x16xbf16>
    %c0_5 = arith.constant 0 : index
    %c0_6 = arith.constant 0 : index
    %10 = vector.load %arg2[%c0_5, %c0_6] : memref<16x16xf32, #tpu.memory_space<vmem>>, vector<16x16xf32>
    %11 = arith.truncf %10 : vector<16x16xf32> to vector<16x16xbf16>
    %cst_7 = arith.constant dense<0.000000e+00> : vector<32x16xf32>
    %12 = tpu.matmul %9, %11, %cst_7 {dimension_numbers = #tpu.dot_dimension_numbers<[1], [0], [0], [1], [0, 0, 1, 1], [], []>} : vector<32x16xbf16>, vector<16x16xbf16>, vector<32x16xf32> -> vector<32x16xf32>
    %c0_8 = arith.constant 0 : index
    %c0_9 = arith.constant 0 : index
    %13 = vector.load %arg5[%c0_8, %c0_9] : memref<1x16xf32, #tpu.memory_space<vmem>>, vector<1x16xf32>
    %14 = vector.broadcast %13 : vector<1x16xf32> to vector<32x16xf32>
    %15 = arith.mulf %12, %14 : vector<32x16xf32>
    %c0_10 = arith.constant 0 : index
    %c0_11 = arith.constant 0 : index
    %16 = vector.load %arg6[%c0_10, %c0_11] : memref<1x16xf32, #tpu.memory_space<vmem>>, vector<1x16xf32>
    %17 = vector.broadcast %16 : vector<1x16xf32> to vector<32x16xf32>
    %18 = arith.addf %15, %17 : vector<32x16xf32>
    %cst_12 = arith.constant 0.000000e+00 : f32
    %19 = vector.broadcast %cst_12 : f32 to vector<32x16xf32>
    %20 = arith.maximumf %18, %19 : vector<32x16xf32>
    %c0_13 = arith.constant 0 : index
    %c0_14 = arith.constant 0 : index
    %21 = vector.load %arg7[%c0_13, %c0_14] : memref<32x16xf32, #tpu.memory_space<vmem>>, vector<32x16xf32>
    tpu.vector_store %arg7[%c0_13, %c0_14], %20 {strides = array<i32>} : memref<32x16xf32, #tpu.memory_space<vmem>>, vector<32x16xf32>,
    return
  }
  func.func @transform_0(%arg0: i32) -> (i32, i32) {
    %c0_i32 = arith.constant 0 : i32
    %c0_i32_0 = arith.constant 0 : i32
    return %arg0, %c0_i32 : i32, i32
  }
  func.func @transform_1(%arg0: i32) -> (i32, i32) {
    %c0_i32 = arith.constant 0 : i32
    %c0_i32_0 = arith.constant 0 : i32
    %c0_i32_1 = arith.constant 0 : i32
    return %c0_i32, %c0_i32_0 : i32, i32
  }
  func.func @transform_2(%arg0: i32) -> (i32, i32) {
    %c0_i32 = arith.constant 0 : i32
    %c0_i32_0 = arith.constant 0 : i32
    %c0_i32_1 = arith.constant 0 : i32
    return %c0_i32, %c0_i32_0 : i32, i32
  }
  func.func @transform_3(%arg0: i32) -> (i32, i32) {
    %c0_i32 = arith.constant 0 : i32
    %c0_i32_0 = arith.constant 0 : i32
    %c0_i32_1 = arith.constant 0 : i32
    return %c0_i32, %c0_i32_0 : i32, i32
  }
  func.func @transform_4(%arg0: i32) -> (i32, i32) {
    %c0_i32 = arith.constant 0 : i32
    %c0_i32_0 = arith.constant 0 : i32
    %c0_i32_1 = arith.constant 0 : i32
    return %c0_i32, %c0_i32_0 : i32, i32
  }
  func.func @transform_5(%arg0: i32) -> (i32, i32) {
    %c0_i32 = arith.constant 0 : i32
    %c0_i32_0 = arith.constant 0 : i32
    %c0_i32_1 = arith.constant 0 : i32
    return %c0_i32, %c0_i32_0 : i32, i32
  }
  func.func @transform_6(%arg0: i32) -> (i32, i32) {
    %c0_i32 = arith.constant 0 : i32
    %c0_i32_0 = arith.constant 0 : i32
    return %arg0, %c0_i32 : i32, i32
  }
}

module attributes {stable_mosaic.version = 11 : i64} {
  func.func @_conv3x3_concat_kernel(%arg0: i32, %arg1: memref<1x4x4x16xf32, #tpu.memory_space<vmem>>, %arg2: memref<1x6x6x16xf32, #tpu.memory_space<vmem>>, %arg3: memref<3x3x16x8xf32, #tpu.memory_space<vmem>>, %arg4: memref<1x4x4x24xf32, #tpu.memory_space<vmem>>) attributes {dimension_semantics = [#tpu.dimension_semantics<parallel>], iteration_bounds = array<i64: 2>, scalar_prefetch = 0 : i64, scratch_operands = 0 : i64, tpu.core_type = #tpu.core_type<tc>, window_params = [{transform_indices = @transform_0, window_bounds = array<i64: 1, 4, 4, 16>}, {transform_indices = @transform_1, window_bounds = array<i64: 1, 6, 6, 16>}, {pipeline_mode = #tpu.pipeline_mode<synchronous>, transform_indices = @transform_2, window_bounds = array<i64: 3, 3, 16, 8>}, {transform_indices = @transform_3, window_bounds = array<i64: 1, 4, 4, 24>}]} {
    %c0 = arith.constant 0 : index
    %c0_0 = arith.constant 0 : index
    %c0_1 = arith.constant 0 : index
    %c0_2 = arith.constant 0 : index
    %0 = vector.load %arg3[%c0, %c0_0, %c0_1, %c0_2] : memref<3x3x16x8xf32, #tpu.memory_space<vmem>>, vector<3x3x16x8xf32>
    %1 = arith.truncf %0 : vector<3x3x16x8xf32> to vector<3x3x16x8xbf16>
    %cst = arith.constant 0.000000e+00 : f32
    %2 = vector.broadcast %cst : f32 to vector<16x8xf32>
    %c0_3 = arith.constant 0 : index
    %c0_4 = arith.constant 0 : index
    %c0_5 = arith.constant 0 : index
    %c0_6 = arith.constant 0 : index
    %3 = vector.load %arg2[%c0_3, %c0_4, %c0_5, %c0_6] : memref<1x6x6x16xf32, #tpu.memory_space<vmem>>, vector<1x4x4x16xf32>
    %4 = vector.shape_cast %3 : vector<1x4x4x16xf32> to vector<16x16xf32>
    %5 = arith.truncf %4 : vector<16x16xf32> to vector<16x16xbf16>
    %6 = vector.extract_strided_slice %1 {offsets = [0, 0, 0, 0], sizes = [1, 1, 16, 8], strides = [1, 1, 1, 1]} : vector<3x3x16x8xbf16> to vector<1x1x16x8xbf16>
    %7 = vector.shape_cast %6 : vector<1x1x16x8xbf16> to vector<16x8xbf16>
    %cst_7 = arith.constant dense<0.000000e+00> : vector<16x8xf32>
    %8 = tpu.matmul %5, %7, %cst_7 {dimension_numbers = #tpu.dot_dimension_numbers<[1], [0], [0], [1], [0, 0, 1, 1], [], []>} : vector<16x16xbf16>, vector<16x8xbf16>, vector<16x8xf32> -> vector<16x8xf32>
    %9 = arith.addf %2, %8 : vector<16x8xf32>
    %c0_8 = arith.constant 0 : index
    %c0_9 = arith.constant 0 : index
    %c1 = arith.constant 1 : index
    %c0_10 = arith.constant 0 : index
    %10 = vector.load %arg2[%c0_8, %c0_9, %c1, %c0_10] : memref<1x6x6x16xf32, #tpu.memory_space<vmem>>, vector<1x4x4x16xf32>
    %11 = vector.shape_cast %10 : vector<1x4x4x16xf32> to vector<16x16xf32>
    %12 = arith.truncf %11 : vector<16x16xf32> to vector<16x16xbf16>
    %13 = vector.extract_strided_slice %1 {offsets = [0, 1, 0, 0], sizes = [1, 1, 16, 8], strides = [1, 1, 1, 1]} : vector<3x3x16x8xbf16> to vector<1x1x16x8xbf16>
    %14 = vector.shape_cast %13 : vector<1x1x16x8xbf16> to vector<16x8xbf16>
    %cst_11 = arith.constant dense<0.000000e+00> : vector<16x8xf32>
    %15 = tpu.matmul %12, %14, %cst_11 {dimension_numbers = #tpu.dot_dimension_numbers<[1], [0], [0], [1], [0, 0, 1, 1], [], []>} : vector<16x16xbf16>, vector<16x8xbf16>, vector<16x8xf32> -> vector<16x8xf32>
    %16 = arith.addf %9, %15 : vector<16x8xf32>
    %c0_12 = arith.constant 0 : index
    %c0_13 = arith.constant 0 : index
    %c2 = arith.constant 2 : index
    %c0_14 = arith.constant 0 : index
    %17 = vector.load %arg2[%c0_12, %c0_13, %c2, %c0_14] : memref<1x6x6x16xf32, #tpu.memory_space<vmem>>, vector<1x4x4x16xf32>
    %18 = vector.shape_cast %17 : vector<1x4x4x16xf32> to vector<16x16xf32>
    %19 = arith.truncf %18 : vector<16x16xf32> to vector<16x16xbf16>
    %20 = vector.extract_strided_slice %1 {offsets = [0, 2, 0, 0], sizes = [1, 1, 16, 8], strides = [1, 1, 1, 1]} : vector<3x3x16x8xbf16> to vector<1x1x16x8xbf16>
    %21 = vector.shape_cast %20 : vector<1x1x16x8xbf16> to vector<16x8xbf16>
    %cst_15 = arith.constant dense<0.000000e+00> : vector<16x8xf32>
    %22 = tpu.matmul %19, %21, %cst_15 {dimension_numbers = #tpu.dot_dimension_numbers<[1], [0], [0], [1], [0, 0, 1, 1], [], []>} : vector<16x16xbf16>, vector<16x8xbf16>, vector<16x8xf32> -> vector<16x8xf32>
    %23 = arith.addf %16, %22 : vector<16x8xf32>
    %c0_16 = arith.constant 0 : index
    %c1_17 = arith.constant 1 : index
    %c0_18 = arith.constant 0 : index
    %c0_19 = arith.constant 0 : index
    %24 = vector.load %arg2[%c0_16, %c1_17, %c0_18, %c0_19] : memref<1x6x6x16xf32, #tpu.memory_space<vmem>>, vector<1x4x4x16xf32>
    %25 = vector.shape_cast %24 : vector<1x4x4x16xf32> to vector<16x16xf32>
    %26 = arith.truncf %25 : vector<16x16xf32> to vector<16x16xbf16>
    %27 = vector.extract_strided_slice %1 {offsets = [1, 0, 0, 0], sizes = [1, 1, 16, 8], strides = [1, 1, 1, 1]} : vector<3x3x16x8xbf16> to vector<1x1x16x8xbf16>
    %28 = vector.shape_cast %27 : vector<1x1x16x8xbf16> to vector<16x8xbf16>
    %cst_20 = arith.constant dense<0.000000e+00> : vector<16x8xf32>
    %29 = tpu.matmul %26, %28, %cst_20 {dimension_numbers = #tpu.dot_dimension_numbers<[1], [0], [0], [1], [0, 0, 1, 1], [], []>} : vector<16x16xbf16>, vector<16x8xbf16>, vector<16x8xf32> -> vector<16x8xf32>
    %30 = arith.addf %23, %29 : vector<16x8xf32>
    %c0_21 = arith.constant 0 : index
    %c1_22 = arith.constant 1 : index
    %c1_23 = arith.constant 1 : index
    %c0_24 = arith.constant 0 : index
    %31 = vector.load %arg2[%c0_21, %c1_22, %c1_23, %c0_24] : memref<1x6x6x16xf32, #tpu.memory_space<vmem>>, vector<1x4x4x16xf32>
    %32 = vector.shape_cast %31 : vector<1x4x4x16xf32> to vector<16x16xf32>
    %33 = arith.truncf %32 : vector<16x16xf32> to vector<16x16xbf16>
    %34 = vector.extract_strided_slice %1 {offsets = [1, 1, 0, 0], sizes = [1, 1, 16, 8], strides = [1, 1, 1, 1]} : vector<3x3x16x8xbf16> to vector<1x1x16x8xbf16>
    %35 = vector.shape_cast %34 : vector<1x1x16x8xbf16> to vector<16x8xbf16>
    %cst_25 = arith.constant dense<0.000000e+00> : vector<16x8xf32>
    %36 = tpu.matmul %33, %35, %cst_25 {dimension_numbers = #tpu.dot_dimension_numbers<[1], [0], [0], [1], [0, 0, 1, 1], [], []>} : vector<16x16xbf16>, vector<16x8xbf16>, vector<16x8xf32> -> vector<16x8xf32>
    %37 = arith.addf %30, %36 : vector<16x8xf32>
    %c0_26 = arith.constant 0 : index
    %c1_27 = arith.constant 1 : index
    %c2_28 = arith.constant 2 : index
    %c0_29 = arith.constant 0 : index
    %38 = vector.load %arg2[%c0_26, %c1_27, %c2_28, %c0_29] : memref<1x6x6x16xf32, #tpu.memory_space<vmem>>, vector<1x4x4x16xf32>
    %39 = vector.shape_cast %38 : vector<1x4x4x16xf32> to vector<16x16xf32>
    %40 = arith.truncf %39 : vector<16x16xf32> to vector<16x16xbf16>
    %41 = vector.extract_strided_slice %1 {offsets = [1, 2, 0, 0], sizes = [1, 1, 16, 8], strides = [1, 1, 1, 1]} : vector<3x3x16x8xbf16> to vector<1x1x16x8xbf16>
    %42 = vector.shape_cast %41 : vector<1x1x16x8xbf16> to vector<16x8xbf16>
    %cst_30 = arith.constant dense<0.000000e+00> : vector<16x8xf32>
    %43 = tpu.matmul %40, %42, %cst_30 {dimension_numbers = #tpu.dot_dimension_numbers<[1], [0], [0], [1], [0, 0, 1, 1], [], []>} : vector<16x16xbf16>, vector<16x8xbf16>, vector<16x8xf32> -> vector<16x8xf32>
    %44 = arith.addf %37, %43 : vector<16x8xf32>
    %c0_31 = arith.constant 0 : index
    %c2_32 = arith.constant 2 : index
    %c0_33 = arith.constant 0 : index
    %c0_34 = arith.constant 0 : index
    %45 = vector.load %arg2[%c0_31, %c2_32, %c0_33, %c0_34] : memref<1x6x6x16xf32, #tpu.memory_space<vmem>>, vector<1x4x4x16xf32>
    %46 = vector.shape_cast %45 : vector<1x4x4x16xf32> to vector<16x16xf32>
    %47 = arith.truncf %46 : vector<16x16xf32> to vector<16x16xbf16>
    %48 = vector.extract_strided_slice %1 {offsets = [2, 0, 0, 0], sizes = [1, 1, 16, 8], strides = [1, 1, 1, 1]} : vector<3x3x16x8xbf16> to vector<1x1x16x8xbf16>
    %49 = vector.shape_cast %48 : vector<1x1x16x8xbf16> to vector<16x8xbf16>
    %cst_35 = arith.constant dense<0.000000e+00> : vector<16x8xf32>
    %50 = tpu.matmul %47, %49, %cst_35 {dimension_numbers = #tpu.dot_dimension_numbers<[1], [0], [0], [1], [0, 0, 1, 1], [], []>} : vector<16x16xbf16>, vector<16x8xbf16>, vector<16x8xf32> -> vector<16x8xf32>
    %51 = arith.addf %44, %50 : vector<16x8xf32>
    %c0_36 = arith.constant 0 : index
    %c2_37 = arith.constant 2 : index
    %c1_38 = arith.constant 1 : index
    %c0_39 = arith.constant 0 : index
    %52 = vector.load %arg2[%c0_36, %c2_37, %c1_38, %c0_39] : memref<1x6x6x16xf32, #tpu.memory_space<vmem>>, vector<1x4x4x16xf32>
    %53 = vector.shape_cast %52 : vector<1x4x4x16xf32> to vector<16x16xf32>
    %54 = arith.truncf %53 : vector<16x16xf32> to vector<16x16xbf16>
    %55 = vector.extract_strided_slice %1 {offsets = [2, 1, 0, 0], sizes = [1, 1, 16, 8], strides = [1, 1, 1, 1]} : vector<3x3x16x8xbf16> to vector<1x1x16x8xbf16>
    %56 = vector.shape_cast %55 : vector<1x1x16x8xbf16> to vector<16x8xbf16>
    %cst_40 = arith.constant dense<0.000000e+00> : vector<16x8xf32>
    %57 = tpu.matmul %54, %56, %cst_40 {dimension_numbers = #tpu.dot_dimension_numbers<[1], [0], [0], [1], [0, 0, 1, 1], [], []>} : vector<16x16xbf16>, vector<16x8xbf16>, vector<16x8xf32> -> vector<16x8xf32>
    %58 = arith.addf %51, %57 : vector<16x8xf32>
    %c0_41 = arith.constant 0 : index
    %c2_42 = arith.constant 2 : index
    %c2_43 = arith.constant 2 : index
    %c0_44 = arith.constant 0 : index
    %59 = vector.load %arg2[%c0_41, %c2_42, %c2_43, %c0_44] : memref<1x6x6x16xf32, #tpu.memory_space<vmem>>, vector<1x4x4x16xf32>
    %60 = vector.shape_cast %59 : vector<1x4x4x16xf32> to vector<16x16xf32>
    %61 = arith.truncf %60 : vector<16x16xf32> to vector<16x16xbf16>
    %62 = vector.extract_strided_slice %1 {offsets = [2, 2, 0, 0], sizes = [1, 1, 16, 8], strides = [1, 1, 1, 1]} : vector<3x3x16x8xbf16> to vector<1x1x16x8xbf16>
    %63 = vector.shape_cast %62 : vector<1x1x16x8xbf16> to vector<16x8xbf16>
    %cst_45 = arith.constant dense<0.000000e+00> : vector<16x8xf32>
    %64 = tpu.matmul %61, %63, %cst_45 {dimension_numbers = #tpu.dot_dimension_numbers<[1], [0], [0], [1], [0, 0, 1, 1], [], []>} : vector<16x16xbf16>, vector<16x8xbf16>, vector<16x8xf32> -> vector<16x8xf32>
    %65 = arith.addf %58, %64 : vector<16x8xf32>
    %66 = vector.shape_cast %65 : vector<16x8xf32> to vector<1x4x4x8xf32>
    %c0_46 = arith.constant 0 : index
    %c0_47 = arith.constant 0 : index
    %c0_48 = arith.constant 0 : index
    %c0_49 = arith.constant 0 : index
    %67 = vector.load %arg1[%c0_46, %c0_47, %c0_48, %c0_49] : memref<1x4x4x16xf32, #tpu.memory_space<vmem>>, vector<1x4x4x16xf32>
    %68 = tpu.concatenate %67, %66 in 3 : vector<1x4x4x16xf32>, vector<1x4x4x8xf32> -> vector<1x4x4x24xf32>
    %c0_50 = arith.constant 0 : index
    %c0_51 = arith.constant 0 : index
    %c0_52 = arith.constant 0 : index
    %c0_53 = arith.constant 0 : index
    %69 = vector.load %arg4[%c0_50, %c0_51, %c0_52, %c0_53] : memref<1x4x4x24xf32, #tpu.memory_space<vmem>>, vector<1x4x4x24xf32>
    tpu.vector_store %arg4[%c0_50, %c0_51, %c0_52, %c0_53], %68 {strides = array<i32>} : memref<1x4x4x24xf32, #tpu.memory_space<vmem>>, vector<1x4x4x24xf32>,
    return
  }
  func.func @transform_0(%arg0: i32) -> (i32, i32, i32, i32) {
    %c0_i32 = arith.constant 0 : i32
    %c0_i32_0 = arith.constant 0 : i32
    %c0_i32_1 = arith.constant 0 : i32
    %c0_i32_2 = arith.constant 0 : i32
    return %arg0, %c0_i32, %c0_i32_0, %c0_i32_1 : i32, i32, i32, i32
  }
  func.func @transform_1(%arg0: i32) -> (i32, i32, i32, i32) {
    %c0_i32 = arith.constant 0 : i32
    %c0_i32_0 = arith.constant 0 : i32
    %c0_i32_1 = arith.constant 0 : i32
    %c0_i32_2 = arith.constant 0 : i32
    return %arg0, %c0_i32, %c0_i32_0, %c0_i32_1 : i32, i32, i32, i32
  }
  func.func @transform_2(%arg0: i32) -> (i32, i32, i32, i32) {
    %c0_i32 = arith.constant 0 : i32
    %c0_i32_0 = arith.constant 0 : i32
    %c0_i32_1 = arith.constant 0 : i32
    %c0_i32_2 = arith.constant 0 : i32
    %c0_i32_3 = arith.constant 0 : i32
    return %c0_i32, %c0_i32_0, %c0_i32_1, %c0_i32_2 : i32, i32, i32, i32
  }
  func.func @transform_3(%arg0: i32) -> (i32, i32, i32, i32) {
    %c0_i32 = arith.constant 0 : i32
    %c0_i32_0 = arith.constant 0 : i32
    %c0_i32_1 = arith.constant 0 : i32
    %c0_i32_2 = arith.constant 0 : i32
    return %arg0, %c0_i32, %c0_i32_0, %c0_i32_1 : i32, i32, i32, i32
  }
}

module attributes {stable_mosaic.version = 11 : i64} {
  func.func @_fused_matmul_kernel(%arg0: i32, %arg1: memref<32x24xf32, #tpu.memory_space<vmem>>, %arg2: memref<24x16xf32, #tpu.memory_space<vmem>>, %arg3: memref<1x24xf32, #tpu.memory_space<vmem>>, %arg4: memref<1x24xf32, #tpu.memory_space<vmem>>, %arg5: memref<1x16xf32, #tpu.memory_space<vmem>>, %arg6: memref<1x16xf32, #tpu.memory_space<vmem>>, %arg7: memref<32x16xf32, #tpu.memory_space<vmem>>) attributes {dimension_semantics = [#tpu.dimension_semantics<parallel>], iteration_bounds = array<i64: 1>, scalar_prefetch = 0 : i64, scratch_operands = 0 : i64, tpu.core_type = #tpu.core_type<tc>, window_params = [{transform_indices = @transform_0, window_bounds = array<i64: 32, 24>}, {pipeline_mode = #tpu.pipeline_mode<synchronous>, transform_indices = @transform_1, window_bounds = array<i64: 24, 16>}, {pipeline_mode = #tpu.pipeline_mode<synchronous>, transform_indices = @transform_2, window_bounds = array<i64: 1, 24>}, {pipeline_mode = #tpu.pipeline_mode<synchronous>, transform_indices = @transform_3, window_bounds = array<i64: 1, 24>}, {pipeline_mode = #tpu.pipeline_mode<synchronous>, transform_indices = @transform_4, window_bounds = array<i64: 1, 16>}, {pipeline_mode = #tpu.pipeline_mode<synchronous>, transform_indices = @transform_5, window_bounds = array<i64: 1, 16>}, {transform_indices = @transform_6, window_bounds = array<i64: 32, 16>}]} {
    %c0 = arith.constant 0 : index
    %c0_0 = arith.constant 0 : index
    %0 = vector.load %arg1[%c0, %c0_0] : memref<32x24xf32, #tpu.memory_space<vmem>>, vector<32x24xf32>
    %c0_1 = arith.constant 0 : index
    %c0_2 = arith.constant 0 : index
    %1 = vector.load %arg3[%c0_1, %c0_2] : memref<1x24xf32, #tpu.memory_space<vmem>>, vector<1x24xf32>
    %2 = vector.broadcast %1 : vector<1x24xf32> to vector<32x24xf32>
    %3 = arith.mulf %0, %2 : vector<32x24xf32>
    %c0_3 = arith.constant 0 : index
    %c0_4 = arith.constant 0 : index
    %4 = vector.load %arg4[%c0_3, %c0_4] : memref<1x24xf32, #tpu.memory_space<vmem>>, vector<1x24xf32>
    %5 = vector.broadcast %4 : vector<1x24xf32> to vector<32x24xf32>
    %6 = arith.addf %3, %5 : vector<32x24xf32>
    %cst = arith.constant 0.000000e+00 : f32
    %7 = vector.broadcast %cst : f32 to vector<32x24xf32>
    %8 = arith.maximumf %6, %7 : vector<32x24xf32>
    %9 = arith.truncf %8 : vector<32x24xf32> to vector<32x24xbf16>
    %c0_5 = arith.constant 0 : index
    %c0_6 = arith.constant 0 : index
    %10 = vector.load %arg2[%c0_5, %c0_6] : memref<24x16xf32, #tpu.memory_space<vmem>>, vector<24x16xf32>
    %11 = arith.truncf %10 : vector<24x16xf32> to vector<24x16xbf16>
    %cst_7 = arith.constant dense<0.000000e+00> : vector<32x16xf32>
    %12 = tpu.matmul %9, %11, %cst_7 {dimension_numbers = #tpu.dot_dimension_numbers<[1], [0], [0], [1], [0, 0, 1, 1], [], []>} : vector<32x24xbf16>, vector<24x16xbf16>, vector<32x16xf32> -> vector<32x16xf32>
    %c0_8 = arith.constant 0 : index
    %c0_9 = arith.constant 0 : index
    %13 = vector.load %arg5[%c0_8, %c0_9] : memref<1x16xf32, #tpu.memory_space<vmem>>, vector<1x16xf32>
    %14 = vector.broadcast %13 : vector<1x16xf32> to vector<32x16xf32>
    %15 = arith.mulf %12, %14 : vector<32x16xf32>
    %c0_10 = arith.constant 0 : index
    %c0_11 = arith.constant 0 : index
    %16 = vector.load %arg6[%c0_10, %c0_11] : memref<1x16xf32, #tpu.memory_space<vmem>>, vector<1x16xf32>
    %17 = vector.broadcast %16 : vector<1x16xf32> to vector<32x16xf32>
    %18 = arith.addf %15, %17 : vector<32x16xf32>
    %cst_12 = arith.constant 0.000000e+00 : f32
    %19 = vector.broadcast %cst_12 : f32 to vector<32x16xf32>
    %20 = arith.maximumf %18, %19 : vector<32x16xf32>
    %c0_13 = arith.constant 0 : index
    %c0_14 = arith.constant 0 : index
    %21 = vector.load %arg7[%c0_13, %c0_14] : memref<32x16xf32, #tpu.memory_space<vmem>>, vector<32x16xf32>
    tpu.vector_store %arg7[%c0_13, %c0_14], %20 {strides = array<i32>} : memref<32x16xf32, #tpu.memory_space<vmem>>, vector<32x16xf32>,
    return
  }
  func.func @transform_0(%arg0: i32) -> (i32, i32) {
    %c0_i32 = arith.constant 0 : i32
    %c0_i32_0 = arith.constant 0 : i32
    return %arg0, %c0_i32 : i32, i32
  }
  func.func @transform_1(%arg0: i32) -> (i32, i32) {
    %c0_i32 = arith.constant 0 : i32
    %c0_i32_0 = arith.constant 0 : i32
    %c0_i32_1 = arith.constant 0 : i32
    return %c0_i32, %c0_i32_0 : i32, i32
  }
  func.func @transform_2(%arg0: i32) -> (i32, i32) {
    %c0_i32 = arith.constant 0 : i32
    %c0_i32_0 = arith.constant 0 : i32
    %c0_i32_1 = arith.constant 0 : i32
    return %c0_i32, %c0_i32_0 : i32, i32
  }
  func.func @transform_3(%arg0: i32) -> (i32, i32) {
    %c0_i32 = arith.constant 0 : i32
    %c0_i32_0 = arith.constant 0 : i32
    %c0_i32_1 = arith.constant 0 : i32
    return %c0_i32, %c0_i32_0 : i32, i32
  }
  func.func @transform_4(%arg0: i32) -> (i32, i32) {
    %c0_i32 = arith.constant 0 : i32
    %c0_i32_0 = arith.constant 0 : i32
    %c0_i32_1 = arith.constant 0 : i32
    return %c0_i32, %c0_i32_0 : i32, i32
  }
  func.func @transform_5(%arg0: i32) -> (i32, i32) {
    %c0_i32 = arith.constant 0 : i32
    %c0_i32_0 = arith.constant 0 : i32
    %c0_i32_1 = arith.constant 0 : i32
    return %c0_i32, %c0_i32_0 : i32, i32
  }
  func.func @transform_6(%arg0: i32) -> (i32, i32) {
    %c0_i32 = arith.constant 0 : i32
    %c0_i32_0 = arith.constant 0 : i32
    return %arg0, %c0_i32 : i32, i32
  }
}

module attributes {stable_mosaic.version = 11 : i64} {
  func.func @_conv3x3_concat_kernel(%arg0: i32, %arg1: memref<1x4x4x24xf32, #tpu.memory_space<vmem>>, %arg2: memref<1x6x6x16xf32, #tpu.memory_space<vmem>>, %arg3: memref<3x3x16x8xf32, #tpu.memory_space<vmem>>, %arg4: memref<1x4x4x32xf32, #tpu.memory_space<vmem>>) attributes {dimension_semantics = [#tpu.dimension_semantics<parallel>], iteration_bounds = array<i64: 2>, scalar_prefetch = 0 : i64, scratch_operands = 0 : i64, tpu.core_type = #tpu.core_type<tc>, window_params = [{transform_indices = @transform_0, window_bounds = array<i64: 1, 4, 4, 24>}, {transform_indices = @transform_1, window_bounds = array<i64: 1, 6, 6, 16>}, {pipeline_mode = #tpu.pipeline_mode<synchronous>, transform_indices = @transform_2, window_bounds = array<i64: 3, 3, 16, 8>}, {transform_indices = @transform_3, window_bounds = array<i64: 1, 4, 4, 32>}]} {
    %c0 = arith.constant 0 : index
    %c0_0 = arith.constant 0 : index
    %c0_1 = arith.constant 0 : index
    %c0_2 = arith.constant 0 : index
    %0 = vector.load %arg3[%c0, %c0_0, %c0_1, %c0_2] : memref<3x3x16x8xf32, #tpu.memory_space<vmem>>, vector<3x3x16x8xf32>
    %1 = arith.truncf %0 : vector<3x3x16x8xf32> to vector<3x3x16x8xbf16>
    %cst = arith.constant 0.000000e+00 : f32
    %2 = vector.broadcast %cst : f32 to vector<16x8xf32>
    %c0_3 = arith.constant 0 : index
    %c0_4 = arith.constant 0 : index
    %c0_5 = arith.constant 0 : index
    %c0_6 = arith.constant 0 : index
    %3 = vector.load %arg2[%c0_3, %c0_4, %c0_5, %c0_6] : memref<1x6x6x16xf32, #tpu.memory_space<vmem>>, vector<1x4x4x16xf32>
    %4 = vector.shape_cast %3 : vector<1x4x4x16xf32> to vector<16x16xf32>
    %5 = arith.truncf %4 : vector<16x16xf32> to vector<16x16xbf16>
    %6 = vector.extract_strided_slice %1 {offsets = [0, 0, 0, 0], sizes = [1, 1, 16, 8], strides = [1, 1, 1, 1]} : vector<3x3x16x8xbf16> to vector<1x1x16x8xbf16>
    %7 = vector.shape_cast %6 : vector<1x1x16x8xbf16> to vector<16x8xbf16>
    %cst_7 = arith.constant dense<0.000000e+00> : vector<16x8xf32>
    %8 = tpu.matmul %5, %7, %cst_7 {dimension_numbers = #tpu.dot_dimension_numbers<[1], [0], [0], [1], [0, 0, 1, 1], [], []>} : vector<16x16xbf16>, vector<16x8xbf16>, vector<16x8xf32> -> vector<16x8xf32>
    %9 = arith.addf %2, %8 : vector<16x8xf32>
    %c0_8 = arith.constant 0 : index
    %c0_9 = arith.constant 0 : index
    %c1 = arith.constant 1 : index
    %c0_10 = arith.constant 0 : index
    %10 = vector.load %arg2[%c0_8, %c0_9, %c1, %c0_10] : memref<1x6x6x16xf32, #tpu.memory_space<vmem>>, vector<1x4x4x16xf32>
    %11 = vector.shape_cast %10 : vector<1x4x4x16xf32> to vector<16x16xf32>
    %12 = arith.truncf %11 : vector<16x16xf32> to vector<16x16xbf16>
    %13 = vector.extract_strided_slice %1 {offsets = [0, 1, 0, 0], sizes = [1, 1, 16, 8], strides = [1, 1, 1, 1]} : vector<3x3x16x8xbf16> to vector<1x1x16x8xbf16>
    %14 = vector.shape_cast %13 : vector<1x1x16x8xbf16> to vector<16x8xbf16>
    %cst_11 = arith.constant dense<0.000000e+00> : vector<16x8xf32>
    %15 = tpu.matmul %12, %14, %cst_11 {dimension_numbers = #tpu.dot_dimension_numbers<[1], [0], [0], [1], [0, 0, 1, 1], [], []>} : vector<16x16xbf16>, vector<16x8xbf16>, vector<16x8xf32> -> vector<16x8xf32>
    %16 = arith.addf %9, %15 : vector<16x8xf32>
    %c0_12 = arith.constant 0 : index
    %c0_13 = arith.constant 0 : index
    %c2 = arith.constant 2 : index
    %c0_14 = arith.constant 0 : index
    %17 = vector.load %arg2[%c0_12, %c0_13, %c2, %c0_14] : memref<1x6x6x16xf32, #tpu.memory_space<vmem>>, vector<1x4x4x16xf32>
    %18 = vector.shape_cast %17 : vector<1x4x4x16xf32> to vector<16x16xf32>
    %19 = arith.truncf %18 : vector<16x16xf32> to vector<16x16xbf16>
    %20 = vector.extract_strided_slice %1 {offsets = [0, 2, 0, 0], sizes = [1, 1, 16, 8], strides = [1, 1, 1, 1]} : vector<3x3x16x8xbf16> to vector<1x1x16x8xbf16>
    %21 = vector.shape_cast %20 : vector<1x1x16x8xbf16> to vector<16x8xbf16>
    %cst_15 = arith.constant dense<0.000000e+00> : vector<16x8xf32>
    %22 = tpu.matmul %19, %21, %cst_15 {dimension_numbers = #tpu.dot_dimension_numbers<[1], [0], [0], [1], [0, 0, 1, 1], [], []>} : vector<16x16xbf16>, vector<16x8xbf16>, vector<16x8xf32> -> vector<16x8xf32>
    %23 = arith.addf %16, %22 : vector<16x8xf32>
    %c0_16 = arith.constant 0 : index
    %c1_17 = arith.constant 1 : index
    %c0_18 = arith.constant 0 : index
    %c0_19 = arith.constant 0 : index
    %24 = vector.load %arg2[%c0_16, %c1_17, %c0_18, %c0_19] : memref<1x6x6x16xf32, #tpu.memory_space<vmem>>, vector<1x4x4x16xf32>
    %25 = vector.shape_cast %24 : vector<1x4x4x16xf32> to vector<16x16xf32>
    %26 = arith.truncf %25 : vector<16x16xf32> to vector<16x16xbf16>
    %27 = vector.extract_strided_slice %1 {offsets = [1, 0, 0, 0], sizes = [1, 1, 16, 8], strides = [1, 1, 1, 1]} : vector<3x3x16x8xbf16> to vector<1x1x16x8xbf16>
    %28 = vector.shape_cast %27 : vector<1x1x16x8xbf16> to vector<16x8xbf16>
    %cst_20 = arith.constant dense<0.000000e+00> : vector<16x8xf32>
    %29 = tpu.matmul %26, %28, %cst_20 {dimension_numbers = #tpu.dot_dimension_numbers<[1], [0], [0], [1], [0, 0, 1, 1], [], []>} : vector<16x16xbf16>, vector<16x8xbf16>, vector<16x8xf32> -> vector<16x8xf32>
    %30 = arith.addf %23, %29 : vector<16x8xf32>
    %c0_21 = arith.constant 0 : index
    %c1_22 = arith.constant 1 : index
    %c1_23 = arith.constant 1 : index
    %c0_24 = arith.constant 0 : index
    %31 = vector.load %arg2[%c0_21, %c1_22, %c1_23, %c0_24] : memref<1x6x6x16xf32, #tpu.memory_space<vmem>>, vector<1x4x4x16xf32>
    %32 = vector.shape_cast %31 : vector<1x4x4x16xf32> to vector<16x16xf32>
    %33 = arith.truncf %32 : vector<16x16xf32> to vector<16x16xbf16>
    %34 = vector.extract_strided_slice %1 {offsets = [1, 1, 0, 0], sizes = [1, 1, 16, 8], strides = [1, 1, 1, 1]} : vector<3x3x16x8xbf16> to vector<1x1x16x8xbf16>
    %35 = vector.shape_cast %34 : vector<1x1x16x8xbf16> to vector<16x8xbf16>
    %cst_25 = arith.constant dense<0.000000e+00> : vector<16x8xf32>
    %36 = tpu.matmul %33, %35, %cst_25 {dimension_numbers = #tpu.dot_dimension_numbers<[1], [0], [0], [1], [0, 0, 1, 1], [], []>} : vector<16x16xbf16>, vector<16x8xbf16>, vector<16x8xf32> -> vector<16x8xf32>
    %37 = arith.addf %30, %36 : vector<16x8xf32>
    %c0_26 = arith.constant 0 : index
    %c1_27 = arith.constant 1 : index
    %c2_28 = arith.constant 2 : index
    %c0_29 = arith.constant 0 : index
    %38 = vector.load %arg2[%c0_26, %c1_27, %c2_28, %c0_29] : memref<1x6x6x16xf32, #tpu.memory_space<vmem>>, vector<1x4x4x16xf32>
    %39 = vector.shape_cast %38 : vector<1x4x4x16xf32> to vector<16x16xf32>
    %40 = arith.truncf %39 : vector<16x16xf32> to vector<16x16xbf16>
    %41 = vector.extract_strided_slice %1 {offsets = [1, 2, 0, 0], sizes = [1, 1, 16, 8], strides = [1, 1, 1, 1]} : vector<3x3x16x8xbf16> to vector<1x1x16x8xbf16>
    %42 = vector.shape_cast %41 : vector<1x1x16x8xbf16> to vector<16x8xbf16>
    %cst_30 = arith.constant dense<0.000000e+00> : vector<16x8xf32>
    %43 = tpu.matmul %40, %42, %cst_30 {dimension_numbers = #tpu.dot_dimension_numbers<[1], [0], [0], [1], [0, 0, 1, 1], [], []>} : vector<16x16xbf16>, vector<16x8xbf16>, vector<16x8xf32> -> vector<16x8xf32>
    %44 = arith.addf %37, %43 : vector<16x8xf32>
    %c0_31 = arith.constant 0 : index
    %c2_32 = arith.constant 2 : index
    %c0_33 = arith.constant 0 : index
    %c0_34 = arith.constant 0 : index
    %45 = vector.load %arg2[%c0_31, %c2_32, %c0_33, %c0_34] : memref<1x6x6x16xf32, #tpu.memory_space<vmem>>, vector<1x4x4x16xf32>
    %46 = vector.shape_cast %45 : vector<1x4x4x16xf32> to vector<16x16xf32>
    %47 = arith.truncf %46 : vector<16x16xf32> to vector<16x16xbf16>
    %48 = vector.extract_strided_slice %1 {offsets = [2, 0, 0, 0], sizes = [1, 1, 16, 8], strides = [1, 1, 1, 1]} : vector<3x3x16x8xbf16> to vector<1x1x16x8xbf16>
    %49 = vector.shape_cast %48 : vector<1x1x16x8xbf16> to vector<16x8xbf16>
    %cst_35 = arith.constant dense<0.000000e+00> : vector<16x8xf32>
    %50 = tpu.matmul %47, %49, %cst_35 {dimension_numbers = #tpu.dot_dimension_numbers<[1], [0], [0], [1], [0, 0, 1, 1], [], []>} : vector<16x16xbf16>, vector<16x8xbf16>, vector<16x8xf32> -> vector<16x8xf32>
    %51 = arith.addf %44, %50 : vector<16x8xf32>
    %c0_36 = arith.constant 0 : index
    %c2_37 = arith.constant 2 : index
    %c1_38 = arith.constant 1 : index
    %c0_39 = arith.constant 0 : index
    %52 = vector.load %arg2[%c0_36, %c2_37, %c1_38, %c0_39] : memref<1x6x6x16xf32, #tpu.memory_space<vmem>>, vector<1x4x4x16xf32>
    %53 = vector.shape_cast %52 : vector<1x4x4x16xf32> to vector<16x16xf32>
    %54 = arith.truncf %53 : vector<16x16xf32> to vector<16x16xbf16>
    %55 = vector.extract_strided_slice %1 {offsets = [2, 1, 0, 0], sizes = [1, 1, 16, 8], strides = [1, 1, 1, 1]} : vector<3x3x16x8xbf16> to vector<1x1x16x8xbf16>
    %56 = vector.shape_cast %55 : vector<1x1x16x8xbf16> to vector<16x8xbf16>
    %cst_40 = arith.constant dense<0.000000e+00> : vector<16x8xf32>
    %57 = tpu.matmul %54, %56, %cst_40 {dimension_numbers = #tpu.dot_dimension_numbers<[1], [0], [0], [1], [0, 0, 1, 1], [], []>} : vector<16x16xbf16>, vector<16x8xbf16>, vector<16x8xf32> -> vector<16x8xf32>
    %58 = arith.addf %51, %57 : vector<16x8xf32>
    %c0_41 = arith.constant 0 : index
    %c2_42 = arith.constant 2 : index
    %c2_43 = arith.constant 2 : index
    %c0_44 = arith.constant 0 : index
    %59 = vector.load %arg2[%c0_41, %c2_42, %c2_43, %c0_44] : memref<1x6x6x16xf32, #tpu.memory_space<vmem>>, vector<1x4x4x16xf32>
    %60 = vector.shape_cast %59 : vector<1x4x4x16xf32> to vector<16x16xf32>
    %61 = arith.truncf %60 : vector<16x16xf32> to vector<16x16xbf16>
    %62 = vector.extract_strided_slice %1 {offsets = [2, 2, 0, 0], sizes = [1, 1, 16, 8], strides = [1, 1, 1, 1]} : vector<3x3x16x8xbf16> to vector<1x1x16x8xbf16>
    %63 = vector.shape_cast %62 : vector<1x1x16x8xbf16> to vector<16x8xbf16>
    %cst_45 = arith.constant dense<0.000000e+00> : vector<16x8xf32>
    %64 = tpu.matmul %61, %63, %cst_45 {dimension_numbers = #tpu.dot_dimension_numbers<[1], [0], [0], [1], [0, 0, 1, 1], [], []>} : vector<16x16xbf16>, vector<16x8xbf16>, vector<16x8xf32> -> vector<16x8xf32>
    %65 = arith.addf %58, %64 : vector<16x8xf32>
    %66 = vector.shape_cast %65 : vector<16x8xf32> to vector<1x4x4x8xf32>
    %c0_46 = arith.constant 0 : index
    %c0_47 = arith.constant 0 : index
    %c0_48 = arith.constant 0 : index
    %c0_49 = arith.constant 0 : index
    %67 = vector.load %arg1[%c0_46, %c0_47, %c0_48, %c0_49] : memref<1x4x4x24xf32, #tpu.memory_space<vmem>>, vector<1x4x4x24xf32>
    %68 = tpu.concatenate %67, %66 in 3 : vector<1x4x4x24xf32>, vector<1x4x4x8xf32> -> vector<1x4x4x32xf32>
    %c0_50 = arith.constant 0 : index
    %c0_51 = arith.constant 0 : index
    %c0_52 = arith.constant 0 : index
    %c0_53 = arith.constant 0 : index
    %69 = vector.load %arg4[%c0_50, %c0_51, %c0_52, %c0_53] : memref<1x4x4x32xf32, #tpu.memory_space<vmem>>, vector<1x4x4x32xf32>
    tpu.vector_store %arg4[%c0_50, %c0_51, %c0_52, %c0_53], %68 {strides = array<i32>} : memref<1x4x4x32xf32, #tpu.memory_space<vmem>>, vector<1x4x4x32xf32>,
    return
  }
  func.func @transform_0(%arg0: i32) -> (i32, i32, i32, i32) {
    %c0_i32 = arith.constant 0 : i32
    %c0_i32_0 = arith.constant 0 : i32
    %c0_i32_1 = arith.constant 0 : i32
    %c0_i32_2 = arith.constant 0 : i32
    return %arg0, %c0_i32, %c0_i32_0, %c0_i32_1 : i32, i32, i32, i32
  }
  func.func @transform_1(%arg0: i32) -> (i32, i32, i32, i32) {
    %c0_i32 = arith.constant 0 : i32
    %c0_i32_0 = arith.constant 0 : i32
    %c0_i32_1 = arith.constant 0 : i32
    %c0_i32_2 = arith.constant 0 : i32
    return %arg0, %c0_i32, %c0_i32_0, %c0_i32_1 : i32, i32, i32, i32
  }
  func.func @transform_2(%arg0: i32) -> (i32, i32, i32, i32) {
    %c0_i32 = arith.constant 0 : i32
    %c0_i32_0 = arith.constant 0 : i32
    %c0_i32_1 = arith.constant 0 : i32
    %c0_i32_2 = arith.constant 0 : i32
    %c0_i32_3 = arith.constant 0 : i32
    return %c0_i32, %c0_i32_0, %c0_i32_1, %c0_i32_2 : i32, i32, i32, i32
  }
  func.func @transform_3(%arg0: i32) -> (i32, i32, i32, i32) {
    %c0_i32 = arith.constant 0 : i32
    %c0_i32_0 = arith.constant 0 : i32
    %c0_i32_1 = arith.constant 0 : i32
    %c0_i32_2 = arith.constant 0 : i32
    return %arg0, %c0_i32, %c0_i32_0, %c0_i32_1 : i32, i32, i32, i32
  }
}

module attributes {stable_mosaic.version = 11 : i64} {
  func.func @_bn_relu_gap_kernel(%arg0: i32, %arg1: memref<2x16x32xf32, #tpu.memory_space<vmem>>, %arg2: memref<1x1x32xf32, #tpu.memory_space<vmem>>, %arg3: memref<1x1x32xf32, #tpu.memory_space<vmem>>, %arg4: memref<2x32xf32, #tpu.memory_space<vmem>>) attributes {dimension_semantics = [#tpu.dimension_semantics<arbitrary>], iteration_bounds = array<i64: 1>, scalar_prefetch = 0 : i64, scratch_operands = 0 : i64, tpu.core_type = #tpu.core_type<tc>, window_params = [{pipeline_mode = #tpu.pipeline_mode<synchronous>, transform_indices = @transform_0, window_bounds = array<i64: 2, 16, 32>}, {pipeline_mode = #tpu.pipeline_mode<synchronous>, transform_indices = @transform_1, window_bounds = array<i64: 1, 1, 32>}, {pipeline_mode = #tpu.pipeline_mode<synchronous>, transform_indices = @transform_2, window_bounds = array<i64: 1, 1, 32>}, {pipeline_mode = #tpu.pipeline_mode<synchronous>, transform_indices = @transform_3, window_bounds = array<i64: 2, 32>}]} {
    %c0 = arith.constant 0 : index
    %c0_0 = arith.constant 0 : index
    %c0_1 = arith.constant 0 : index
    %0 = vector.load %arg1[%c0, %c0_0, %c0_1] : memref<2x16x32xf32, #tpu.memory_space<vmem>>, vector<2x16x32xf32>
    %c0_2 = arith.constant 0 : index
    %c0_3 = arith.constant 0 : index
    %c0_4 = arith.constant 0 : index
    %1 = vector.load %arg2[%c0_2, %c0_3, %c0_4] : memref<1x1x32xf32, #tpu.memory_space<vmem>>, vector<1x1x32xf32>
    %2 = vector.broadcast %1 : vector<1x1x32xf32> to vector<2x16x32xf32>
    %3 = arith.mulf %0, %2 : vector<2x16x32xf32>
    %c0_5 = arith.constant 0 : index
    %c0_6 = arith.constant 0 : index
    %c0_7 = arith.constant 0 : index
    %4 = vector.load %arg3[%c0_5, %c0_6, %c0_7] : memref<1x1x32xf32, #tpu.memory_space<vmem>>, vector<1x1x32xf32>
    %5 = vector.broadcast %4 : vector<1x1x32xf32> to vector<2x16x32xf32>
    %6 = arith.addf %3, %5 : vector<2x16x32xf32>
    %cst = arith.constant 0.000000e+00 : f32
    %7 = vector.broadcast %cst : f32 to vector<2x16x32xf32>
    %8 = arith.maximumf %6, %7 : vector<2x16x32xf32>
    %cst_8 = arith.constant dense<0.000000e+00> : vector<2x32xf32>
    %9 = vector.multi_reduction <add>, %8, %cst_8 [1] : vector<2x16x32xf32> to vector<2x32xf32>
    %cst_9 = arith.constant 6.250000e-02 : f32
    %10 = vector.broadcast %cst_9 : f32 to vector<2x32xf32>
    %11 = arith.mulf %9, %10 : vector<2x32xf32>
    %c0_10 = arith.constant 0 : index
    %c0_11 = arith.constant 0 : index
    %12 = vector.load %arg4[%c0_10, %c0_11] : memref<2x32xf32, #tpu.memory_space<vmem>>, vector<2x32xf32>
    tpu.vector_store %arg4[%c0_10, %c0_11], %11 {strides = array<i32>} : memref<2x32xf32, #tpu.memory_space<vmem>>, vector<2x32xf32>,
    return
  }
  func.func @transform_0(%arg0: i32) -> (i32, i32, i32) {
    %c0_i32 = arith.constant 0 : i32
    %c0_i32_0 = arith.constant 0 : i32
    %c0_i32_1 = arith.constant 0 : i32
    %c0_i32_2 = arith.constant 0 : i32
    return %c0_i32, %c0_i32_0, %c0_i32_1 : i32, i32, i32
  }
  func.func @transform_1(%arg0: i32) -> (i32, i32, i32) {
    %c0_i32 = arith.constant 0 : i32
    %c0_i32_0 = arith.constant 0 : i32
    %c0_i32_1 = arith.constant 0 : i32
    %c0_i32_2 = arith.constant 0 : i32
    return %c0_i32, %c0_i32_0, %c0_i32_1 : i32, i32, i32
  }
  func.func @transform_2(%arg0: i32) -> (i32, i32, i32) {
    %c0_i32 = arith.constant 0 : i32
    %c0_i32_0 = arith.constant 0 : i32
    %c0_i32_1 = arith.constant 0 : i32
    %c0_i32_2 = arith.constant 0 : i32
    return %c0_i32, %c0_i32_0, %c0_i32_1 : i32, i32, i32
  }
  func.func @transform_3(%arg0: i32) -> (i32, i32) {
    %c0_i32 = arith.constant 0 : i32
    %c0_i32_0 = arith.constant 0 : i32
    %c0_i32_1 = arith.constant 0 : i32
    return %c0_i32, %c0_i32_0 : i32, i32
  }
}

</mosaic_0001>

<bundles_post_ra>
// kernel: encoder_forward.12
= control target key start
LH: loop header
LB: loop body
LE: loop exit
PB: predicated region body
PF: predicated region fallthrough
CT: control target
= control target key end

     0   :  { %vm113_vm0 = vcmask 130048   ;;  %s603_s1 = inlined_call_operand.vmem [shape: f32[16,16], index: 1, kind: input, shape index: {}]   ;;  %s604_s0 = inlined_call_operand.vmem [shape: f32[128,16], index: 0, kind: input, shape index: {}]   ;;  %s605_s2 = inlined_call_operand.vmem [shape: f32[1,16], index: 2, kind: input, shape index: {}]   ;;  %s606_s3 = inlined_call_operand.vmem [shape: f32[1,16], index: 3, kind: input, shape index: {}]   ;;  %s607_s4 = inlined_call_operand.vmem [shape: f32[1,16], index: 4, kind: input, shape index: {}]   ;;  %s608_s5 = inlined_call_operand.vmem [shape: f32[1,16], index: 5, kind: input, shape index: {}]   ;;  %s609_s6 = inlined_call_operand.vmem [shape: f32[128,16], index: 6, kind: output, shape index: {}]  }
   0x1   :  { %v110_v0 = vld [vmem:[%s603_s1] sm:$0xff]  ;;  %v111_v1 = vld [vmem:[%s603_s1 + $0x8] sm:$0xff]  ;;  %v26_v11 = vld [vmem:[%s604_s0 + $0x10] sm:$0xff] }
   0x2   :  { %v24_v2 = vld [vmem:[%s604_s0] sm:$0xff]  ;;  %v112_v3 = vpack.c.bf16 %v111_v1, %v110_v0  ;;  %v25_v4 = vld [vmem:[%s604_s0 + $0x8] sm:$0xff]  ;;  %v27_v14 = vld [vmem:[%s604_s0 + $0x18] sm:$0xff] }
   0x3   :  { %v408_v5 = vld [vmem:[%s605_s2] ss:$0 sm:$0xff]  ;;  %v33_v10 = vld [vmem:[%s604_s0 + $0x48] sm:$0xff]  ;;  %v34_v16 = vld [vmem:[%s604_s0 + $0x50] sm:$0xff] }
   0x4   :  { %v413_v6 = vld [vmem:[%s606_s3] ss:$0 sm:$0xff]  ;;  %v47_v7 = vmul.f32 %v408_v5, %v24_v2  ;;  %v48_v8 = vmul.f32 %v408_v5, %v25_v4  ;;  %338 = vmatprep.subr.bf16.mxu0 %v112_v3  ;;  %356 = vmatprep.subr.bf16.mxu1 %v112_v3  ;;  %v56_v13 = vmul.f32 %v408_v5, %v33_v10  ;;  %v35_v17 = vld [vmem:[%s604_s0 + $0x58] sm:$0xff]  ;;  %v29_v30 = vld [vmem:[%s604_s0 + $0x28] sm:$0xff] }
   0x5   :  { %v32_v9 = vld [vmem:[%s604_s0 + $0x40] sm:$0xff]  ;;  %v49_v15 = vmul.f32 %v408_v5, %v26_v11  ;;  %339 = vmatpush3.bf16.msra.mxu0 %v112_v3  ;;  %357 = vmatpush3.bf16.msra.mxu1 %v112_v3  ;;  %v50_v20 = vmul.f32 %v408_v5, %v27_v14  ;;  %v57_v24 = vmul.f32 %v408_v5, %v34_v16  ;;  %v37_v36 = vld [vmem:[%s604_s0 + $0x68] sm:$0xff]  ;;  %v30_v41 = vld [vmem:[%s604_s0 + $0x30] sm:$0xff] }
   0x6   :  { %v55_v12 = vmul.f32 %v408_v5, %v32_v9  ;;  %v70_v18 = vadd.f32 %v413_v6, %v47_v7  ;;  %v71_v19 = vadd.f32 %v413_v6, %v48_v8  ;;  %v79_v22 = vadd.f32 %v413_v6, %v56_v13  ;;  %v28_v25 = vld [vmem:[%s604_s0 + $0x20] sm:$0xff]  ;;  %v31_v42 = vld [vmem:[%s604_s0 + $0x38] sm:$0xff]  ;;  %v38_v47 = vld [vmem:[%s604_s0 + $0x70] sm:$0xff] }
   0x7   :  { %v72_v23 = vadd.f32 %v413_v6, %v49_v15  ;;  %v73_v28 = vadd.f32 %v413_v6, %v50_v20  ;;  %v58_v29 = vmul.f32 %v408_v5, %v35_v17  ;;  %v36_v31 = vld [vmem:[%s604_s0 + $0x60] sm:$0xff]  ;;  %v80_v35 = vadd.f32 %v413_v6, %v57_v24  ;;  %v39_v56 = vld [vmem:[%s604_s0 + $0x78] sm:$0xff] }
   0x8   :  { %v78_v21 = vadd.f32 %v413_v6, %v55_v12  ;;  %v86_v26 = vmax.f32 %v70_v18, 0.0  ;;  %v87_v27 = vmax.f32 %v71_v19, 0.0  ;;  %v95_v33 = vmax.f32 %v79_v22, 0.0 }
   0x9   :  { %v88_v34 = vmax.f32 %v72_v23, 0.0  ;;  %v89_v38 = vmax.f32 %v73_v28, 0.0  ;;  %v81_v39 = vadd.f32 %v413_v6, %v58_v29  ;;  %v51_v40 = vmul.f32 %v408_v5, %v28_v25 }
   0xa   :  { %v94_v32 = vmax.f32 %v78_v21, 0.0  ;;  %v102_v37 = vpack.c.bf16 %v87_v27, %v86_v26  ;;  %v96_v44 = vmax.f32 %v80_v35, 0.0  ;;  %v52_v45 = vmul.f32 %v408_v5, %v29_v30 }
   0xb   :  { %v59_v46 = vmul.f32 %v408_v5, %v36_v31  ;;  %v103_v48 = vpack.c.bf16 %v89_v38, %v88_v34  ;;  %v97_v49 = vmax.f32 %v81_v39, 0.0  ;;  %v74_v50 = vadd.f32 %v413_v6, %v51_v40 }
   0xc   :  { %v106_v43 = vpack.c.bf16 %v95_v33, %v94_v32  ;;  %340 = vmatprep.mubr.msk.bf16.mxu0 %vm113_vm0, %v102_v37  ;;  %v60_v51 = vmul.f32 %v408_v5, %v37_v36  ;;  %v75_v52 = vadd.f32 %v413_v6, %v52_v45  ;;  %v53_v54 = vmul.f32 %v408_v5, %v30_v41 }
   0xd   :  { %v82_v53 = vadd.f32 %v413_v6, %v59_v46  ;;  %v54_v55 = vmul.f32 %v408_v5, %v31_v42  ;;  %341 = vmatmul.mubr.msk.bf16.vlgmr.msra.gmra.mxu0 %vm113_vm0, %v103_v48  ;;  %v107_v57 = vpack.c.bf16 %v97_v49, %v96_v44  ;;  %v90_v58 = vmax.f32 %v74_v50, 0.0 }
   0xe   :  { %348 = vmatprep.mubr.msk.bf16.mxu1 %vm113_vm0, %v106_v43  ;;  %v83_v59 = vadd.f32 %v413_v6, %v60_v51  ;;  %v61_v60 = vmul.f32 %v408_v5, %v38_v47  ;;  %v91_v61 = vmax.f32 %v75_v52, 0.0  ;;  %v76_v63 = vadd.f32 %v413_v6, %v53_v54 }
   0xf   :  { %v98_v62 = vmax.f32 %v82_v53, 0.0  ;;  %v77_v0 = vadd.f32 %v413_v6, %v54_v55  ;;  %349 = vmatmul.mubr.msk.bf16.vlgmr.msra.gmra.mxu1 %vm113_vm0, %v107_v57  ;;  %v62_v2 = vmul.f32 %v408_v5, %v39_v56  ;;  %v500_v5 = vld [vmem:[%s607_s4] ss:$0 sm:$0xff] }
  0x10   :  { %v99_v1 = vmax.f32 %v83_v59, 0.0  ;;  %v84_v3 = vadd.f32 %v413_v6, %v61_v60  ;;  %v104_v4 = vpack.c.bf16 %v91_v61, %v90_v58  ;;  %v92_v7 = vmax.f32 %v76_v63, 0.0 }
  0x11   :  { %v93_v8 = vmax.f32 %v77_v0, 0.0  ;;  %v85_v10 = vadd.f32 %v413_v6, %v62_v2  ;;  %v505_v6 = vld [vmem:[%s608_s5] ss:$0 sm:$0xff] }
  0x12   :  { %v108_v9 = vpack.c.bf16 %v99_v1, %v98_v62  ;;  %v100_v11 = vmax.f32 %v84_v3, 0.0  ;;  %344 = vmatprep.mubr.msk.bf16.mxu0 %vm113_vm0, %v104_v4 }
  0x13   :  { %v105_v12 = vpack.c.bf16 %v93_v8, %v92_v7  ;;  %v101_v13 = vmax.f32 %v85_v10, 0.0 }
  0x14   :  { %352 = vmatprep.mubr.msk.bf16.mxu1 %vm113_vm0, %v108_v9 }
  0x15   :  { %345 = vmatmul.mubr.msk.bf16.gmra.mxu0 %vm113_vm0, %v105_v12  ;;  %v109_v14 = vpack.c.bf16 %v101_v13, %v100_v11 }
  0x17   :  { %353 = vmatmul.mubr.msk.bf16.gmra.mxu1 %vm113_vm0, %v109_v14 }
  0xcd   :  { %v342_v15 = vpop.f32.mrf.mxu0 }
  0xce   :  { %v244_v16 = vmul.f32 %v342_v15, %v500_v5 }
  0xcf   :  { %v350_v17 = vpop.f32.mrf.mxu1  ;;  %v172_v18 = vpop.f32.mrf.mxu0 }
  0xd0   :  { %v267_v19 = vadd.f32 %v505_v6, %v244_v16  ;;  %v252_v20 = vmul.f32 %v350_v17, %v500_v5  ;;  %v242_v21 = vmul.f32 %v500_v5, %v172_v18 }
  0xd1   :  { %v204_v22 = vpop.f32.mrf.mxu1  ;;  %v343_v23 = vpop.f32.mrf.mxu0 }
  0xd2   :  { %v283_v24 = vmax.f32 %v267_v19, 0.0  ;;  %v275_v25 = vadd.f32 %v505_v6, %v252_v20  ;;  %v265_v26 = vadd.f32 %v505_v6, %v242_v21  ;;  %v250_v27 = vmul.f32 %v500_v5, %v204_v22 }
  0xd3   :  { %v245_v28 = vmul.f32 %v343_v23, %v500_v5  ;;  %v351_v29 = vpop.f32.mrf.mxu1  ;;  %v175_v30 = vpop.f32.mrf.mxu0 }
  0xd4   :  { %299 = vst.msk [vmem:[%s609_s6 + $0x10] sm:$0xff] %vm113_vm0, %v283_v24  ;;  %v291_v31 = vmax.f32 %v275_v25, 0.0  ;;  %v281_v32 = vmax.f32 %v265_v26, 0.0  ;;  %v273_v33 = vadd.f32 %v505_v6, %v250_v27  ;;  %v253_v34 = vmul.f32 %v351_v29, %v500_v5 }
  0xd5   :  { %v268_v35 = vadd.f32 %v505_v6, %v245_v28  ;;  %v243_v36 = vmul.f32 %v500_v5, %v175_v30  ;;  %v207_v37 = vpop.f32.mrf.mxu1  ;;  %v346_v38 = vpop.f32.mrf.mxu0 }
  0xd6   :  { %307 = vst.msk [vmem:[%s609_s6 + $0x50] sm:$0xff] %vm113_vm0, %v291_v31  ;;  %297 = vst.msk [vmem:[%s609_s6] sm:$0xff] %vm113_vm0, %v281_v32  ;;  %v289_v39 = vmax.f32 %v273_v33, 0.0  ;;  %v276_v40 = vadd.f32 %v505_v6, %v253_v34  ;;  %v251_v41 = vmul.f32 %v500_v5, %v207_v37  ;;  %v248_v42 = vmul.f32 %v346_v38, %v500_v5 }
  0xd7   :  { %v284_v43 = vmax.f32 %v268_v35, 0.0  ;;  %v266_v44 = vadd.f32 %v505_v6, %v243_v36  ;;  %v354_v45 = vpop.f32.mrf.mxu1  ;;  %v188_v46 = vpop.f32.mrf.mxu0 }
  0xd8   :  { %305 = vst.msk [vmem:[%s609_s6 + $0x40] sm:$0xff] %vm113_vm0, %v289_v39  ;;  %v292_v47 = vmax.f32 %v276_v40, 0.0  ;;  %v274_v48 = vadd.f32 %v505_v6, %v251_v41  ;;  %v271_v49 = vadd.f32 %v505_v6, %v248_v42  ;;  %v256_v50 = vmul.f32 %v354_v45, %v500_v5 }
  0xd9   :  { %300 = vst.msk [vmem:[%s609_s6 + $0x18] sm:$0xff] %vm113_vm0, %v284_v43  ;;  %v282_v51 = vmax.f32 %v266_v44, 0.0  ;;  %v246_v52 = vmul.f32 %v500_v5, %v188_v46  ;;  %v220_v53 = vpop.f32.mrf.mxu1  ;;  %v347_v54 = vpop.f32.mrf.mxu0 }
  0xda   :  { %308 = vst.msk [vmem:[%s609_s6 + $0x58] sm:$0xff] %vm113_vm0, %v292_v47  ;;  %v290_v55 = vmax.f32 %v274_v48, 0.0  ;;  %v287_v56 = vmax.f32 %v271_v49, 0.0  ;;  %v279_v57 = vadd.f32 %v505_v6, %v256_v50  ;;  %v254_v58 = vmul.f32 %v500_v5, %v220_v53 }
  0xdb   :  { %298 = vst.msk [vmem:[%s609_s6 + $0x8] sm:$0xff] %vm113_vm0, %v282_v51  ;;  %v269_v59 = vadd.f32 %v505_v6, %v246_v52  ;;  %v249_v60 = vmul.f32 %v347_v54, %v500_v5  ;;  %v355_v61 = vpop.f32.mrf.mxu1  ;;  %v191_v62 = vpop.f32.mrf.mxu0 }
  0xdc   :  { %306 = vst.msk [vmem:[%s609_s6 + $0x48] sm:$0xff] %vm113_vm0, %v290_v55  ;;  %303 = vst.msk [vmem:[%s609_s6 + $0x30] sm:$0xff] %vm113_vm0, %v287_v56  ;;  %v295_v63 = vmax.f32 %v279_v57, 0.0  ;;  %v277_v0 = vadd.f32 %v505_v6, %v254_v58  ;;  %v257_v1 = vmul.f32 %v355_v61, %v500_v5  ;;  %v247_v2 = vmul.f32 %v500_v5, %v191_v62 }
  0xdd   :  { %v285_v3 = vmax.f32 %v269_v59, 0.0  ;;  %v272_v4 = vadd.f32 %v505_v6, %v249_v60  ;;  %v223_v7 = vpop.f32.mrf.mxu1 }
  0xde   :  { %311 = vst.msk [vmem:[%s609_s6 + $0x70] sm:$0xff] %vm113_vm0, %v295_v63  ;;  %v293_v8 = vmax.f32 %v277_v0, 0.0  ;;  %v280_v9 = vadd.f32 %v505_v6, %v257_v1  ;;  %v270_v10 = vadd.f32 %v505_v6, %v247_v2  ;;  %v255_v11 = vmul.f32 %v500_v5, %v223_v7 }
  0xdf   :  { %301 = vst.msk [vmem:[%s609_s6 + $0x20] sm:$0xff] %vm113_vm0, %v285_v3  ;;  %v288_v12 = vmax.f32 %v272_v4, 0.0 }
  0xe0   :  { %309 = vst.msk [vmem:[%s609_s6 + $0x60] sm:$0xff] %vm113_vm0, %v293_v8  ;;  %v296_v13 = vmax.f32 %v280_v9, 0.0  ;;  %v286_v14 = vmax.f32 %v270_v10, 0.0  ;;  %v278_v15 = vadd.f32 %v505_v6, %v255_v11 }
  0xe1   :  { %304 = vst.msk [vmem:[%s609_s6 + $0x38] sm:$0xff] %vm113_vm0, %v288_v12 }
  0xe2   :  { %312 = vst.msk [vmem:[%s609_s6 + $0x78] sm:$0xff] %vm113_vm0, %v296_v13  ;;  %302 = vst.msk [vmem:[%s609_s6 + $0x28] sm:$0xff] %vm113_vm0, %v286_v14  ;;  %v294_v5 = vmax.f32 %v278_v15, 0.0 }
  0xe4   :  { %310 = vst.msk [vmem:[%s609_s6 + $0x68] sm:$0xff] %vm113_vm0, %v294_v5 }

// kernel: encoder_forward.11
= control target key start
LH: loop header
LB: loop body
LE: loop exit
PB: predicated region body
PF: predicated region fallthrough
CT: control target
= control target key end

     0   :  { %s842_s15 = smov 0   ;;  %s1162_s0 = inlined_call_operand.vmem [shape: f32[512,147], index: 0, kind: input, shape index: {}]   ;;  %s1163_s1 = inlined_call_operand.vmem [shape: f32[147,16], index: 1, kind: input, shape index: {}]   ;;  %s1164_s2 = inlined_call_operand.vmem [shape: f32[1,16], index: 2, kind: input, shape index: {}]   ;;  %s1165_s3 = inlined_call_operand.vmem [shape: f32[1,16], index: 3, kind: input, shape index: {}]   ;;  %s1166_s4 = inlined_call_operand.vmem [shape: f32[512,16], index: 4, kind: output, shape index: {}]  }
   0x1 LB: > { %s746_s16 = sadd.s32 4294967295, %s813_s15   ;;  %p750_p0 = scmp.ge.s32.totalorder %s813_s15, 1  ;;  %s813_s15 = sphi %s842_s15, %s14_s15  }
   0x2   : > { %p164_p1 = scmp.lt.s32.totalorder %s813_s15, 3 }
   0x4   : > { %p165_p2 = pnand %p750_p0, %p164_p1 }
   0x5   : > { %s751_s25 = sshll.u32 (!%p165_p2), %s746_s16, 5 }
   0x6   : > { %168 = sbr.rel (%p165_p2) target bundleno = 313 (0x139), region = 36  ;;  %p192_p3 = scmp.lt.s32.totalorder (!%p165_p2), %s751_s25, 63 }
   0xb   : > { %v315_v0 = vld [vmem:[%s1163_s1 + $0x70] sm:$0xff]  ;;  %v316_v1 = vld [vmem:[%s1163_s1 + $0x78] sm:$0xff]  ;;  %v313_v2 = vld [vmem:[%s1163_s1 + $0x60] sm:$0xff]  ;;  %v815_v3 = vmov 0   ;;  %s1168_s25 = smov (!%p192_p3, %s751_s25), 63  ;;  %vm330_vm0 = vcmask 154624  }
   0xc   : > { %386 = vmatprep.subr.bf16.mxu0 %v815_v3  ;;  %777 = vmatprep.subr.bf16.mxu1 %v815_v3  ;;  %v327_v4 = vpack.c.bf16 %v316_v1, %v315_v0  ;;  %v314_v5 = vld [vmem:[%s1163_s1 + $0x68] sm:$0xff]  ;;  %v311_v7 = vld [vmem:[%s1163_s1 + $0x50] sm:$0xff]  ;;  %v312_v8 = vld [vmem:[%s1163_s1 + $0x58] sm:$0xff]  ;;  %s776_s30 = sshll.u32 %s1168_s25, 4  ;;  %vm379_vm1 = vcmask 1040384   ;;  %vm380_vm2 = vcmask 1041408  }
   0xd   : > { %v326_v6 = vpack.c.bf16 %v314_v5, %v313_v2  ;;  %v325_v9 = vpack.c.bf16 %v312_v8, %v311_v7  ;;  %v309_v10 = vld [vmem:[%s1163_s1 + $0x40] sm:$0xff]  ;;  %v310_v11 = vld [vmem:[%s1163_s1 + $0x48] sm:$0xff]  ;;  %s884_s11 = scalar_lea.vmem %s1162_s0, %s776_s30  ;;  %v307_v19 = vld [vmem:[%s1163_s1 + $0x30] sm:$0xff]  ;;  %v816_v31 = vmov 65535   ;;  %s755_s16 = sshll.u32 %s1168_s25, 3  ;;  %vm657_vm3 = vcmask 130048  }
   0xe   : > { %387 = vmatpush1.bf16.msra.mxu0 %v327_v4  ;;  %787 = vmatpush1.bf16.msra.mxu1 %v327_v4  ;;  %v206_v12 = vld [vmem:[%s884_s11 + $0x8] sm:$0xff]  ;;  %v208_v13 = vld [vmem:[%s884_s11 + $0x18] sm:$0xff]  ;;  %v324_v18 = vpack.c.bf16 %v310_v11, %v309_v10  ;;  %v305_v22 = vld [vmem:[%s1163_s1 + $0x20] sm:$0xff]  ;;  %v381_v32 = vsel %vm379_vm1, 4294967295, %v816_v31  ;;  %s1033_s18 = scalar_lea.vmem %s1166_s4, %s755_s16 }
   0xf   : > { %388 = vmatprep.subr.bf16.mxu0 %v815_v3  ;;  %778 = vmatprep.subr.bf16.mxu1 %v815_v3  ;;  %v238_v14 = vld [vmem:[%s884_s11 + $0x108] sm:$0xff]  ;;  %v270_v15 = vpack.c.bf16 %v208_v13, %v206_v12  ;;  %v240_v16 = vld [vmem:[%s884_s11 + $0x118] sm:$0xff]  ;;  %v303_v25 = vld [vmem:[%s1163_s1 + $0x10] sm:$0xff]  ;;  %v382_v35 = vsel %vm380_vm2, %v381_v32, 0 }
  0x10   : > { %v286_v17 = vpack.c.bf16 %v240_v16, %v238_v14  ;;  %v308_v20 = vld [vmem:[%s1163_s1 + $0x38] sm:$0xff]  ;;  %v306_v23 = vld [vmem:[%s1163_s1 + $0x28] sm:$0xff]  ;;  %v301_v28 = vld [vmem:[%s1163_s1] sm:$0xff] }
  0x11   : > { %756 = vmatprep.mubr.msk.bf16.mxu0 %vm330_vm0, %v270_v15  ;;  %v323_v21 = vpack.c.bf16 %v308_v20, %v307_v19  ;;  %v322_v24 = vpack.c.bf16 %v306_v23, %v305_v22  ;;  %v304_v26 = vld [vmem:[%s1163_s1 + $0x18] sm:$0xff]  ;;  %v302_v29 = vld [vmem:[%s1163_s1 + $0x8] sm:$0xff]  ;;  %v319_v30 = vld [vmem:[%s1163_s1 + $0x90] sm:$0x7] }
  0x12   : > { %389 = vmatpush1.bf16.msra.mxu0 %v326_v6  ;;  %788 = vmatpush1.bf16.msra.mxu1 %v326_v6  ;;  %v321_v27 = vpack.c.bf16 %v304_v26, %v303_v25  ;;  %v320_v33 = vpack.c.bf16 %v302_v29, %v301_v28  ;;  %v329_v34 = vpack.c.bf16 %v319_v30, %v319_v30  ;;  %v317_v37 = vld [vmem:[%s1163_s1 + $0x80] sm:$0xff]  ;;  %v318_v38 = vld [vmem:[%s1163_s1 + $0x88] sm:$0xff]  ;;  %v207_v40 = vld [vmem:[%s884_s11 + $0x10] sm:$0xff] }
  0x13   : > { %390 = vmatprep.subr.bf16.mxu0 %v815_v3  ;;  %779 = vmatprep.subr.bf16.mxu1 %v815_v3  ;;  %v205_v39 = vld [vmem:[%s884_s11] sm:$0xff]  ;;  %v328_v41 = vpack.c.bf16 %v318_v38, %v317_v37  ;;  %v239_v43 = vld [vmem:[%s884_s11 + $0x110] sm:$0xff]  ;;  %v210_v44 = vld [vmem:[%s884_s11 + $0x28] sm:$0xff] }
  0x14   : > { %764 = vmatprep.mubr.msk.bf16.mxu1 %vm330_vm0, %v286_v17  ;;  %v384_v36 = vand.u32 %v382_v35, %v329_v34  ;;  %v237_v42 = vld [vmem:[%s884_s11 + $0x100] sm:$0xff]  ;;  %v212_v45 = vld [vmem:[%s884_s11 + $0x38] sm:$0xff]  ;;  %v242_v46 = vld [vmem:[%s884_s11 + $0x128] sm:$0xff]  ;;  %v269_v48 = vpack.c.bf16 %v207_v40, %v205_v39 }
  0x15   : > { %v244_v47 = vld [vmem:[%s884_s11 + $0x138] sm:$0xff]  ;;  %v285_v49 = vpack.c.bf16 %v239_v43, %v237_v42  ;;  %v272_v50 = vpack.c.bf16 %v212_v45, %v210_v44  ;;  %v209_v52 = vld [vmem:[%s884_s11 + $0x20] sm:$0xff]  ;;  %v211_v53 = vld [vmem:[%s884_s11 + $0x30] sm:$0xff] }
  0x16   : > { %391 = vmatpush1.bf16.msra.mxu0 %v325_v9  ;;  %789 = vmatpush1.bf16.msra.mxu1 %v325_v9  ;;  %v288_v51 = vpack.c.bf16 %v244_v47, %v242_v46  ;;  %v241_v54 = vld [vmem:[%s884_s11 + $0x120] sm:$0xff]  ;;  %v243_v55 = vld [vmem:[%s884_s11 + $0x130] sm:$0xff]  ;;  %v214_v56 = vld [vmem:[%s884_s11 + $0x48] sm:$0xff]  ;;  %v271_v60 = vpack.c.bf16 %v211_v53, %v209_v52 }
  0x17   : > { %392 = vmatprep.subr.bf16.mxu0 %v815_v3  ;;  %780 = vmatprep.subr.bf16.mxu1 %v815_v3  ;;  %v216_v57 = vld [vmem:[%s884_s11 + $0x58] sm:$0xff]  ;;  %v246_v58 = vld [vmem:[%s884_s11 + $0x148] sm:$0xff]  ;;  %v287_v61 = vpack.c.bf16 %v243_v55, %v241_v54  ;;  %v213_v0 = vld [vmem:[%s884_s11 + $0x40] sm:$0xff] }
  0x18   : > { %v248_v59 = vld [vmem:[%s884_s11 + $0x158] sm:$0xff]  ;;  %v274_v62 = vpack.c.bf16 %v216_v57, %v214_v56  ;;  %v215_v1 = vld [vmem:[%s884_s11 + $0x50] sm:$0xff]  ;;  %v245_v2 = vld [vmem:[%s884_s11 + $0x140] sm:$0xff] }
  0x19   : > { %v290_v63 = vpack.c.bf16 %v248_v59, %v246_v58  ;;  %v218_v4 = vld [vmem:[%s884_s11 + $0x68] sm:$0xff]  ;;  %v220_v5 = vld [vmem:[%s884_s11 + $0x78] sm:$0xff]  ;;  %v273_v8 = vpack.c.bf16 %v215_v1, %v213_v0  ;;  %v217_v12 = vld [vmem:[%s884_s11 + $0x60] sm:$0xff] }
  0x1a   : > { %393 = vmatpush1.bf16.msra.mxu0 %v324_v18  ;;  %790 = vmatpush1.bf16.msra.mxu1 %v324_v18  ;;  %v250_v6 = vld [vmem:[%s884_s11 + $0x168] sm:$0xff]  ;;  %v252_v7 = vld [vmem:[%s884_s11 + $0x178] sm:$0xff]  ;;  %v276_v10 = vpack.c.bf16 %v220_v5, %v218_v4  ;;  %v219_v13 = vld [vmem:[%s884_s11 + $0x70] sm:$0xff] }
  0x1b   : > { %394 = vmatprep.subr.bf16.mxu0 %v815_v3  ;;  %781 = vmatprep.subr.bf16.mxu1 %v815_v3  ;;  %v292_v11 = vpack.c.bf16 %v252_v7, %v250_v6  ;;  %v249_v14 = vld [vmem:[%s884_s11 + $0x160] sm:$0xff]  ;;  %v251_v15 = vld [vmem:[%s884_s11 + $0x170] sm:$0xff]  ;;  %v222_v16 = vld [vmem:[%s884_s11 + $0x88] sm:$0xff]  ;;  %v275_v20 = vpack.c.bf16 %v219_v13, %v217_v12 }
  0x1c   : > { %v224_v17 = vld [vmem:[%s884_s11 + $0x98] sm:$0xff]  ;;  %v254_v18 = vld [vmem:[%s884_s11 + $0x188] sm:$0xff]  ;;  %v223_v25 = vld [vmem:[%s884_s11 + $0x90] sm:$0xff] }
  0x1d   : > { %v256_v19 = vld [vmem:[%s884_s11 + $0x198] sm:$0xff]  ;;  %v278_v22 = vpack.c.bf16 %v224_v17, %v222_v16  ;;  %v253_v26 = vld [vmem:[%s884_s11 + $0x180] sm:$0xff]  ;;  %v226_v28 = vld [vmem:[%s884_s11 + $0xa8] sm:$0xff] }
  0x1e   : > { %395 = vmatpush1.bf16.msra.mxu0 %v323_v21  ;;  %791 = vmatpush1.bf16.msra.mxu1 %v323_v21  ;;  %v291_v21 = vpack.c.bf16 %v251_v15, %v249_v14  ;;  %v294_v23 = vpack.c.bf16 %v256_v19, %v254_v18  ;;  %v228_v29 = vld [vmem:[%s884_s11 + $0xb8] sm:$0xff]  ;;  %v258_v30 = vld [vmem:[%s884_s11 + $0x1a8] sm:$0xff]  ;;  %v227_v37 = vld [vmem:[%s884_s11 + $0xb0] sm:$0xff] }
  0x1f   : > { %396 = vmatprep.subr.bf16.mxu0 %v815_v3  ;;  %782 = vmatprep.subr.bf16.mxu1 %v815_v3  ;;  %v260_v31 = vld [vmem:[%s884_s11 + $0x1b8] sm:$0xff]  ;;  %v280_v34 = vpack.c.bf16 %v228_v29, %v226_v28  ;;  %v257_v38 = vld [vmem:[%s884_s11 + $0x1a0] sm:$0xff]  ;;  %v259_v39 = vld [vmem:[%s884_s11 + $0x1b0] sm:$0xff] }
  0x20   : > { %v296_v35 = vpack.c.bf16 %v260_v31, %v258_v30  ;;  %v230_v40 = vld [vmem:[%s884_s11 + $0xc8] sm:$0xff]  ;;  %v264_v43 = vld [vmem:[%s884_s11 + $0x1d8] sm:$0xff]  ;;  %v295_v45 = vpack.c.bf16 %v259_v39, %v257_v38  ;;  %v1023_v4 = vld [vmem:[%s1165_s3] ss:$0 sm:$0xff] }
  0x21   : > { %v262_v42 = vld [vmem:[%s884_s11 + $0x1c8] sm:$0xff]  ;;  %v236_v53 = vld [vmem:[%s884_s11 + $0xf8] sm:$0xff] }
  0x22   : > { %397 = vmatpush1.bf16.msra.mxu0 %v322_v24  ;;  %792 = vmatpush1.bf16.msra.mxu1 %v322_v24  ;;  %v221_v24 = vld [vmem:[%s884_s11 + $0x80] sm:$0xff]  ;;  %v298_v47 = vpack.c.bf16 %v264_v43, %v262_v42  ;;  %v234_v52 = vld [vmem:[%s884_s11 + $0xe8] sm:$0xff]  ;;  %v268_v55 = vld [vmem:[%s884_s11 + $0x1f8] sm:$0xff] }
  0x23   : > { %398 = vmatprep.subr.bf16.mxu0 %v815_v3  ;;  %783 = vmatprep.subr.bf16.mxu1 %v815_v3  ;;  %v277_v32 = vpack.c.bf16 %v223_v25, %v221_v24  ;;  %v266_v54 = vld [vmem:[%s884_s11 + $0x1e8] sm:$0xff]  ;;  %v284_v58 = vpack.c.bf16 %v236_v53, %v234_v52 }
  0x24   : > { %v300_v59 = vpack.c.bf16 %v268_v55, %v266_v54 }
  0x26   : > { %399 = vmatpush1.bf16.msra.mxu0 %v321_v27  ;;  %793 = vmatpush1.bf16.msra.mxu1 %v321_v27  ;;  %v255_v27 = vld [vmem:[%s884_s11 + $0x190] sm:$0xff] }
  0x27   : > { %400 = vmatprep.subr.bf16.mxu0 %v815_v3  ;;  %784 = vmatprep.subr.bf16.mxu1 %v815_v3 }
  0x2a   : > { %401 = vmatpush1.bf16.msra.mxu0 %v320_v33  ;;  %794 = vmatpush1.bf16.msra.mxu1 %v320_v33  ;;  %v293_v33 = vpack.c.bf16 %v255_v27, %v253_v26 }
  0x2b   : > { %414 = vmatprep.subr.bf16.mxu0 %v815_v3  ;;  %785 = vmatprep.subr.bf16.mxu1 %v815_v3 }
  0x2e   : > { %415 = vmatpush2.bf16.msra.mxu0 %v384_v36  ;;  %795 = vmatpush2.bf16.msra.mxu1 %v384_v36  ;;  %v225_v36 = vld [vmem:[%s884_s11 + $0xa0] sm:$0xff] }
  0x2f   : > { %416 = vmatprep.subr.bf16.mxu0 %v815_v3  ;;  %786 = vmatprep.subr.bf16.mxu1 %v815_v3  ;;  %v247_v3 = vld [vmem:[%s884_s11 + $0x150] sm:$0xff]  ;;  %v279_v44 = vpack.c.bf16 %v227_v37, %v225_v36 }
  0x30   : > { %v289_v9 = vpack.c.bf16 %v247_v3, %v245_v2  ;;  %v1018_v2 = vld [vmem:[%s1164_s2] ss:$0 sm:$0xff] }
  0x32   : > { %417 = vmatpush2.bf16.msra.mxu0 %v328_v41  ;;  %796 = vmatpush2.bf16.msra.mxu1 %v328_v41  ;;  %v232_v41 = vld [vmem:[%s884_s11 + $0xd8] sm:$0xff] }
  0x33   : > { %v282_v46 = vpack.c.bf16 %v232_v41, %v230_v40 }
  0x35   : > { %419 = vmatmul.mubr.bf16.vlgmr.msra.gmra.mxu0 %v269_v48  ;;  %483 = vmatmul.mubr.bf16.vlgmr.msra.gmra.mxu1 %v285_v49  ;;  %v229_v48 = vld [vmem:[%s884_s11 + $0xc0] sm:$0xff]  ;;  %v231_v49 = vld [vmem:[%s884_s11 + $0xd0] sm:$0xff] }
  0x36   : > { %757 = vmatprep.mubr.msk.bf16.mxu0 %vm330_vm0, %v272_v50  ;;  %765 = vmatprep.mubr.msk.bf16.mxu1 %vm330_vm0, %v288_v51  ;;  %v261_v50 = vld [vmem:[%s884_s11 + $0x1c0] sm:$0xff]  ;;  %v263_v51 = vld [vmem:[%s884_s11 + $0x1d0] sm:$0xff]  ;;  %v281_v56 = vpack.c.bf16 %v231_v49, %v229_v48 }
  0x37   : > { %v297_v57 = vpack.c.bf16 %v263_v51, %v261_v50 }
  0x3d   : > { %427 = vmatmul.mubr.bf16.gmra.mxu0 %v271_v60  ;;  %491 = vmatmul.mubr.bf16.gmra.mxu1 %v287_v61  ;;  %v233_v60 = vld [vmem:[%s884_s11 + $0xe0] sm:$0xff]  ;;  %v235_v61 = vld [vmem:[%s884_s11 + $0xf0] sm:$0xff] }
  0x3e   : > { %758 = vmatprep.mubr.msk.bf16.mxu0 %vm330_vm0, %v274_v62  ;;  %766 = vmatprep.mubr.msk.bf16.mxu1 %vm330_vm0, %v290_v63  ;;  %v265_v62 = vld [vmem:[%s884_s11 + $0x1e0] sm:$0xff]  ;;  %v267_v63 = vld [vmem:[%s884_s11 + $0x1f0] sm:$0xff]  ;;  %v283_v0 = vpack.c.bf16 %v235_v61, %v233_v60 }
  0x3f   : > { %v299_v1 = vpack.c.bf16 %v267_v63, %v265_v62 }
  0x45   : > { %435 = vmatmul.mubr.bf16.gmra.mxu0 %v273_v8  ;;  %499 = vmatmul.mubr.bf16.gmra.mxu1 %v289_v9 }
  0x46   : > { %759 = vmatprep.mubr.msk.bf16.mxu0 %vm330_vm0, %v276_v10  ;;  %767 = vmatprep.mubr.msk.bf16.mxu1 %vm330_vm0, %v292_v11 }
  0x4d   : > { %443 = vmatmul.mubr.bf16.gmra.mxu0 %v275_v20  ;;  %507 = vmatmul.mubr.bf16.gmra.mxu1 %v291_v21 }
  0x4e   : > { %760 = vmatprep.mubr.msk.bf16.mxu0 %vm330_vm0, %v278_v22  ;;  %768 = vmatprep.mubr.msk.bf16.mxu1 %vm330_vm0, %v294_v23 }
  0x55   : > { %451 = vmatmul.mubr.bf16.gmra.mxu0 %v277_v32  ;;  %515 = vmatmul.mubr.bf16.gmra.mxu1 %v293_v33 }
  0x56   : > { %761 = vmatprep.mubr.msk.bf16.mxu0 %vm330_vm0, %v280_v34  ;;  %769 = vmatprep.mubr.msk.bf16.mxu1 %vm330_vm0, %v296_v35 }
  0x5d   : > { %459 = vmatmul.mubr.bf16.gmra.mxu0 %v279_v44  ;;  %523 = vmatmul.mubr.bf16.gmra.mxu1 %v295_v45 }
  0x5e   : > { %762 = vmatprep.mubr.msk.bf16.mxu0 %vm330_vm0, %v282_v46  ;;  %770 = vmatprep.mubr.msk.bf16.mxu1 %vm330_vm0, %v298_v47 }
  0x65   : > { %467 = vmatmul.mubr.bf16.gmra.mxu0 %v281_v56  ;;  %531 = vmatmul.mubr.bf16.gmra.mxu1 %v297_v57 }
  0x66   : > { %763 = vmatprep.mubr.msk.bf16.mxu0 %vm330_vm0, %v284_v58  ;;  %771 = vmatprep.mubr.msk.bf16.mxu1 %vm330_vm0, %v300_v59 }
  0x6d   : > { %475 = vmatmul.mubr.bf16.gmra.mxu0 %v283_v0  ;;  %539 = vmatmul.mubr.bf16.gmra.mxu1 %v299_v1 }
  0xf5   : > { %v420_v3 = vpop.f32.mrf.mxu0  ;;  %v484_v5 = vpop.f32.mrf.mxu1 }
  0xf6   : > { %v554_v6 = vmul.f32 %v1018_v2, %v420_v3  ;;  %v570_v7 = vmul.f32 %v1018_v2, %v484_v5 }
  0xf7   : > { %v422_v8 = vpop.f32.mrf.mxu0  ;;  %v486_v9 = vpop.f32.mrf.mxu1 }
  0xf8   : > { %v593_v10 = vadd.f32 %v1023_v4, %v554_v6  ;;  %v609_v11 = vadd.f32 %v1023_v4, %v570_v7 }
  0xf9   : > { %v423_v12 = vpop.f32.mrf.mxu0  ;;  %v487_v13 = vpop.f32.mrf.mxu1 }
  0xfa   : > { %v625_v14 = vmax.f32 %v593_v10, 0.0  ;;  %v641_v15 = vmax.f32 %v609_v11, 0.0  ;;  %v555_v16 = vmul.f32 %v1018_v2, %v423_v12  ;;  %v571_v17 = vmul.f32 %v1018_v2, %v487_v13 }
  0xfb   : > { %v425_v18 = vpop.f32.mrf.mxu0  ;;  %v489_v19 = vpop.f32.mrf.mxu1 }
  0xfc   : > { %658 = vst.msk [vmem:[%s1033_s18] sm:$0xff] %vm657_vm3, %v625_v14  ;;  %674 = vst.msk [vmem:[%s1033_s18 + $0x80] sm:$0xff] %vm657_vm3, %v641_v15  ;;  %v594_v20 = vadd.f32 %v1023_v4, %v555_v16  ;;  %v610_v21 = vadd.f32 %v1023_v4, %v571_v17 }
  0xfd   : > { %v428_v22 = vpop.f32.mrf.mxu0  ;;  %v492_v23 = vpop.f32.mrf.mxu1 }
  0xfe   : > { %v626_v24 = vmax.f32 %v594_v20, 0.0  ;;  %v642_v25 = vmax.f32 %v610_v21, 0.0  ;;  %v556_v26 = vmul.f32 %v1018_v2, %v428_v22  ;;  %v572_v27 = vmul.f32 %v1018_v2, %v492_v23 }
  0xff   : > { %v430_v28 = vpop.f32.mrf.mxu0  ;;  %v494_v29 = vpop.f32.mrf.mxu1 }
 0x100   : > { %659 = vst.msk [vmem:[%s1033_s18 + $0x8] sm:$0xff] %vm657_vm3, %v626_v24  ;;  %675 = vst.msk [vmem:[%s1033_s18 + $0x88] sm:$0xff] %vm657_vm3, %v642_v25  ;;  %v595_v30 = vadd.f32 %v1023_v4, %v556_v26  ;;  %v611_v31 = vadd.f32 %v1023_v4, %v572_v27 }
 0x101   : > { %v431_v32 = vpop.f32.mrf.mxu0  ;;  %v495_v33 = vpop.f32.mrf.mxu1 }
 0x102   : > { %v627_v34 = vmax.f32 %v595_v30, 0.0  ;;  %v643_v35 = vmax.f32 %v611_v31, 0.0  ;;  %v557_v36 = vmul.f32 %v1018_v2, %v431_v32  ;;  %v573_v37 = vmul.f32 %v1018_v2, %v495_v33 }
 0x103   : > { %v433_v38 = vpop.f32.mrf.mxu0  ;;  %v497_v39 = vpop.f32.mrf.mxu1 }
 0x104   : > { %660 = vst.msk [vmem:[%s1033_s18 + $0x10] sm:$0xff] %vm657_vm3, %v627_v34  ;;  %676 = vst.msk [vmem:[%s1033_s18 + $0x90] sm:$0xff] %vm657_vm3, %v643_v35  ;;  %v596_v40 = vadd.f32 %v1023_v4, %v557_v36  ;;  %v612_v41 = vadd.f32 %v1023_v4, %v573_v37 }
 0x105   : > { %v436_v42 = vpop.f32.mrf.mxu0  ;;  %v500_v43 = vpop.f32.mrf.mxu1 }
 0x106   : > { %v628_v44 = vmax.f32 %v596_v40, 0.0  ;;  %v644_v45 = vmax.f32 %v612_v41, 0.0  ;;  %v558_v46 = vmul.f32 %v1018_v2, %v436_v42  ;;  %v574_v47 = vmul.f32 %v1018_v2, %v500_v43 }
 0x107   : > { %v438_v48 = vpop.f32.mrf.mxu0  ;;  %v502_v49 = vpop.f32.mrf.mxu1 }
 0x108   : > { %661 = vst.msk [vmem:[%s1033_s18 + $0x18] sm:$0xff] %vm657_vm3, %v628_v44  ;;  %677 = vst.msk [vmem:[%s1033_s18 + $0x98] sm:$0xff] %vm657_vm3, %v644_v45  ;;  %v597_v50 = vadd.f32 %v1023_v4, %v558_v46  ;;  %v613_v51 = vadd.f32 %v1023_v4, %v574_v47 }
 0x109   : > { %v439_v52 = vpop.f32.mrf.mxu0  ;;  %v503_v53 = vpop.f32.mrf.mxu1 }
 0x10a   : > { %v629_v54 = vmax.f32 %v597_v50, 0.0  ;;  %v645_v55 = vmax.f32 %v613_v51, 0.0  ;;  %v559_v56 = vmul.f32 %v1018_v2, %v439_v52  ;;  %v575_v57 = vmul.f32 %v1018_v2, %v503_v53 }
 0x10b   : > { %v441_v58 = vpop.f32.mrf.mxu0  ;;  %v505_v59 = vpop.f32.mrf.mxu1 }
 0x10c   : > { %662 = vst.msk [vmem:[%s1033_s18 + $0x20] sm:$0xff] %vm657_vm3, %v629_v54  ;;  %678 = vst.msk [vmem:[%s1033_s18 + $0xa0] sm:$0xff] %vm657_vm3, %v645_v55  ;;  %v598_v60 = vadd.f32 %v1023_v4, %v559_v56  ;;  %v614_v61 = vadd.f32 %v1023_v4, %v575_v57 }
 0x10d   : > { %v444_v62 = vpop.f32.mrf.mxu0  ;;  %v508_v63 = vpop.f32.mrf.mxu1 }
 0x10e   : > { %v630_v0 = vmax.f32 %v598_v60, 0.0  ;;  %v646_v1 = vmax.f32 %v614_v61, 0.0  ;;  %v560_v3 = vmul.f32 %v1018_v2, %v444_v62  ;;  %v576_v5 = vmul.f32 %v1018_v2, %v508_v63 }
 0x10f   : > { %v446_v6 = vpop.f32.mrf.mxu0  ;;  %v510_v7 = vpop.f32.mrf.mxu1 }
 0x110   : > { %663 = vst.msk [vmem:[%s1033_s18 + $0x28] sm:$0xff] %vm657_vm3, %v630_v0  ;;  %679 = vst.msk [vmem:[%s1033_s18 + $0xa8] sm:$0xff] %vm657_vm3, %v646_v1  ;;  %v599_v8 = vadd.f32 %v1023_v4, %v560_v3  ;;  %v615_v9 = vadd.f32 %v1023_v4, %v576_v5 }
 0x111   : > { %v447_v10 = vpop.f32.mrf.mxu0  ;;  %v511_v11 = vpop.f32.mrf.mxu1 }
 0x112   : > { %v631_v12 = vmax.f32 %v599_v8, 0.0  ;;  %v647_v13 = vmax.f32 %v615_v9, 0.0  ;;  %v561_v14 = vmul.f32 %v1018_v2, %v447_v10  ;;  %v577_v15 = vmul.f32 %v1018_v2, %v511_v11 }
 0x113   : > { %v449_v16 = vpop.f32.mrf.mxu0  ;;  %v513_v17 = vpop.f32.mrf.mxu1 }
 0x114   : > { %664 = vst.msk [vmem:[%s1033_s18 + $0x30] sm:$0xff] %vm657_vm3, %v631_v12  ;;  %680 = vst.msk [vmem:[%s1033_s18 + $0xb0] sm:$0xff] %vm657_vm3, %v647_v13  ;;  %v600_v18 = vadd.f32 %v1023_v4, %v561_v14  ;;  %v616_v19 = vadd.f32 %v1023_v4, %v577_v15 }
 0x115   : > { %v452_v20 = vpop.f32.mrf.mxu0  ;;  %v516_v21 = vpop.f32.mrf.mxu1 }
 0x116   : > { %v632_v22 = vmax.f32 %v600_v18, 0.0  ;;  %v648_v23 = vmax.f32 %v616_v19, 0.0  ;;  %v562_v24 = vmul.f32 %v1018_v2, %v452_v20  ;;  %v578_v25 = vmul.f32 %v1018_v2, %v516_v21 }
 0x117   : > { %v454_v26 = vpop.f32.mrf.mxu0  ;;  %v518_v27 = vpop.f32.mrf.mxu1 }
 0x118   : > { %665 = vst.msk [vmem:[%s1033_s18 + $0x38] sm:$0xff] %vm657_vm3, %v632_v22  ;;  %681 = vst.msk [vmem:[%s1033_s18 + $0xb8] sm:$0xff] %vm657_vm3, %v648_v23  ;;  %v601_v28 = vadd.f32 %v1023_v4, %v562_v24  ;;  %v617_v29 = vadd.f32 %v1023_v4, %v578_v25 }
 0x119   : > { %v455_v30 = vpop.f32.mrf.mxu0  ;;  %v519_v31 = vpop.f32.mrf.mxu1 }
 0x11a   : > { %v633_v32 = vmax.f32 %v601_v28, 0.0  ;;  %v649_v33 = vmax.f32 %v617_v29, 0.0  ;;  %v563_v34 = vmul.f32 %v1018_v2, %v455_v30  ;;  %v579_v35 = vmul.f32 %v1018_v2, %v519_v31 }
 0x11b   : > { %v457_v36 = vpop.f32.mrf.mxu0  ;;  %v521_v37 = vpop.f32.mrf.mxu1 }
 0x11c   : > { %666 = vst.msk [vmem:[%s1033_s18 + $0x40] sm:$0xff] %vm657_vm3, %v633_v32  ;;  %682 = vst.msk [vmem:[%s1033_s18 + $0xc0] sm:$0xff] %vm657_vm3, %v649_v33  ;;  %v602_v38 = vadd.f32 %v1023_v4, %v563_v34  ;;  %v618_v39 = vadd.f32 %v1023_v4, %v579_v35 }
 0x11d   : > { %v460_v40 = vpop.f32.mrf.mxu0  ;;  %v524_v41 = vpop.f32.mrf.mxu1 }
 0x11e   : > { %v634_v42 = vmax.f32 %v602_v38, 0.0  ;;  %v650_v43 = vmax.f32 %v618_v39, 0.0  ;;  %v564_v44 = vmul.f32 %v1018_v2, %v460_v40  ;;  %v580_v45 = vmul.f32 %v1018_v2, %v524_v41 }
 0x11f   : > { %v462_v46 = vpop.f32.mrf.mxu0  ;;  %v526_v47 = vpop.f32.mrf.mxu1 }
 0x120   : > { %667 = vst.msk [vmem:[%s1033_s18 + $0x48] sm:$0xff] %vm657_vm3, %v634_v42  ;;  %683 = vst.msk [vmem:[%s1033_s18 + $0xc8] sm:$0xff] %vm657_vm3, %v650_v43  ;;  %v603_v48 = vadd.f32 %v1023_v4, %v564_v44  ;;  %v619_v49 = vadd.f32 %v1023_v4, %v580_v45 }
 0x121   : > { %v463_v50 = vpop.f32.mrf.mxu0  ;;  %v527_v51 = vpop.f32.mrf.mxu1 }
 0x122   : > { %v635_v52 = vmax.f32 %v603_v48, 0.0  ;;  %v651_v53 = vmax.f32 %v619_v49, 0.0  ;;  %v565_v54 = vmul.f32 %v1018_v2, %v463_v50  ;;  %v581_v55 = vmul.f32 %v1018_v2, %v527_v51 }
 0x123   : > { %v465_v56 = vpop.f32.mrf.mxu0  ;;  %v529_v57 = vpop.f32.mrf.mxu1 }
 0x124   : > { %668 = vst.msk [vmem:[%s1033_s18 + $0x50] sm:$0xff] %vm657_vm3, %v635_v52  ;;  %684 = vst.msk [vmem:[%s1033_s18 + $0xd0] sm:$0xff] %vm657_vm3, %v651_v53  ;;  %v604_v58 = vadd.f32 %v1023_v4, %v565_v54  ;;  %v620_v59 = vadd.f32 %v1023_v4, %v581_v55 }
 0x125   : > { %v468_v60 = vpop.f32.mrf.mxu0  ;;  %v532_v61 = vpop.f32.mrf.mxu1 }
 0x126   : > { %v636_v62 = vmax.f32 %v604_v58, 0.0  ;;  %v652_v63 = vmax.f32 %v620_v59, 0.0  ;;  %v566_v0 = vmul.f32 %v1018_v2, %v468_v60  ;;  %v582_v1 = vmul.f32 %v1018_v2, %v532_v61 }
 0x127   : > { %v470_v3 = vpop.f32.mrf.mxu0  ;;  %v534_v5 = vpop.f32.mrf.mxu1 }
 0x128   : > { %669 = vst.msk [vmem:[%s1033_s18 + $0x58] sm:$0xff] %vm657_vm3, %v636_v62  ;;  %685 = vst.msk [vmem:[%s1033_s18 + $0xd8] sm:$0xff] %vm657_vm3, %v652_v63  ;;  %v605_v6 = vadd.f32 %v1023_v4, %v566_v0  ;;  %v621_v7 = vadd.f32 %v1023_v4, %v582_v1 }
 0x129   : > { %v471_v8 = vpop.f32.mrf.mxu0  ;;  %v535_v9 = vpop.f32.mrf.mxu1 }
 0x12a   : > { %v637_v10 = vmax.f32 %v605_v6, 0.0  ;;  %v653_v11 = vmax.f32 %v621_v7, 0.0  ;;  %v567_v12 = vmul.f32 %v1018_v2, %v471_v8  ;;  %v583_v13 = vmul.f32 %v1018_v2, %v535_v9 }
 0x12b   : > { %v473_v14 = vpop.f32.mrf.mxu0  ;;  %v537_v15 = vpop.f32.mrf.mxu1 }
 0x12c   : > { %670 = vst.msk [vmem:[%s1033_s18 + $0x60] sm:$0xff] %vm657_vm3, %v637_v10  ;;  %686 = vst.msk [vmem:[%s1033_s18 + $0xe0] sm:$0xff] %vm657_vm3, %v653_v11  ;;  %v606_v16 = vadd.f32 %v1023_v4, %v567_v12  ;;  %v622_v17 = vadd.f32 %v1023_v4, %v583_v13 }
 0x12d   : > { %v476_v18 = vpop.f32.mrf.mxu0  ;;  %v540_v19 = vpop.f32.mrf.mxu1 }
 0x12e   : > { %v638_v20 = vmax.f32 %v606_v16, 0.0  ;;  %v654_v21 = vmax.f32 %v622_v17, 0.0  ;;  %v568_v22 = vmul.f32 %v1018_v2, %v476_v18  ;;  %v584_v23 = vmul.f32 %v1018_v2, %v540_v19 }
 0x12f   : > { %v478_v24 = vpop.f32.mrf.mxu0  ;;  %v542_v25 = vpop.f32.mrf.mxu1 }
 0x130   : > { %671 = vst.msk [vmem:[%s1033_s18 + $0x68] sm:$0xff] %vm657_vm3, %v638_v20  ;;  %687 = vst.msk [vmem:[%s1033_s18 + $0xe8] sm:$0xff] %vm657_vm3, %v654_v21  ;;  %v607_v26 = vadd.f32 %v1023_v4, %v568_v22  ;;  %v623_v27 = vadd.f32 %v1023_v4, %v584_v23 }
 0x131   : > { %v479_v28 = vpop.f32.mrf.mxu0  ;;  %v543_v29 = vpop.f32.mrf.mxu1 }
 0x132   : > { %v639_v30 = vmax.f32 %v607_v26, 0.0  ;;  %v655_v31 = vmax.f32 %v623_v27, 0.0  ;;  %v569_v32 = vmul.f32 %v1018_v2, %v479_v28  ;;  %v585_v33 = vmul.f32 %v1018_v2, %v543_v29 }
 0x133   : > { %v481_v34 = vpop.f32.mrf.mxu0  ;;  %v545_v35 = vpop.f32.mrf.mxu1 }
 0x134   : > { %672 = vst.msk [vmem:[%s1033_s18 + $0x70] sm:$0xff] %vm657_vm3, %v639_v30  ;;  %688 = vst.msk [vmem:[%s1033_s18 + $0xf0] sm:$0xff] %vm657_vm3, %v655_v31  ;;  %v608_v36 = vadd.f32 %v1023_v4, %v569_v32  ;;  %v624_v37 = vadd.f32 %v1023_v4, %v585_v33 }
 0x136   : > { %v640_v38 = vmax.f32 %v608_v36, 0.0  ;;  %v656_v39 = vmax.f32 %v624_v37, 0.0 }
 0x138   : > { %673 = vst.msk [vmem:[%s1033_s18 + $0x78] sm:$0xff] %vm657_vm3, %v640_v38  ;;  %689 = vst.msk [vmem:[%s1033_s18 + $0xf8] sm:$0xff] %vm657_vm3, %v656_v39 }
 0x139 PF: > { %s14_s15 = sadd.s32 1, %s813_s15  }
 0x13a   : > { %p11_p4 = scmp.ge.s32.totalorder %s14_s15, 4  }
 0x13c   :  { %13 = sbr.rel (!%p11_p4) target bundleno = 1 (0x1), region = 66 }

// kernel: encoder_forward.13
= control target key start
LH: loop header
LB: loop body
LE: loop exit
PB: predicated region body
PF: predicated region fallthrough
CT: control target
= control target key end

     0   :  { %s1477_s12 = smov 0   ;;  %s1760_s0 = inlined_call_operand.vmem [shape: f32[2,8,8,16], index: 0, kind: input, shape index: {}]   ;;  %s1761_s1 = inlined_call_operand.vmem [shape: f32[2,10,10,16], index: 1, kind: input, shape index: {}]   ;;  %s1762_s2 = inlined_call_operand.vmem [shape: f32[3,3,16,8], index: 2, kind: input, shape index: {}]   ;;  %s1763_s3 = inlined_call_operand.vmem [shape: f32[2,8,8,24], index: 3, kind: output, shape index: {}]  }
   0x1 LB: > { %s1203_s13 = sadd.s32 4294967295, %s1454_s12   ;;  %p1207_p0 = scmp.ge.s32.totalorder %s1454_s12, 1  ;;  %s1454_s12 = sphi %s1477_s12, %s13_s12  }
   0x2   : > { %p147_p1 = scmp.lt.s32.totalorder %s1454_s12, 3 }
   0x4   : > { %p148_p2 = pnand %p1207_p0, %p147_p1 }
   0x5   : > { %p176_p3 = scmp.lt.s32.totalorder (!%p148_p2), %s1203_s13, 1  ;;  %s1456_s29 = smov (!%p148_p2), 16  }
   0x6   : > { %151 = sbr.rel (%p148_p2) target bundleno = 409 (0x199), region = 32 }
   0xb   : > { %v194_v0 = vld [vmem:[%s1762_s2 + $0x10] sm:$0xff]  ;;  %v195_v1 = vld [vmem:[%s1762_s2 + $0x18] sm:$0xff]  ;;  %v192_v2 = vld [vmem:[%s1762_s2] sm:$0xff]  ;;  %s1765_s13 = smov (!%p176_p3, %s1203_s13), 1  ;;  %vm243_vm0 = vcmask 130048   ;;  %vm1127_vm1 = vcmask 195584  }
   0xc   : > { %v211_v3 = vpack.c.bf16 %v195_v1, %v194_v0  ;;  %v193_v4 = vld [vmem:[%s1762_s2 + $0x8] sm:$0xff]  ;;  %v196_v5 = vld [vmem:[%s1762_s2 + $0x20] sm:$0xff]  ;;  %s1438_s26 = smul.u32 160, %s1765_s13  ;;  %v198_v9 = vld [vmem:[%s1762_s2 + $0x30] sm:$0xff]  ;;  %s1299_s30 = sshll.u32 %s1765_s13, 6 }
   0xd   : > { %v197_v6 = vld [vmem:[%s1762_s2 + $0x28] sm:$0xff]  ;;  %v210_v7 = vpack.c.bf16 %v193_v4, %v192_v2  ;;  %v199_v10 = vld [vmem:[%s1762_s2 + $0x38] sm:$0xff]  ;;  %v200_v11 = vld [vmem:[%s1762_s2 + $0x40] sm:$0xff]  ;;  %s1718_s6 = scalar_lea.vmem %s1760_s0, %s1299_s30  ;;  %s1724_s9 = scalar_lea.vmem %s1763_s3, %s1299_s30 }
   0xe   : > { %v212_v8 = vpack.c.bf16 %v197_v6, %v196_v5  ;;  %1436 = vmatprep.subr.bf16.mxu1 %v211_v3  ;;  %1346 = vmatprep.subr.bf16.mxu0 %v211_v3  ;;  %s1512_s4 = scalar_lea.vmem %s1761_s1, %s1438_s26  ;;  %v201_v12 = vld [vmem:[%s1762_s2 + $0x48] sm:$0xff]  ;;  %v213_v29 = vpack.c.bf16 %v199_v10, %v198_v9  ;;  %v202_v39 = vld [vmem:[%s1762_s2 + $0x50] sm:$0xff]  ;;  %v203_v43 = vld [vmem:[%s1762_s2 + $0x58] sm:$0xff] }
   0xf   : > { %1437 = vmatpush3.bf16.msra.mxu1 %v211_v3  ;;  %1347 = vmatpush3.bf16.msra.mxu0 %v211_v3  ;;  %v231_v13 = vld [vmem:[%s1512_s4 + $0x1] sm:$0xff]  ;;  %v1525_v14 = vld [vmem:[%s1512_s4 + $0x11] sm:$0xff]  ;;  %v214_v32 = vpack.c.bf16 %v201_v12, %v200_v11  ;;  %v215_v49 = vpack.c.bf16 %v203_v43, %v202_v39 }
  0x10   : > { %1356 = vmatprep.subr.bf16.mxu1 %v210_v7  ;;  %1366 = vmatprep.subr.bf16.mxu0 %v212_v8  ;;  %v1528_v15 = vld [vmem:[%s1512_s4 + $0x41] sm:$0xff]  ;;  %v239_v16 = vpack.c.bf16 %v1525_v14, %v231_v13  ;;  %v1532_v17 = vld [vmem:[%s1512_s4 + $0x51] sm:$0xff] }
  0x11   : > { %v233_v18 = vld [vmem:[%s1512_s4 + $0x21] sm:$0xff]  ;;  %v1536_v19 = vld [vmem:[%s1512_s4 + $0x31] sm:$0xff]  ;;  %v1540_v20 = vpack.c.bf16 %v1532_v17, %v1528_v15 }
  0x12   : > { %v1543_v21 = vpack.c.bf16 %v1536_v19, %v233_v18  ;;  %v1546_v22 = vld [vmem:[%s1512_s4 + $0x61] sm:$0xff]  ;;  %v1549_v23 = vld [vmem:[%s1512_s4 + $0x71] sm:$0xff]  ;;  %1348 = vmatprep.mubr.msk.bf16.mxu0 %vm243_vm0, %v239_v16  ;;  %v601_v57 = vpack.c.bf16 %v233_v18, %v1525_v14  ;;  %v602_v59 = vpack.c.bf16 %v1528_v15, %v1536_v19 }
  0x13   : > { %v219_v24 = vld [vmem:[%s1512_s4] sm:$0xff]  ;;  %v1555_v25 = vpack.c.bf16 %v1549_v23, %v1546_v22  ;;  %v220_v26 = vld [vmem:[%s1512_s4 + $0x10] sm:$0xff]  ;;  %1352 = vmatprep.mubr.msk.bf16.mxu1 %vm243_vm0, %v1540_v20  ;;  %v205_v46 = vld [vmem:[%s1762_s2 + $0x68] sm:$0xff]  ;;  %v603_v2 = vpack.c.bf16 %v1546_v22, %v1532_v17 }
  0x14   : > { %v398_v27 = vld [vmem:[%s1512_s4 + $0x2] sm:$0xff]  ;;  %v1560_v28 = vld [vmem:[%s1512_s4 + $0x12] sm:$0xff]  ;;  %1349 = vmatmul.mubr.msk.bf16.vlgmr.msra.gmra.mxu0 %vm243_vm0, %v1543_v21  ;;  %v227_v30 = vpack.c.bf16 %v220_v26, %v219_v24 }
  0x15   : > { %v406_v31 = vpack.c.bf16 %v1560_v28, %v398_v27  ;;  %1353 = vmatmul.mubr.msk.bf16.vlgmr.msra.gmra.mxu1 %vm243_vm0, %v1555_v25  ;;  %1367 = vmatpush3.bf16.msra.mxu0 %v212_v8  ;;  %v1570_v33 = vld [vmem:[%s1512_s4 + $0x22] sm:$0xff]  ;;  %v1573_v34 = vld [vmem:[%s1512_s4 + $0x32] sm:$0xff] }
  0x16   : > { %1357 = vmatpush3.bf16.msra.mxu1 %v210_v7  ;;  %1358 = vmatprep.mubr.msk.bf16.mxu1 %vm243_vm0, %v227_v30  ;;  %v221_v35 = vld [vmem:[%s1512_s4 + $0x20] sm:$0xff]  ;;  %v222_v36 = vld [vmem:[%s1512_s4 + $0x30] sm:$0xff]  ;;  %v1586_v40 = vpack.c.bf16 %v1573_v34, %v1570_v33  ;;  %v207_v61 = vld [vmem:[%s1762_s2 + $0x78] sm:$0xff]  ;;  %v698_v9 = vpack.c.bf16 %v1570_v33, %v1560_v28 }
  0x17   : > { %1368 = vmatprep.mubr.msk.bf16.mxu0 %vm243_vm0, %v406_v31  ;;  %1376 = vmatprep.subr.bf16.mxu1 %v213_v29  ;;  %v223_v37 = vld [vmem:[%s1512_s4 + $0x40] sm:$0xff]  ;;  %v224_v38 = vld [vmem:[%s1512_s4 + $0x50] sm:$0xff]  ;;  %v228_v44 = vpack.c.bf16 %v222_v36, %v221_v35  ;;  %v504_v58 = vpack.c.bf16 %v221_v35, %v220_v26  ;;  %v209_v0 = vld [vmem:[%s1762_s2 + $0x88] sm:$0xff] }
  0x18   : > { %1386 = vmatprep.subr.bf16.mxu0 %v214_v32  ;;  %v402_v41 = vld [vmem:[%s1512_s4 + $0x42] sm:$0xff]  ;;  %v1590_v42 = vld [vmem:[%s1512_s4 + $0x52] sm:$0xff]  ;;  %v229_v47 = vpack.c.bf16 %v224_v38, %v223_v37  ;;  %v505_v62 = vpack.c.bf16 %v223_v37, %v222_v36 }
  0x19   : > { %v204_v45 = vld [vmem:[%s1762_s2 + $0x60] sm:$0xff]  ;;  %v1602_v48 = vpack.c.bf16 %v1590_v42, %v402_v41  ;;  %v405_v52 = vld [vmem:[%s1512_s4 + $0x72] sm:$0xff]  ;;  %v699_v10 = vpack.c.bf16 %v402_v41, %v1573_v34 }
  0x1a   : > { %v216_v50 = vpack.c.bf16 %v205_v46, %v204_v45  ;;  %v404_v51 = vld [vmem:[%s1512_s4 + $0x62] sm:$0xff]  ;;  %v226_v54 = vld [vmem:[%s1512_s4 + $0x70] sm:$0xff] }
  0x1b   : > { %v225_v53 = vld [vmem:[%s1512_s4 + $0x60] sm:$0xff]  ;;  %v409_v55 = vpack.c.bf16 %v405_v52, %v404_v51  ;;  %v206_v60 = vld [vmem:[%s1762_s2 + $0x70] sm:$0xff]  ;;  %v700_v11 = vpack.c.bf16 %v404_v51, %v1590_v42 }
  0x1c   : > { %1369 = vmatmul.mubr.msk.bf16.vlgmr.msra.gmra.mxu0 %vm243_vm0, %v1586_v40  ;;  %v230_v56 = vpack.c.bf16 %v226_v54, %v225_v53  ;;  %v208_v63 = vld [vmem:[%s1762_s2 + $0x80] sm:$0xff]  ;;  %v506_v1 = vpack.c.bf16 %v225_v53, %v224_v38  ;;  %v217_v3 = vpack.c.bf16 %v207_v61, %v206_v60  ;;  %v1268_v12 = vld [vmem:[%s1512_s4 + $0x90] sm:$0xff] }
  0x1d   : > { %1359 = vmatmul.mubr.msk.bf16.vlgmr.msra.gmra.mxu1 %vm243_vm0, %v228_v44  ;;  %1387 = vmatpush3.bf16.msra.mxu0 %v214_v32  ;;  %v218_v4 = vpack.c.bf16 %v209_v0, %v208_v63  ;;  %v1244_v5 = vld [vmem:[%s1512_s4 + $0x81] sm:$0xff]  ;;  %v1292_v16 = vld [vmem:[%s1512_s4 + $0x92] sm:$0xff] }
  0x1e   : > { %1377 = vmatpush3.bf16.msra.mxu1 %v213_v29  ;;  %1362 = vmatprep.mubr.msk.bf16.mxu1 %vm243_vm0, %v229_v47  ;;  %v1232_v6 = vld [vmem:[%s1512_s4 + $0x80] sm:$0xff]  ;;  %v604_v7 = vpack.c.bf16 %v1244_v5, %v1549_v23  ;;  %v1280_v17 = vld [vmem:[%s1512_s4 + $0x91] sm:$0xff] }
  0x1f   : > { %1372 = vmatprep.mubr.msk.bf16.mxu0 %vm243_vm0, %v1602_v48  ;;  %1396 = vmatprep.subr.bf16.mxu1 %v215_v49  ;;  %v507_v8 = vpack.c.bf16 %v1232_v6, %v226_v54  ;;  %v1256_v13 = vld [vmem:[%s1512_s4 + $0x82] sm:$0xff]  ;;  %v799_v14 = vpack.c.bf16 %v1268_v12, %v1232_v6  ;;  %v896_v19 = vpack.c.bf16 %v1280_v17, %v1244_v5 }
  0x20   : > { %1406 = vmatprep.subr.bf16.mxu0 %v216_v50  ;;  %v701_v15 = vpack.c.bf16 %v1256_v13, %v405_v52  ;;  %v993_v18 = vpack.c.bf16 %v1292_v16, %v1256_v13 }
  0x24   : > { %1373 = vmatmul.mubr.msk.bf16.gmra.mxu0 %vm243_vm0, %v409_v55 }
  0x25   : > { %1363 = vmatmul.mubr.msk.bf16.gmra.mxu1 %vm243_vm0, %v230_v56  ;;  %1388 = vmatprep.mubr.msk.bf16.mxu0 %vm243_vm0, %v601_v57 }
  0x26   : > { %1378 = vmatprep.mubr.msk.bf16.mxu1 %vm243_vm0, %v504_v58 }
  0x2c   : > { %1389 = vmatmul.mubr.msk.bf16.vlgmr.msra.gmra.mxu0 %vm243_vm0, %v602_v59 }
  0x2d   : > { %1379 = vmatmul.mubr.msk.bf16.vlgmr.msra.gmra.mxu1 %vm243_vm0, %v505_v62  ;;  %1407 = vmatpush3.bf16.msra.mxu0 %v216_v50 }
  0x2e   : > { %1397 = vmatpush3.bf16.msra.mxu1 %v215_v49  ;;  %1382 = vmatprep.mubr.msk.bf16.mxu1 %vm243_vm0, %v506_v1 }
  0x2f   : > { %1392 = vmatprep.mubr.msk.bf16.mxu0 %vm243_vm0, %v603_v2  ;;  %1416 = vmatprep.subr.bf16.mxu1 %v217_v3 }
  0x30   : > { %1426 = vmatprep.subr.bf16.mxu0 %v218_v4 }
  0x34   : > { %1393 = vmatmul.mubr.msk.bf16.gmra.mxu0 %vm243_vm0, %v604_v7 }
  0x35   : > { %1383 = vmatmul.mubr.msk.bf16.gmra.mxu1 %vm243_vm0, %v507_v8  ;;  %1408 = vmatprep.mubr.msk.bf16.mxu0 %vm243_vm0, %v228_v44 }
  0x36   : > { %1398 = vmatprep.mubr.msk.bf16.mxu1 %vm243_vm0, %v698_v9 }
  0x3c   : > { %1409 = vmatmul.mubr.msk.bf16.vlgmr.msra.gmra.mxu0 %vm243_vm0, %v229_v47 }
  0x3d   : > { %1399 = vmatmul.mubr.msk.bf16.vlgmr.msra.gmra.mxu1 %vm243_vm0, %v699_v10  ;;  %1427 = vmatpush3.bf16.msra.mxu0 %v218_v4 }
  0x3e   : > { %1417 = vmatpush3.bf16.msra.mxu1 %v217_v3  ;;  %1402 = vmatprep.mubr.msk.bf16.mxu1 %vm243_vm0, %v700_v11 }
  0x3f   : > { %1412 = vmatprep.mubr.msk.bf16.mxu0 %vm243_vm0, %v230_v56 }
  0x44   : > { %1413 = vmatmul.mubr.msk.bf16.gmra.mxu0 %vm243_vm0, %v799_v14 }
  0x45   : > { %1403 = vmatmul.mubr.msk.bf16.gmra.mxu1 %vm243_vm0, %v701_v15  ;;  %1428 = vmatprep.mubr.msk.bf16.mxu0 %vm243_vm0, %v1586_v40 }
  0x46   : > { %1418 = vmatprep.mubr.msk.bf16.mxu1 %vm243_vm0, %v1543_v21 }
  0x4c   : > { %1429 = vmatmul.mubr.msk.bf16.vlgmr.msra.gmra.mxu0 %vm243_vm0, %v1602_v48 }
  0x4d   : > { %1419 = vmatmul.mubr.msk.bf16.vlgmr.msra.gmra.mxu1 %vm243_vm0, %v1540_v20  ;;  %1432 = vmatprep.mubr.msk.bf16.mxu0 %vm243_vm0, %v409_v55 }
  0x4e   : > { %1422 = vmatprep.mubr.msk.bf16.mxu1 %vm243_vm0, %v1555_v25 }
  0x54   : > { %1433 = vmatmul.mubr.msk.bf16.gmra.mxu0 %vm243_vm0, %v993_v18 }
  0x55   : > { %1423 = vmatmul.mubr.msk.bf16.gmra.mxu1 %vm243_vm0, %v896_v19 }
  0xd4   : > { %v1350_v21 = vpop.f32.mrf.mxu0 }
  0xd5   : > { %v1673_v22 = vpop.f32.mrf.mxu1 }
  0xd6   : > { %v290_v23 = vpop.f32.mrf.mxu0 }
  0xd7   : > { %v306_v24 = vpop.f32.mrf.mxu1 }
  0xd8   : > { %v1351_v26 = vpop.f32.mrf.mxu0 }
  0xd9   : > { %v1675_v20 = vpop.f32.mrf.mxu1 }
  0xda   : > { %v293_v27 = vpop.f32.mrf.mxu0 }
  0xdb   : > { %v1677_v28 = vpop.f32.mrf.mxu1 }
  0xdc   : > { %v1370_v29 = vpop.f32.mrf.mxu0 }
  0xdd   : > { %v1360_v25 = vpop.f32.mrf.mxu1 }
  0xde   : > { %v456_v30 = vpop.f32.mrf.mxu0  ;;  %v376_v60 = vadd.f32 %v1360_v25, %v1350_v21 }
  0xdf   : > { %v367_v31 = vpop.f32.mrf.mxu1 }
  0xe0   : > { %v1371_v32 = vpop.f32.mrf.mxu0  ;;  %v368_v63 = vadd.f32 %v367_v31, %v290_v23  ;;  %v489_v2 = vadd.f32 %v1370_v29, %v376_v60 }
  0xe1   : > { %v1361_v33 = vpop.f32.mrf.mxu1 }
  0xe2   : > { %v459_v34 = vpop.f32.mrf.mxu0  ;;  %v379_v3 = vadd.f32 %v1361_v33, %v1351_v26  ;;  %v487_v6 = vadd.f32 %v456_v30, %v368_v63 }
  0xe3   : > { %v370_v35 = vpop.f32.mrf.mxu1 }
  0xe4   : > { %v1374_v36 = vpop.f32.mrf.mxu0  ;;  %v371_v7 = vadd.f32 %v370_v35, %v293_v27  ;;  %v490_v11 = vadd.f32 %v1371_v32, %v379_v3 }
  0xe5   : > { %v1364_v37 = vpop.f32.mrf.mxu1 }
  0xe6   : > { %v472_v38 = vpop.f32.mrf.mxu0  ;;  %v488_v16 = vadd.f32 %v459_v34, %v371_v7  ;;  %v392_v21 = vadd.f32 %v1364_v37, %v1673_v22 }
  0xe7   : > { %v383_v39 = vpop.f32.mrf.mxu1 }
  0xe8   : > { %v1679_v40 = vpop.f32.mrf.mxu0  ;;  %v384_v14 = vadd.f32 %v383_v39, %v306_v24  ;;  %v493_v39 = vadd.f32 %v1374_v36, %v392_v21 }
  0xe9   : > { %v1365_v41 = vpop.f32.mrf.mxu1 }
  0xea   : > { %v1681_v42 = vpop.f32.mrf.mxu0  ;;  %v491_v30 = vadd.f32 %v472_v38, %v384_v14  ;;  %v395_v34 = vadd.f32 %v1365_v41, %v1675_v20 }
  0xeb   : > { %v386_v43 = vpop.f32.mrf.mxu1 }
  0xec   : > { %v1390_v44 = vpop.f32.mrf.mxu0  ;;  %v387_v32 = vadd.f32 %v386_v43, %v1677_v28  ;;  %v494_v43 = vadd.f32 %v1679_v40, %v395_v34  ;;  %v1082_v34 = vld [vmem:[%s1718_s6 + $0x18] sm:$0xff] }
  0xed   : > { %v1380_v45 = vpop.f32.mrf.mxu1 }
  0xee   : > { %v651_v46 = vpop.f32.mrf.mxu0  ;;  %v587_v8 = vadd.f32 %v1380_v45, %v489_v2  ;;  %v492_v60 = vadd.f32 %v1681_v42, %v387_v32 }
  0xef   : > { %v554_v47 = vpop.f32.mrf.mxu1 }
  0xf0   : > { %v1391_v48 = vpop.f32.mrf.mxu0  ;;  %v585_v12 = vadd.f32 %v554_v47, %v487_v6  ;;  %v684_v17 = vadd.f32 %v1390_v44, %v587_v8 }
  0xf1   : > { %v1381_v49 = vpop.f32.mrf.mxu1 }
  0xf2   : > { %v654_v50 = vpop.f32.mrf.mxu0  ;;  %v588_v18 = vadd.f32 %v1381_v49, %v490_v11  ;;  %v682_v26 = vadd.f32 %v651_v46, %v585_v12 }
  0xf3   : > { %v557_v51 = vpop.f32.mrf.mxu1 }
  0xf4   : > { %v1683_v52 = vpop.f32.mrf.mxu0  ;;  %v586_v29 = vadd.f32 %v557_v51, %v488_v16  ;;  %v685_v33 = vadd.f32 %v1391_v48, %v588_v18 }
  0xf5   : > { %v1384_v53 = vpop.f32.mrf.mxu1 }
  0xf6   : > { %v667_v54 = vpop.f32.mrf.mxu0  ;;  %v683_v47 = vadd.f32 %v654_v50, %v586_v29  ;;  %v591_v49 = vadd.f32 %v1384_v53, %v493_v39 }
  0xf7   : > { %v570_v55 = vpop.f32.mrf.mxu1 }
  0xf8   : > { %v1685_v56 = vpop.f32.mrf.mxu0  ;;  %v589_v44 = vadd.f32 %v570_v55, %v491_v30 }
  0xf9   : > { %v1687_v57 = vpop.f32.mrf.mxu1 }
  0xfa   : > { %v1689_v58 = vpop.f32.mrf.mxu0  ;;  %v686_v48 = vadd.f32 %v667_v54, %v589_v44  ;;  %v592_v53 = vadd.f32 %v1687_v57, %v494_v43 }
  0xfb   : > { %v573_v59 = vpop.f32.mrf.mxu1 }
  0xfc   : > { %v1410_v61 = vpop.f32.mrf.mxu0  ;;  %v689_v57 = vadd.f32 %v1685_v56, %v592_v53 }
  0xfd   : > { %v1400_v62 = vpop.f32.mrf.mxu1 }
  0xfe   : > { %v846_v0 = vpop.f32.mrf.mxu0  ;;  %v781_v25 = vadd.f32 %v1400_v62, %v684_v17 }
  0xff   : > { %v748_v1 = vpop.f32.mrf.mxu1 }
 0x100   : > { %v1411_v4 = vpop.f32.mrf.mxu0  ;;  %v779_v35 = vadd.f32 %v748_v1, %v682_v26  ;;  %v879_v22 = vadd.f32 %v1410_v61, %v781_v25  ;;  %v590_v1 = vadd.f32 %v573_v59, %v492_v60  ;;  %v688_v61 = vadd.f32 %v1683_v52, %v591_v49  ;;  %v1083_v49 = vld [vmem:[%s1718_s6 + $0x20] sm:$0xff] }
 0x101   : > { %v1401_v5 = vpop.f32.mrf.mxu1 }
 0x102   : > { %v849_v9 = vpop.f32.mrf.mxu0  ;;  %v782_v37 = vadd.f32 %v1401_v5, %v685_v33  ;;  %v877_v38 = vadd.f32 %v846_v0, %v779_v35  ;;  %v687_v59 = vadd.f32 %v1689_v58, %v590_v1  ;;  %v1079_v35 = vld [vmem:[%s1718_s6] sm:$0xff] }
 0x103   : > { %v751_v10 = vpop.f32.mrf.mxu1 }
 0x104   : > { %v1691_v13 = vpop.f32.mrf.mxu0  ;;  %v780_v62 = vadd.f32 %v751_v10, %v683_v47  ;;  %v880_v20 = vadd.f32 %v1411_v4, %v782_v37  ;;  %v1080_v47 = vld [vmem:[%s1718_s6 + $0x8] sm:$0xff] }
 0x105   : > { %v1404_v15 = vpop.f32.mrf.mxu1 }
 0x106   : > { %v862_v19 = vpop.f32.mrf.mxu0  ;;  %v878_v3 = vadd.f32 %v849_v9, %v780_v62  ;;  %v785_v4 = vadd.f32 %v1404_v15, %v688_v61  ;;  %v1085_v62 = vld [vmem:[%s1718_s6 + $0x30] sm:$0xff] }
 0x107   : > { %v764_v23 = vpop.f32.mrf.mxu1 }
 0x108   : > { %v1694_v27 = vpop.f32.mrf.mxu0  ;;  %v783_v42 = vadd.f32 %v764_v23, %v686_v48  ;;  %v883_v16 = vadd.f32 %v1691_v13, %v785_v4 }
 0x109   : > { %v1405_v31 = vpop.f32.mrf.mxu1 }
 0x10a   : > { %v865_v24 = vpop.f32.mrf.mxu0  ;;  %v881_v9 = vadd.f32 %v862_v19, %v783_v42  ;;  %v786_v17 = vadd.f32 %v1405_v31, %v689_v57 }
 0x10b   : > { %v767_v45 = vpop.f32.mrf.mxu1 }
 0x10c   : > { %v1430_v46 = vpop.f32.mrf.mxu0  ;;  %v784_v10 = vadd.f32 %v767_v45, %v687_v59  ;;  %v884_v19 = vadd.f32 %v1694_v27, %v786_v17  ;;  %v1081_v27 = vld [vmem:[%s1718_s6 + $0x10] sm:$0xff] }
 0x10d   : > { %v1420_v51 = vpop.f32.mrf.mxu1 }
 0x10e   : > { %v976_v63 = vadd.f32 %v1420_v51, %v879_v22  ;;  %v1040_v28 = vpop.f32.mrf.mxu0  ;;  %v882_v21 = vadd.f32 %v865_v24, %v784_v10 }
 0x10f   : > { %v943_v36 = vpop.f32.mrf.mxu1 }
 0x110   : > { %v1073_v41 = vadd.f32 %v1430_v46, %v976_v63  ;;  %v974_v55 = vadd.f32 %v943_v36, %v877_v38  ;;  %v1431_v50 = vpop.f32.mrf.mxu0  ;;  %v1084_v38 = vld [vmem:[%s1718_s6 + $0x28] sm:$0xff]  ;;  %v1086_v36 = vld [vmem:[%s1718_s6 + $0x38] sm:$0xff] }
 0x111   : > { %v1421_v2 = vpop.f32.mrf.mxu1 }
 0x112   : > { %v1071_v0 = vadd.f32 %v1040_v28, %v974_v55  ;;  %v977_v5 = vadd.f32 %v1421_v2, %v880_v20  ;;  %1099 = vrot.lane.b32.xlu1 %v1073_v41, %s1456_s29  ;;  %v1043_v40 = vpop.f32.mrf.mxu0 }
 0x113   : > { %v946_v54 = vpop.f32.mrf.mxu1 }
 0x114   : > { %v1074_v6 = vadd.f32 %v1431_v50, %v977_v5  ;;  %v975_v7 = vadd.f32 %v946_v54, %v878_v3  ;;  %1095 = vrot.lane.b32.xlu0 %v1071_v0, %s1456_s29  ;;  %v1434_v52 = vpop.f32.mrf.mxu0 }
 0x115   : > { %v1424_v8 = vpop.f32.mrf.mxu1 }
 0x116   : > { %v1072_v11 = vadd.f32 %v1043_v40, %v975_v7  ;;  %1101 = vrot.lane.b32.xlu1 %v1074_v6, %s1456_s29  ;;  %v1056_v12 = vpop.f32.mrf.mxu0  ;;  %v980_v23 = vadd.f32 %v1424_v8, %v883_v16 }
 0x117   : > { %v959_v14 = vpop.f32.mrf.mxu1 }
 0x118   : > { %v978_v58 = vadd.f32 %v959_v14, %v881_v9  ;;  %1097 = vrot.lane.b32.xlu0 %v1072_v11, %s1456_s29  ;;  %v1435_v18 = vpop.f32.mrf.mxu0  ;;  %v1077_v30 = vadd.f32 %v1434_v52, %v980_v23 }
 0x119   : > { %v1425_v15 = vpop.f32.mrf.mxu1 }
 0x11a   : > { %v1075_v26 = vadd.f32 %v1056_v12, %v978_v58  ;;  %v1059_v25 = vpop.f32.mrf.mxu0  ;;  %v981_v32 = vadd.f32 %v1425_v15, %v884_v19 }
 0x11b   : > { %v962_v56 = vpop.f32.mrf.mxu1 }
 0x11c   : > { %v979_v29 = vadd.f32 %v962_v56, %v882_v21  ;;  %1103 = vrot.lane.b32.xlu0 %v1075_v26, %s1456_s29  ;;  %v1078_v31 = vadd.f32 %v1435_v18, %v981_v32 }
 0x11e   : > { %v1076_v13 = vadd.f32 %v1059_v25, %v979_v29 }
 0x120   : > { %1105 = vrot.lane.b32.xlu1 %v1076_v13, %s1456_s29  ;;  %1107 = vrot.lane.b32.xlu0 %v1077_v30, %s1456_s29 }
 0x124   : > { %1109 = vrot.lane.b32.xlu1 %v1078_v31, %s1456_s29 }
 0x184   : > { %v1100_v33 = vpop.permute.xlu1 %1099 }
 0x185   : > { %v1121_v24 = vsel %vm243_vm0, %v1081_v27, %v1100_v33 }
 0x186   : > { %1130 = vst.msk [vmem:[%s1724_s9 + $0x10] sm:$0xff] %vm1127_vm1, %v1121_v24  ;;  %v1096_v39 = vpop.permute.xlu0 %1095 }
 0x187   : > { %v1119_v44 = vsel %vm243_vm0, %v1079_v35, %v1096_v39 }
 0x188   : > { %1128 = vst.msk [vmem:[%s1724_s9] sm:$0xff] %vm1127_vm1, %v1119_v44  ;;  %v1102_v45 = vpop.permute.xlu1 %1101 }
 0x189   : > { %v1122_v22 = vsel %vm243_vm0, %v1082_v34, %v1102_v45 }
 0x18a   : > { %1131 = vst.msk [vmem:[%s1724_s9 + $0x18] sm:$0xff] %vm1127_vm1, %v1122_v22  ;;  %v1098_v37 = vpop.permute.xlu0 %1097 }
 0x18b   : > { %v1120_v46 = vsel %vm243_vm0, %v1080_v47, %v1098_v37 }
 0x18c   : > { %1129 = vst.msk [vmem:[%s1724_s9 + $0x8] sm:$0xff] %vm1127_vm1, %v1120_v46 }
 0x18e   : > { %v1104_v51 = vpop.permute.xlu0 %1103 }
 0x18f   : > { %v1123_v60 = vsel %vm243_vm0, %v1083_v49, %v1104_v51 }
 0x190   : > { %1132 = vst.msk [vmem:[%s1724_s9 + $0x20] sm:$0xff] %vm1127_vm1, %v1123_v60 }
 0x192   : > { %v1106_v63 = vpop.permute.xlu1 %1105  ;;  %v1108_v28 = vpop.permute.xlu0 %1107 }
 0x193   : > { %v1124_v43 = vsel %vm243_vm0, %v1084_v38, %v1106_v63  ;;  %v1125_v48 = vsel %vm243_vm0, %v1085_v62, %v1108_v28 }
 0x194   : > { %1133 = vst.msk [vmem:[%s1724_s9 + $0x28] sm:$0xff] %vm1127_vm1, %v1124_v43  ;;  %1134 = vst.msk [vmem:[%s1724_s9 + $0x30] sm:$0xff] %vm1127_vm1, %v1125_v48 }
 0x196   : > { %v1110_v1 = vpop.permute.xlu1 %1109 }
 0x197   : > { %v1126_v20 = vsel %vm243_vm0, %v1086_v36, %v1110_v1 }
 0x198   : > { %1135 = vst.msk [vmem:[%s1724_s9 + $0x38] sm:$0xff] %vm1127_vm1, %v1126_v20 }
 0x199 PF: > { %s13_s12 = sadd.s32 1, %s1454_s12  }
 0x19a   : > { %p10_p4 = scmp.ge.s32.totalorder %s13_s12, 4  }
 0x19c   :  { %12 = sbr.rel (!%p10_p4) target bundleno = 1 (0x1), region = 67 }

// kernel: encoder_forward.14
= control target key start
LH: loop header
LB: loop body
LE: loop exit
PB: predicated region body
PF: predicated region fallthrough
CT: control target
= control target key end

     0   :  { %vm140_vm0 = vcmask 1043456   ;;  %vm115_vm1 = vcmask 195584   ;;  %vm303_vm2 = vcmask 130048   ;;  %s620_s1 = inlined_call_operand.vmem [shape: f32[24,16], index: 1, kind: input, shape index: {}]   ;;  %s621_s0 = inlined_call_operand.vmem [shape: f32[128,24], index: 0, kind: input, shape index: {}]   ;;  %s622_s2 = inlined_call_operand.vmem [shape: f32[1,24], index: 2, kind: input, shape index: {}]   ;;  %s623_s3 = inlined_call_operand.vmem [shape: f32[1,24], index: 3, kind: input, shape index: {}]   ;;  %s624_s4 = inlined_call_operand.vmem [shape: f32[1,16], index: 4, kind: input, shape index: {}]   ;;  %s625_s5 = inlined_call_operand.vmem [shape: f32[1,16], index: 5, kind: input, shape index: {}]   ;;  %s626_s6 = inlined_call_operand.vmem [shape: f32[128,16], index: 6, kind: output, shape index: {}]  }
   0x1   :  { %v112_v0 = vld [vmem:[%s620_s1 + $0x10] sm:$0xff]  ;;  %v110_v1 = vld [vmem:[%s620_s1] sm:$0xff]  ;;  %v111_v2 = vld [vmem:[%s620_s1 + $0x8] sm:$0xff] }
   0x2   :  { %v114_v3 = vpack.c.bf16 %v112_v0, %v112_v0  ;;  %v113_v4 = vpack.c.bf16 %v111_v2, %v110_v1  ;;  %v24_v5 = vld [vmem:[%s621_s0] sm:$0xff]  ;;  %v25_v6 = vld [vmem:[%s621_s0 + $0x8] sm:$0xff]  ;;  %v26_v16 = vld [vmem:[%s621_s0 + $0x10] sm:$0xff] }
   0x3   :  { %v425_v7 = vld [vmem:[%s622_s2] ss:$0 sm:$0xff]  ;;  %v33_v12 = vld [vmem:[%s621_s0 + $0x48] sm:$0xff]  ;;  %v27_v17 = vld [vmem:[%s621_s0 + $0x18] sm:$0xff] }
   0x4   :  { %v47_v8 = vmul.f32 %v425_v7, %v24_v5  ;;  %v48_v9 = vmul.f32 %v425_v7, %v25_v6  ;;  %v432_v10 = vld [vmem:[%s623_s3] ss:$0 sm:$0xff]  ;;  %370 = vmatprep.subr.msk.bf16.mxu0 %vm140_vm0, %v114_v3  ;;  %371 = vmatprep.subr.msk.bf16.mxu1 %vm140_vm0, %v114_v3  ;;  %v142_v13 = vsel %vm140_vm0, %v114_v3, 0  ;;  %v56_v15 = vmul.f32 %v425_v7, %v33_v12  ;;  %v34_v18 = vld [vmem:[%s621_s0 + $0x50] sm:$0xff]  ;;  %v35_v22 = vld [vmem:[%s621_s0 + $0x58] sm:$0xff] }
   0x5   :  { %v32_v11 = vld [vmem:[%s621_s0 + $0x40] sm:$0xff]  ;;  %347 = vmatpush3.bf16.msra.mxu0 %v142_v13  ;;  %368 = vmatpush3.bf16.msra.mxu1 %v142_v13  ;;  %v49_v21 = vmul.f32 %v425_v7, %v26_v16  ;;  %v50_v25 = vmul.f32 %v425_v7, %v27_v17  ;;  %v57_v30 = vmul.f32 %v425_v7, %v34_v18  ;;  %v29_v31 = vld [vmem:[%s621_s0 + $0x28] sm:$0xff]  ;;  %v30_v42 = vld [vmem:[%s621_s0 + $0x30] sm:$0xff] }
   0x6   :  { %v55_v14 = vmul.f32 %v425_v7, %v32_v11  ;;  %v70_v19 = vadd.f32 %v432_v10, %v47_v8  ;;  %v71_v20 = vadd.f32 %v432_v10, %v48_v9  ;;  %348 = vmatprep.subr.bf16.mxu0 %v113_v4  ;;  %367 = vmatprep.subr.bf16.mxu1 %v113_v4  ;;  %v28_v26 = vld [vmem:[%s621_s0 + $0x20] sm:$0xff]  ;;  %v37_v37 = vld [vmem:[%s621_s0 + $0x68] sm:$0xff]  ;;  %v31_v47 = vld [vmem:[%s621_s0 + $0x38] sm:$0xff] }
   0x7   :  { %v79_v24 = vadd.f32 %v432_v10, %v56_v15  ;;  %v72_v29 = vadd.f32 %v432_v10, %v49_v21  ;;  %v73_v34 = vadd.f32 %v432_v10, %v50_v25  ;;  %v58_v35 = vmul.f32 %v425_v7, %v35_v22  ;;  %v36_v36 = vld [vmem:[%s621_s0 + $0x60] sm:$0xff]  ;;  %v38_v52 = vld [vmem:[%s621_s0 + $0x70] sm:$0xff]  ;;  %v39_v57 = vld [vmem:[%s621_s0 + $0x78] sm:$0xff] }
   0x8   :  { %v78_v23 = vadd.f32 %v432_v10, %v55_v14  ;;  %v86_v27 = vmax.f32 %v70_v19, 0.0  ;;  %v87_v28 = vmax.f32 %v71_v20, 0.0  ;;  %v80_v40 = vadd.f32 %v432_v10, %v57_v30 }
   0x9   :  { %v95_v33 = vmax.f32 %v79_v24, 0.0  ;;  %349 = vmatpush3.bf16.msra.mxu0 %v113_v4  ;;  %369 = vmatpush3.bf16.msra.mxu1 %v113_v4  ;;  %v88_v39 = vmax.f32 %v72_v29, 0.0  ;;  %v51_v41 = vmul.f32 %v425_v7, %v28_v26  ;;  %v89_v44 = vmax.f32 %v73_v34, 0.0 }
   0xa   :  { %v94_v32 = vmax.f32 %v78_v23, 0.0  ;;  %v102_v38 = vpack.c.bf16 %v87_v28, %v86_v27  ;;  %v81_v45 = vadd.f32 %v432_v10, %v58_v35  ;;  %v52_v46 = vmul.f32 %v425_v7, %v29_v31 }
   0xb   :  { %v96_v48 = vmax.f32 %v80_v40, 0.0  ;;  %v74_v49 = vadd.f32 %v432_v10, %v51_v41  ;;  %v59_v50 = vmul.f32 %v425_v7, %v36_v36  ;;  %v60_v51 = vmul.f32 %v425_v7, %v37_v37 }
   0xc   :  { %v106_v43 = vpack.c.bf16 %v95_v33, %v94_v32  ;;  %350 = vmatprep.mubr.msk.bf16.mxu0 %vm115_vm1, %v102_v38  ;;  %v103_v53 = vpack.c.bf16 %v89_v44, %v88_v39  ;;  %v97_v54 = vmax.f32 %v81_v45, 0.0  ;;  %v75_v55 = vadd.f32 %v432_v10, %v52_v46 }
   0xd   :  { %v53_v56 = vmul.f32 %v425_v7, %v30_v42  ;;  %v90_v58 = vmax.f32 %v74_v49, 0.0  ;;  %v82_v59 = vadd.f32 %v432_v10, %v59_v50  ;;  %v83_v60 = vadd.f32 %v432_v10, %v60_v51 }
   0xe   :  { %358 = vmatprep.mubr.msk.bf16.mxu1 %vm115_vm1, %v106_v43  ;;  %v54_v61 = vmul.f32 %v425_v7, %v31_v47  ;;  %351 = vmatmul.mubr.msk.bf16.vlgmr.msra.gmra.mxu0 %vm115_vm1, %v103_v53  ;;  %v107_v62 = vpack.c.bf16 %v97_v54, %v96_v48  ;;  %v91_v63 = vmax.f32 %v75_v55, 0.0  ;;  %v61_v1 = vmul.f32 %v425_v7, %v38_v52 }
   0xf   :  { %v76_v0 = vadd.f32 %v432_v10, %v53_v56  ;;  %v98_v2 = vmax.f32 %v82_v59, 0.0  ;;  %v99_v3 = vmax.f32 %v83_v60, 0.0  ;;  %v62_v5 = vmul.f32 %v425_v7, %v39_v57  ;;  %v517_v7 = vld [vmem:[%s624_s4] ss:$0 sm:$0xff] }
  0x10   :  { %v77_v4 = vadd.f32 %v432_v10, %v54_v61  ;;  %359 = vmatmul.mubr.msk.bf16.vlgmr.msra.gmra.mxu1 %vm115_vm1, %v107_v62  ;;  %v104_v6 = vpack.c.bf16 %v91_v63, %v90_v58  ;;  %v84_v9 = vadd.f32 %v432_v10, %v61_v1 }
  0x11   :  { %v92_v8 = vmax.f32 %v76_v0, 0.0  ;;  %v108_v11 = vpack.c.bf16 %v99_v3, %v98_v2  ;;  %v85_v13 = vadd.f32 %v432_v10, %v62_v5  ;;  %v522_v10 = vld [vmem:[%s625_s5] ss:$0 sm:$0xff] }
  0x12   :  { %v93_v12 = vmax.f32 %v77_v4, 0.0  ;;  %354 = vmatprep.mubr.msk.bf16.mxu0 %vm115_vm1, %v104_v6  ;;  %v100_v14 = vmax.f32 %v84_v9, 0.0 }
  0x13   :  { %362 = vmatprep.mubr.msk.bf16.mxu1 %vm115_vm1, %v108_v11  ;;  %v101_v16 = vmax.f32 %v85_v13, 0.0 }
  0x14   :  { %v105_v15 = vpack.c.bf16 %v93_v12, %v92_v8 }
  0x15   :  { %v109_v17 = vpack.c.bf16 %v101_v16, %v100_v14 }
  0x16   :  { %355 = vmatmul.mubr.msk.bf16.gmra.mxu0 %vm115_vm1, %v105_v15 }
  0x18   :  { %363 = vmatmul.mubr.msk.bf16.gmra.mxu1 %vm115_vm1, %v109_v17 }
  0xce   :  { %v352_v18 = vpop.f32.mrf.mxu0 }
  0xcf   :  { %v250_v19 = vmul.f32 %v352_v18, %v517_v7 }
  0xd0   :  { %v360_v20 = vpop.f32.mrf.mxu1  ;;  %v178_v21 = vpop.f32.mrf.mxu0 }
  0xd1   :  { %v273_v22 = vadd.f32 %v522_v10, %v250_v19  ;;  %v258_v23 = vmul.f32 %v360_v20, %v517_v7  ;;  %v248_v24 = vmul.f32 %v517_v7, %v178_v21 }
  0xd2   :  { %v210_v25 = vpop.f32.mrf.mxu1  ;;  %v353_v26 = vpop.f32.mrf.mxu0 }
  0xd3   :  { %v289_v27 = vmax.f32 %v273_v22, 0.0  ;;  %v281_v28 = vadd.f32 %v522_v10, %v258_v23  ;;  %v271_v29 = vadd.f32 %v522_v10, %v248_v24  ;;  %v256_v30 = vmul.f32 %v517_v7, %v210_v25 }
  0xd4   :  { %v251_v31 = vmul.f32 %v353_v26, %v517_v7  ;;  %v361_v32 = vpop.f32.mrf.mxu1  ;;  %v181_v33 = vpop.f32.mrf.mxu0 }
  0xd5   :  { %306 = vst.msk [vmem:[%s626_s6 + $0x10] sm:$0xff] %vm303_vm2, %v289_v27  ;;  %v297_v34 = vmax.f32 %v281_v28, 0.0  ;;  %v287_v35 = vmax.f32 %v271_v29, 0.0  ;;  %v279_v36 = vadd.f32 %v522_v10, %v256_v30  ;;  %v259_v37 = vmul.f32 %v361_v32, %v517_v7 }
  0xd6   :  { %v274_v38 = vadd.f32 %v522_v10, %v251_v31  ;;  %v249_v39 = vmul.f32 %v517_v7, %v181_v33  ;;  %v213_v40 = vpop.f32.mrf.mxu1  ;;  %v356_v41 = vpop.f32.mrf.mxu0 }
  0xd7   :  { %314 = vst.msk [vmem:[%s626_s6 + $0x50] sm:$0xff] %vm303_vm2, %v297_v34  ;;  %304 = vst.msk [vmem:[%s626_s6] sm:$0xff] %vm303_vm2, %v287_v35  ;;  %v295_v42 = vmax.f32 %v279_v36, 0.0  ;;  %v282_v43 = vadd.f32 %v522_v10, %v259_v37  ;;  %v257_v44 = vmul.f32 %v517_v7, %v213_v40  ;;  %v254_v45 = vmul.f32 %v356_v41, %v517_v7 }
  0xd8   :  { %v290_v46 = vmax.f32 %v274_v38, 0.0  ;;  %v272_v47 = vadd.f32 %v522_v10, %v249_v39  ;;  %v364_v48 = vpop.f32.mrf.mxu1  ;;  %v194_v49 = vpop.f32.mrf.mxu0 }
  0xd9   :  { %312 = vst.msk [vmem:[%s626_s6 + $0x40] sm:$0xff] %vm303_vm2, %v295_v42  ;;  %v298_v50 = vmax.f32 %v282_v43, 0.0  ;;  %v280_v51 = vadd.f32 %v522_v10, %v257_v44  ;;  %v277_v52 = vadd.f32 %v522_v10, %v254_v45  ;;  %v262_v53 = vmul.f32 %v364_v48, %v517_v7 }
  0xda   :  { %307 = vst.msk [vmem:[%s626_s6 + $0x18] sm:$0xff] %vm303_vm2, %v290_v46  ;;  %v288_v54 = vmax.f32 %v272_v47, 0.0  ;;  %v252_v55 = vmul.f32 %v517_v7, %v194_v49  ;;  %v226_v56 = vpop.f32.mrf.mxu1  ;;  %v357_v57 = vpop.f32.mrf.mxu0 }
  0xdb   :  { %315 = vst.msk [vmem:[%s626_s6 + $0x58] sm:$0xff] %vm303_vm2, %v298_v50  ;;  %v296_v58 = vmax.f32 %v280_v51, 0.0  ;;  %v293_v59 = vmax.f32 %v277_v52, 0.0  ;;  %v285_v60 = vadd.f32 %v522_v10, %v262_v53  ;;  %v260_v61 = vmul.f32 %v517_v7, %v226_v56 }
  0xdc   :  { %305 = vst.msk [vmem:[%s626_s6 + $0x8] sm:$0xff] %vm303_vm2, %v288_v54  ;;  %v275_v62 = vadd.f32 %v522_v10, %v252_v55  ;;  %v255_v63 = vmul.f32 %v357_v57, %v517_v7  ;;  %v365_v0 = vpop.f32.mrf.mxu1  ;;  %v197_v1 = vpop.f32.mrf.mxu0 }
  0xdd   :  { %313 = vst.msk [vmem:[%s626_s6 + $0x48] sm:$0xff] %vm303_vm2, %v296_v58  ;;  %310 = vst.msk [vmem:[%s626_s6 + $0x30] sm:$0xff] %vm303_vm2, %v293_v59  ;;  %v301_v2 = vmax.f32 %v285_v60, 0.0  ;;  %v283_v3 = vadd.f32 %v522_v10, %v260_v61  ;;  %v263_v4 = vmul.f32 %v365_v0, %v517_v7  ;;  %v253_v5 = vmul.f32 %v517_v7, %v197_v1 }
  0xde   :  { %v291_v6 = vmax.f32 %v275_v62, 0.0  ;;  %v278_v8 = vadd.f32 %v522_v10, %v255_v63  ;;  %v229_v9 = vpop.f32.mrf.mxu1 }
  0xdf   :  { %318 = vst.msk [vmem:[%s626_s6 + $0x70] sm:$0xff] %vm303_vm2, %v301_v2  ;;  %v299_v11 = vmax.f32 %v283_v3, 0.0  ;;  %v286_v12 = vadd.f32 %v522_v10, %v263_v4  ;;  %v276_v13 = vadd.f32 %v522_v10, %v253_v5  ;;  %v261_v14 = vmul.f32 %v517_v7, %v229_v9 }
  0xe0   :  { %308 = vst.msk [vmem:[%s626_s6 + $0x20] sm:$0xff] %vm303_vm2, %v291_v6  ;;  %v294_v15 = vmax.f32 %v278_v8, 0.0 }
  0xe1   :  { %316 = vst.msk [vmem:[%s626_s6 + $0x60] sm:$0xff] %vm303_vm2, %v299_v11  ;;  %v302_v16 = vmax.f32 %v286_v12, 0.0  ;;  %v292_v17 = vmax.f32 %v276_v13, 0.0  ;;  %v284_v18 = vadd.f32 %v522_v10, %v261_v14 }
  0xe2   :  { %311 = vst.msk [vmem:[%s626_s6 + $0x38] sm:$0xff] %vm303_vm2, %v294_v15 }
  0xe3   :  { %319 = vst.msk [vmem:[%s626_s6 + $0x78] sm:$0xff] %vm303_vm2, %v302_v16  ;;  %309 = vst.msk [vmem:[%s626_s6 + $0x28] sm:$0xff] %vm303_vm2, %v292_v17  ;;  %v300_v7 = vmax.f32 %v284_v18, 0.0 }
  0xe5   :  { %317 = vst.msk [vmem:[%s626_s6 + $0x68] sm:$0xff] %vm303_vm2, %v300_v7 }

// kernel: encoder_forward.15
= control target key start
LH: loop header
LB: loop body
LE: loop exit
PB: predicated region body
PF: predicated region fallthrough
CT: control target
= control target key end

     0   :  { %s1478_s12 = smov 0   ;;  %s1761_s0 = inlined_call_operand.vmem [shape: f32[2,8,8,24], index: 0, kind: input, shape index: {}]   ;;  %s1762_s1 = inlined_call_operand.vmem [shape: f32[2,10,10,16], index: 1, kind: input, shape index: {}]   ;;  %s1763_s2 = inlined_call_operand.vmem [shape: f32[3,3,16,8], index: 2, kind: input, shape index: {}]   ;;  %s1764_s3 = inlined_call_operand.vmem [shape: f32[2,8,8,32], index: 3, kind: output, shape index: {}]  }
   0x1 LB: > { %s1204_s13 = sadd.s32 4294967295, %s1455_s12   ;;  %p1208_p0 = scmp.ge.s32.totalorder %s1455_s12, 1  ;;  %s1455_s12 = sphi %s1478_s12, %s13_s12  }
   0x2   : > { %p147_p1 = scmp.lt.s32.totalorder %s1455_s12, 3 }
   0x4   : > { %p148_p2 = pnand %p1208_p0, %p147_p1 }
   0x5   : > { %p176_p3 = scmp.lt.s32.totalorder (!%p148_p2), %s1204_s13, 1  ;;  %s1457_s29 = smov (!%p148_p2), 24  }
   0x6   : > { %151 = sbr.rel (%p148_p2) target bundleno = 409 (0x199), region = 32 }
   0xb   : > { %v194_v0 = vld [vmem:[%s1763_s2 + $0x10] sm:$0xff]  ;;  %v195_v1 = vld [vmem:[%s1763_s2 + $0x18] sm:$0xff]  ;;  %v192_v2 = vld [vmem:[%s1763_s2] sm:$0xff]  ;;  %s1766_s13 = smov (!%p176_p3, %s1204_s13), 1  ;;  %vm243_vm0 = vcmask 130048   ;;  %vm1119_vm1 = vcmask 195584  }
   0xc   : > { %v211_v3 = vpack.c.bf16 %v195_v1, %v194_v0  ;;  %v193_v4 = vld [vmem:[%s1763_s2 + $0x8] sm:$0xff]  ;;  %v196_v5 = vld [vmem:[%s1763_s2 + $0x20] sm:$0xff]  ;;  %s1439_s26 = smul.u32 160, %s1766_s13  ;;  %v198_v9 = vld [vmem:[%s1763_s2 + $0x30] sm:$0xff]  ;;  %s1300_s30 = sshll.u32 %s1766_s13, 6  ;;  %vm1128_vm2 = vcmask 261120  }
   0xd   : > { %v197_v6 = vld [vmem:[%s1763_s2 + $0x28] sm:$0xff]  ;;  %v210_v7 = vpack.c.bf16 %v193_v4, %v192_v2  ;;  %v199_v10 = vld [vmem:[%s1763_s2 + $0x38] sm:$0xff]  ;;  %v200_v11 = vld [vmem:[%s1763_s2 + $0x40] sm:$0xff]  ;;  %s1719_s6 = scalar_lea.vmem %s1761_s0, %s1300_s30  ;;  %s1725_s9 = scalar_lea.vmem %s1764_s3, %s1300_s30 }
   0xe   : > { %v212_v8 = vpack.c.bf16 %v197_v6, %v196_v5  ;;  %1437 = vmatprep.subr.bf16.mxu1 %v211_v3  ;;  %1347 = vmatprep.subr.bf16.mxu0 %v211_v3  ;;  %s1513_s4 = scalar_lea.vmem %s1762_s1, %s1439_s26  ;;  %v201_v12 = vld [vmem:[%s1763_s2 + $0x48] sm:$0xff]  ;;  %v213_v29 = vpack.c.bf16 %v199_v10, %v198_v9  ;;  %v202_v39 = vld [vmem:[%s1763_s2 + $0x50] sm:$0xff]  ;;  %v203_v43 = vld [vmem:[%s1763_s2 + $0x58] sm:$0xff] }
   0xf   : > { %1438 = vmatpush3.bf16.msra.mxu1 %v211_v3  ;;  %1348 = vmatpush3.bf16.msra.mxu0 %v211_v3  ;;  %v231_v13 = vld [vmem:[%s1513_s4 + $0x1] sm:$0xff]  ;;  %v1526_v14 = vld [vmem:[%s1513_s4 + $0x11] sm:$0xff]  ;;  %v214_v32 = vpack.c.bf16 %v201_v12, %v200_v11  ;;  %v215_v49 = vpack.c.bf16 %v203_v43, %v202_v39 }
  0x10   : > { %1357 = vmatprep.subr.bf16.mxu1 %v210_v7  ;;  %1367 = vmatprep.subr.bf16.mxu0 %v212_v8  ;;  %v1529_v15 = vld [vmem:[%s1513_s4 + $0x41] sm:$0xff]  ;;  %v239_v16 = vpack.c.bf16 %v1526_v14, %v231_v13  ;;  %v1533_v17 = vld [vmem:[%s1513_s4 + $0x51] sm:$0xff] }
  0x11   : > { %v233_v18 = vld [vmem:[%s1513_s4 + $0x21] sm:$0xff]  ;;  %v1537_v19 = vld [vmem:[%s1513_s4 + $0x31] sm:$0xff]  ;;  %v1541_v20 = vpack.c.bf16 %v1533_v17, %v1529_v15 }
  0x12   : > { %v1544_v21 = vpack.c.bf16 %v1537_v19, %v233_v18  ;;  %v1547_v22 = vld [vmem:[%s1513_s4 + $0x61] sm:$0xff]  ;;  %v1550_v23 = vld [vmem:[%s1513_s4 + $0x71] sm:$0xff]  ;;  %1349 = vmatprep.mubr.msk.bf16.mxu0 %vm243_vm0, %v239_v16  ;;  %v601_v57 = vpack.c.bf16 %v233_v18, %v1526_v14  ;;  %v602_v59 = vpack.c.bf16 %v1529_v15, %v1537_v19 }
  0x13   : > { %v219_v24 = vld [vmem:[%s1513_s4] sm:$0xff]  ;;  %v1556_v25 = vpack.c.bf16 %v1550_v23, %v1547_v22  ;;  %v220_v26 = vld [vmem:[%s1513_s4 + $0x10] sm:$0xff]  ;;  %1353 = vmatprep.mubr.msk.bf16.mxu1 %vm243_vm0, %v1541_v20  ;;  %v205_v46 = vld [vmem:[%s1763_s2 + $0x68] sm:$0xff]  ;;  %v603_v2 = vpack.c.bf16 %v1547_v22, %v1533_v17 }
  0x14   : > { %v398_v27 = vld [vmem:[%s1513_s4 + $0x2] sm:$0xff]  ;;  %v1561_v28 = vld [vmem:[%s1513_s4 + $0x12] sm:$0xff]  ;;  %1350 = vmatmul.mubr.msk.bf16.vlgmr.msra.gmra.mxu0 %vm243_vm0, %v1544_v21  ;;  %v227_v30 = vpack.c.bf16 %v220_v26, %v219_v24 }
  0x15   : > { %v406_v31 = vpack.c.bf16 %v1561_v28, %v398_v27  ;;  %1354 = vmatmul.mubr.msk.bf16.vlgmr.msra.gmra.mxu1 %vm243_vm0, %v1556_v25  ;;  %1368 = vmatpush3.bf16.msra.mxu0 %v212_v8  ;;  %v1571_v33 = vld [vmem:[%s1513_s4 + $0x22] sm:$0xff]  ;;  %v1574_v34 = vld [vmem:[%s1513_s4 + $0x32] sm:$0xff] }
  0x16   : > { %1358 = vmatpush3.bf16.msra.mxu1 %v210_v7  ;;  %1359 = vmatprep.mubr.msk.bf16.mxu1 %vm243_vm0, %v227_v30  ;;  %v221_v35 = vld [vmem:[%s1513_s4 + $0x20] sm:$0xff]  ;;  %v222_v36 = vld [vmem:[%s1513_s4 + $0x30] sm:$0xff]  ;;  %v1587_v40 = vpack.c.bf16 %v1574_v34, %v1571_v33  ;;  %v207_v61 = vld [vmem:[%s1763_s2 + $0x78] sm:$0xff]  ;;  %v698_v9 = vpack.c.bf16 %v1571_v33, %v1561_v28 }
  0x17   : > { %1369 = vmatprep.mubr.msk.bf16.mxu0 %vm243_vm0, %v406_v31  ;;  %1377 = vmatprep.subr.bf16.mxu1 %v213_v29  ;;  %v223_v37 = vld [vmem:[%s1513_s4 + $0x40] sm:$0xff]  ;;  %v224_v38 = vld [vmem:[%s1513_s4 + $0x50] sm:$0xff]  ;;  %v228_v44 = vpack.c.bf16 %v222_v36, %v221_v35  ;;  %v504_v58 = vpack.c.bf16 %v221_v35, %v220_v26  ;;  %v209_v0 = vld [vmem:[%s1763_s2 + $0x88] sm:$0xff] }
  0x18   : > { %1387 = vmatprep.subr.bf16.mxu0 %v214_v32  ;;  %v402_v41 = vld [vmem:[%s1513_s4 + $0x42] sm:$0xff]  ;;  %v1591_v42 = vld [vmem:[%s1513_s4 + $0x52] sm:$0xff]  ;;  %v229_v47 = vpack.c.bf16 %v224_v38, %v223_v37  ;;  %v505_v62 = vpack.c.bf16 %v223_v37, %v222_v36 }
  0x19   : > { %v204_v45 = vld [vmem:[%s1763_s2 + $0x60] sm:$0xff]  ;;  %v1603_v48 = vpack.c.bf16 %v1591_v42, %v402_v41  ;;  %v405_v52 = vld [vmem:[%s1513_s4 + $0x72] sm:$0xff]  ;;  %v699_v10 = vpack.c.bf16 %v402_v41, %v1574_v34 }
  0x1a   : > { %v216_v50 = vpack.c.bf16 %v205_v46, %v204_v45  ;;  %v404_v51 = vld [vmem:[%s1513_s4 + $0x62] sm:$0xff]  ;;  %v226_v54 = vld [vmem:[%s1513_s4 + $0x70] sm:$0xff] }
  0x1b   : > { %v225_v53 = vld [vmem:[%s1513_s4 + $0x60] sm:$0xff]  ;;  %v409_v55 = vpack.c.bf16 %v405_v52, %v404_v51  ;;  %v206_v60 = vld [vmem:[%s1763_s2 + $0x70] sm:$0xff]  ;;  %v700_v11 = vpack.c.bf16 %v404_v51, %v1591_v42 }
  0x1c   : > { %1370 = vmatmul.mubr.msk.bf16.vlgmr.msra.gmra.mxu0 %vm243_vm0, %v1587_v40  ;;  %v230_v56 = vpack.c.bf16 %v226_v54, %v225_v53  ;;  %v208_v63 = vld [vmem:[%s1763_s2 + $0x80] sm:$0xff]  ;;  %v506_v1 = vpack.c.bf16 %v225_v53, %v224_v38  ;;  %v217_v3 = vpack.c.bf16 %v207_v61, %v206_v60  ;;  %v1269_v12 = vld [vmem:[%s1513_s4 + $0x90] sm:$0xff] }
  0x1d   : > { %1360 = vmatmul.mubr.msk.bf16.vlgmr.msra.gmra.mxu1 %vm243_vm0, %v228_v44  ;;  %1388 = vmatpush3.bf16.msra.mxu0 %v214_v32  ;;  %v218_v4 = vpack.c.bf16 %v209_v0, %v208_v63  ;;  %v1245_v5 = vld [vmem:[%s1513_s4 + $0x81] sm:$0xff]  ;;  %v1293_v16 = vld [vmem:[%s1513_s4 + $0x92] sm:$0xff] }
  0x1e   : > { %1378 = vmatpush3.bf16.msra.mxu1 %v213_v29  ;;  %1363 = vmatprep.mubr.msk.bf16.mxu1 %vm243_vm0, %v229_v47  ;;  %v1233_v6 = vld [vmem:[%s1513_s4 + $0x80] sm:$0xff]  ;;  %v604_v7 = vpack.c.bf16 %v1245_v5, %v1550_v23  ;;  %v1281_v17 = vld [vmem:[%s1513_s4 + $0x91] sm:$0xff] }
  0x1f   : > { %1373 = vmatprep.mubr.msk.bf16.mxu0 %vm243_vm0, %v1603_v48  ;;  %1397 = vmatprep.subr.bf16.mxu1 %v215_v49  ;;  %v507_v8 = vpack.c.bf16 %v1233_v6, %v226_v54  ;;  %v1257_v13 = vld [vmem:[%s1513_s4 + $0x82] sm:$0xff]  ;;  %v799_v14 = vpack.c.bf16 %v1269_v12, %v1233_v6  ;;  %v896_v19 = vpack.c.bf16 %v1281_v17, %v1245_v5 }
  0x20   : > { %1407 = vmatprep.subr.bf16.mxu0 %v216_v50  ;;  %v701_v15 = vpack.c.bf16 %v1257_v13, %v405_v52  ;;  %v993_v18 = vpack.c.bf16 %v1293_v16, %v1257_v13 }
  0x24   : > { %1374 = vmatmul.mubr.msk.bf16.gmra.mxu0 %vm243_vm0, %v409_v55 }
  0x25   : > { %1364 = vmatmul.mubr.msk.bf16.gmra.mxu1 %vm243_vm0, %v230_v56  ;;  %1389 = vmatprep.mubr.msk.bf16.mxu0 %vm243_vm0, %v601_v57 }
  0x26   : > { %1379 = vmatprep.mubr.msk.bf16.mxu1 %vm243_vm0, %v504_v58 }
  0x2c   : > { %1390 = vmatmul.mubr.msk.bf16.vlgmr.msra.gmra.mxu0 %vm243_vm0, %v602_v59 }
  0x2d   : > { %1380 = vmatmul.mubr.msk.bf16.vlgmr.msra.gmra.mxu1 %vm243_vm0, %v505_v62  ;;  %1408 = vmatpush3.bf16.msra.mxu0 %v216_v50 }
  0x2e   : > { %1398 = vmatpush3.bf16.msra.mxu1 %v215_v49  ;;  %1383 = vmatprep.mubr.msk.bf16.mxu1 %vm243_vm0, %v506_v1 }
  0x2f   : > { %1393 = vmatprep.mubr.msk.bf16.mxu0 %vm243_vm0, %v603_v2  ;;  %1417 = vmatprep.subr.bf16.mxu1 %v217_v3 }
  0x30   : > { %1427 = vmatprep.subr.bf16.mxu0 %v218_v4 }
  0x34   : > { %1394 = vmatmul.mubr.msk.bf16.gmra.mxu0 %vm243_vm0, %v604_v7 }
  0x35   : > { %1384 = vmatmul.mubr.msk.bf16.gmra.mxu1 %vm243_vm0, %v507_v8  ;;  %1409 = vmatprep.mubr.msk.bf16.mxu0 %vm243_vm0, %v228_v44 }
  0x36   : > { %1399 = vmatprep.mubr.msk.bf16.mxu1 %vm243_vm0, %v698_v9 }
  0x3c   : > { %1410 = vmatmul.mubr.msk.bf16.vlgmr.msra.gmra.mxu0 %vm243_vm0, %v229_v47 }
  0x3d   : > { %1400 = vmatmul.mubr.msk.bf16.vlgmr.msra.gmra.mxu1 %vm243_vm0, %v699_v10  ;;  %1428 = vmatpush3.bf16.msra.mxu0 %v218_v4 }
  0x3e   : > { %1418 = vmatpush3.bf16.msra.mxu1 %v217_v3  ;;  %1403 = vmatprep.mubr.msk.bf16.mxu1 %vm243_vm0, %v700_v11 }
  0x3f   : > { %1413 = vmatprep.mubr.msk.bf16.mxu0 %vm243_vm0, %v230_v56 }
  0x44   : > { %1414 = vmatmul.mubr.msk.bf16.gmra.mxu0 %vm243_vm0, %v799_v14 }
  0x45   : > { %1404 = vmatmul.mubr.msk.bf16.gmra.mxu1 %vm243_vm0, %v701_v15  ;;  %1429 = vmatprep.mubr.msk.bf16.mxu0 %vm243_vm0, %v1587_v40 }
  0x46   : > { %1419 = vmatprep.mubr.msk.bf16.mxu1 %vm243_vm0, %v1544_v21 }
  0x4c   : > { %1430 = vmatmul.mubr.msk.bf16.vlgmr.msra.gmra.mxu0 %vm243_vm0, %v1603_v48 }
  0x4d   : > { %1420 = vmatmul.mubr.msk.bf16.vlgmr.msra.gmra.mxu1 %vm243_vm0, %v1541_v20  ;;  %1433 = vmatprep.mubr.msk.bf16.mxu0 %vm243_vm0, %v409_v55 }
  0x4e   : > { %1423 = vmatprep.mubr.msk.bf16.mxu1 %vm243_vm0, %v1556_v25 }
  0x54   : > { %1434 = vmatmul.mubr.msk.bf16.gmra.mxu0 %vm243_vm0, %v993_v18 }
  0x55   : > { %1424 = vmatmul.mubr.msk.bf16.gmra.mxu1 %vm243_vm0, %v896_v19 }
  0xd4   : > { %v1351_v21 = vpop.f32.mrf.mxu0 }
  0xd5   : > { %v1674_v22 = vpop.f32.mrf.mxu1 }
  0xd6   : > { %v290_v23 = vpop.f32.mrf.mxu0 }
  0xd7   : > { %v306_v24 = vpop.f32.mrf.mxu1 }
  0xd8   : > { %v1352_v26 = vpop.f32.mrf.mxu0 }
  0xd9   : > { %v1676_v20 = vpop.f32.mrf.mxu1 }
  0xda   : > { %v293_v27 = vpop.f32.mrf.mxu0 }
  0xdb   : > { %v1678_v28 = vpop.f32.mrf.mxu1 }
  0xdc   : > { %v1371_v29 = vpop.f32.mrf.mxu0 }
  0xdd   : > { %v1361_v25 = vpop.f32.mrf.mxu1 }
  0xde   : > { %v456_v30 = vpop.f32.mrf.mxu0  ;;  %v376_v60 = vadd.f32 %v1361_v25, %v1351_v21 }
  0xdf   : > { %v367_v31 = vpop.f32.mrf.mxu1 }
  0xe0   : > { %v1372_v32 = vpop.f32.mrf.mxu0  ;;  %v368_v63 = vadd.f32 %v367_v31, %v290_v23  ;;  %v489_v2 = vadd.f32 %v1371_v29, %v376_v60 }
  0xe1   : > { %v1362_v33 = vpop.f32.mrf.mxu1 }
  0xe2   : > { %v459_v34 = vpop.f32.mrf.mxu0  ;;  %v379_v3 = vadd.f32 %v1362_v33, %v1352_v26  ;;  %v487_v6 = vadd.f32 %v456_v30, %v368_v63 }
  0xe3   : > { %v370_v35 = vpop.f32.mrf.mxu1 }
  0xe4   : > { %v1375_v36 = vpop.f32.mrf.mxu0  ;;  %v371_v7 = vadd.f32 %v370_v35, %v293_v27  ;;  %v490_v11 = vadd.f32 %v1372_v32, %v379_v3 }
  0xe5   : > { %v1365_v37 = vpop.f32.mrf.mxu1 }
  0xe6   : > { %v472_v38 = vpop.f32.mrf.mxu0  ;;  %v488_v16 = vadd.f32 %v459_v34, %v371_v7  ;;  %v392_v21 = vadd.f32 %v1365_v37, %v1674_v22 }
  0xe7   : > { %v383_v39 = vpop.f32.mrf.mxu1 }
  0xe8   : > { %v1680_v40 = vpop.f32.mrf.mxu0  ;;  %v384_v14 = vadd.f32 %v383_v39, %v306_v24  ;;  %v493_v39 = vadd.f32 %v1375_v36, %v392_v21 }
  0xe9   : > { %v1366_v41 = vpop.f32.mrf.mxu1 }
  0xea   : > { %v1682_v42 = vpop.f32.mrf.mxu0  ;;  %v491_v30 = vadd.f32 %v472_v38, %v384_v14  ;;  %v395_v34 = vadd.f32 %v1366_v41, %v1676_v20 }
  0xeb   : > { %v386_v43 = vpop.f32.mrf.mxu1 }
  0xec   : > { %v1391_v44 = vpop.f32.mrf.mxu0  ;;  %v387_v32 = vadd.f32 %v386_v43, %v1678_v28  ;;  %v494_v43 = vadd.f32 %v1680_v40, %v395_v34  ;;  %v1082_v34 = vld [vmem:[%s1719_s6 + $0x18] sm:$0xff] }
  0xed   : > { %v1381_v45 = vpop.f32.mrf.mxu1 }
  0xee   : > { %v651_v46 = vpop.f32.mrf.mxu0  ;;  %v587_v8 = vadd.f32 %v1381_v45, %v489_v2  ;;  %v492_v60 = vadd.f32 %v1682_v42, %v387_v32 }
  0xef   : > { %v554_v47 = vpop.f32.mrf.mxu1 }
  0xf0   : > { %v1392_v48 = vpop.f32.mrf.mxu0  ;;  %v585_v12 = vadd.f32 %v554_v47, %v487_v6  ;;  %v684_v17 = vadd.f32 %v1391_v44, %v587_v8 }
  0xf1   : > { %v1382_v49 = vpop.f32.mrf.mxu1 }
  0xf2   : > { %v654_v50 = vpop.f32.mrf.mxu0  ;;  %v588_v18 = vadd.f32 %v1382_v49, %v490_v11  ;;  %v682_v26 = vadd.f32 %v651_v46, %v585_v12 }
  0xf3   : > { %v557_v51 = vpop.f32.mrf.mxu1 }
  0xf4   : > { %v1684_v52 = vpop.f32.mrf.mxu0  ;;  %v586_v29 = vadd.f32 %v557_v51, %v488_v16  ;;  %v685_v33 = vadd.f32 %v1392_v48, %v588_v18 }
  0xf5   : > { %v1385_v53 = vpop.f32.mrf.mxu1 }
  0xf6   : > { %v667_v54 = vpop.f32.mrf.mxu0  ;;  %v683_v47 = vadd.f32 %v654_v50, %v586_v29  ;;  %v591_v49 = vadd.f32 %v1385_v53, %v493_v39 }
  0xf7   : > { %v570_v55 = vpop.f32.mrf.mxu1 }
  0xf8   : > { %v1686_v56 = vpop.f32.mrf.mxu0  ;;  %v589_v44 = vadd.f32 %v570_v55, %v491_v30 }
  0xf9   : > { %v1688_v57 = vpop.f32.mrf.mxu1 }
  0xfa   : > { %v1690_v58 = vpop.f32.mrf.mxu0  ;;  %v686_v48 = vadd.f32 %v667_v54, %v589_v44  ;;  %v592_v53 = vadd.f32 %v1688_v57, %v494_v43 }
  0xfb   : > { %v573_v59 = vpop.f32.mrf.mxu1 }
  0xfc   : > { %v1411_v61 = vpop.f32.mrf.mxu0  ;;  %v689_v57 = vadd.f32 %v1686_v56, %v592_v53 }
  0xfd   : > { %v1401_v62 = vpop.f32.mrf.mxu1 }
  0xfe   : > { %v846_v0 = vpop.f32.mrf.mxu0  ;;  %v781_v25 = vadd.f32 %v1401_v62, %v684_v17 }
  0xff   : > { %v748_v1 = vpop.f32.mrf.mxu1 }
 0x100   : > { %v1412_v4 = vpop.f32.mrf.mxu0  ;;  %v779_v35 = vadd.f32 %v748_v1, %v682_v26  ;;  %v879_v22 = vadd.f32 %v1411_v61, %v781_v25  ;;  %v590_v1 = vadd.f32 %v573_v59, %v492_v60  ;;  %v688_v61 = vadd.f32 %v1684_v52, %v591_v49  ;;  %v1083_v49 = vld [vmem:[%s1719_s6 + $0x20] sm:$0xff] }
 0x101   : > { %v1402_v5 = vpop.f32.mrf.mxu1 }
 0x102   : > { %v849_v9 = vpop.f32.mrf.mxu0  ;;  %v782_v37 = vadd.f32 %v1402_v5, %v685_v33  ;;  %v877_v38 = vadd.f32 %v846_v0, %v779_v35  ;;  %v687_v59 = vadd.f32 %v1690_v58, %v590_v1  ;;  %v1079_v35 = vld [vmem:[%s1719_s6] sm:$0xff] }
 0x103   : > { %v751_v10 = vpop.f32.mrf.mxu1 }
 0x104   : > { %v1692_v13 = vpop.f32.mrf.mxu0  ;;  %v780_v62 = vadd.f32 %v751_v10, %v683_v47  ;;  %v880_v20 = vadd.f32 %v1412_v4, %v782_v37  ;;  %v1080_v47 = vld [vmem:[%s1719_s6 + $0x8] sm:$0xff] }
 0x105   : > { %v1405_v15 = vpop.f32.mrf.mxu1 }
 0x106   : > { %v862_v19 = vpop.f32.mrf.mxu0  ;;  %v878_v3 = vadd.f32 %v849_v9, %v780_v62  ;;  %v785_v4 = vadd.f32 %v1405_v15, %v688_v61  ;;  %v1085_v62 = vld [vmem:[%s1719_s6 + $0x30] sm:$0xff] }
 0x107   : > { %v764_v23 = vpop.f32.mrf.mxu1 }
 0x108   : > { %v1695_v27 = vpop.f32.mrf.mxu0  ;;  %v783_v42 = vadd.f32 %v764_v23, %v686_v48  ;;  %v883_v16 = vadd.f32 %v1692_v13, %v785_v4 }
 0x109   : > { %v1406_v31 = vpop.f32.mrf.mxu1 }
 0x10a   : > { %v865_v24 = vpop.f32.mrf.mxu0  ;;  %v881_v9 = vadd.f32 %v862_v19, %v783_v42  ;;  %v786_v17 = vadd.f32 %v1406_v31, %v689_v57 }
 0x10b   : > { %v767_v45 = vpop.f32.mrf.mxu1 }
 0x10c   : > { %v1431_v46 = vpop.f32.mrf.mxu0  ;;  %v784_v10 = vadd.f32 %v767_v45, %v687_v59  ;;  %v884_v19 = vadd.f32 %v1695_v27, %v786_v17  ;;  %v1081_v27 = vld [vmem:[%s1719_s6 + $0x10] sm:$0xff] }
 0x10d   : > { %v1421_v51 = vpop.f32.mrf.mxu1 }
 0x10e   : > { %v976_v63 = vadd.f32 %v1421_v51, %v879_v22  ;;  %v1040_v28 = vpop.f32.mrf.mxu0  ;;  %v882_v21 = vadd.f32 %v865_v24, %v784_v10 }
 0x10f   : > { %v943_v36 = vpop.f32.mrf.mxu1 }
 0x110   : > { %v1073_v41 = vadd.f32 %v1431_v46, %v976_v63  ;;  %v974_v55 = vadd.f32 %v943_v36, %v877_v38  ;;  %v1432_v50 = vpop.f32.mrf.mxu0  ;;  %v1084_v38 = vld [vmem:[%s1719_s6 + $0x28] sm:$0xff]  ;;  %v1086_v36 = vld [vmem:[%s1719_s6 + $0x38] sm:$0xff] }
 0x111   : > { %v1422_v2 = vpop.f32.mrf.mxu1 }
 0x112   : > { %v1071_v0 = vadd.f32 %v1040_v28, %v974_v55  ;;  %v977_v5 = vadd.f32 %v1422_v2, %v880_v20  ;;  %1099 = vrot.lane.b32.xlu1 %v1073_v41, %s1457_s29  ;;  %v1043_v40 = vpop.f32.mrf.mxu0 }
 0x113   : > { %v946_v54 = vpop.f32.mrf.mxu1 }
 0x114   : > { %v1074_v6 = vadd.f32 %v1432_v50, %v977_v5  ;;  %v975_v7 = vadd.f32 %v946_v54, %v878_v3  ;;  %1095 = vrot.lane.b32.xlu0 %v1071_v0, %s1457_s29  ;;  %v1435_v52 = vpop.f32.mrf.mxu0 }
 0x115   : > { %v1425_v8 = vpop.f32.mrf.mxu1 }
 0x116   : > { %v1072_v11 = vadd.f32 %v1043_v40, %v975_v7  ;;  %1101 = vrot.lane.b32.xlu1 %v1074_v6, %s1457_s29  ;;  %v1056_v12 = vpop.f32.mrf.mxu0  ;;  %v980_v23 = vadd.f32 %v1425_v8, %v883_v16 }
 0x117   : > { %v959_v14 = vpop.f32.mrf.mxu1 }
 0x118   : > { %v978_v58 = vadd.f32 %v959_v14, %v881_v9  ;;  %1097 = vrot.lane.b32.xlu0 %v1072_v11, %s1457_s29  ;;  %v1436_v18 = vpop.f32.mrf.mxu0  ;;  %v1077_v30 = vadd.f32 %v1435_v52, %v980_v23 }
 0x119   : > { %v1426_v15 = vpop.f32.mrf.mxu1 }
 0x11a   : > { %v1075_v26 = vadd.f32 %v1056_v12, %v978_v58  ;;  %v1059_v25 = vpop.f32.mrf.mxu0  ;;  %v981_v32 = vadd.f32 %v1426_v15, %v884_v19 }
 0x11b   : > { %v962_v56 = vpop.f32.mrf.mxu1 }
 0x11c   : > { %v979_v29 = vadd.f32 %v962_v56, %v882_v21  ;;  %1103 = vrot.lane.b32.xlu0 %v1075_v26, %s1457_s29  ;;  %v1078_v31 = vadd.f32 %v1436_v18, %v981_v32 }
 0x11e   : > { %v1076_v13 = vadd.f32 %v1059_v25, %v979_v29 }
 0x120   : > { %1105 = vrot.lane.b32.xlu1 %v1076_v13, %s1457_s29  ;;  %1107 = vrot.lane.b32.xlu0 %v1077_v30, %s1457_s29 }
 0x124   : > { %1109 = vrot.lane.b32.xlu1 %v1078_v31, %s1457_s29 }
 0x184   : > { %v1100_v33 = vpop.permute.xlu1 %1099 }
 0x185   : > { %v1122_v24 = vsel %vm1119_vm1, %v1081_v27, %v1100_v33 }
 0x186   : > { %1131 = vst.msk [vmem:[%s1725_s9 + $0x10] sm:$0xff] %vm1128_vm2, %v1122_v24  ;;  %v1096_v39 = vpop.permute.xlu0 %1095 }
 0x187   : > { %v1120_v44 = vsel %vm1119_vm1, %v1079_v35, %v1096_v39 }
 0x188   : > { %1129 = vst.msk [vmem:[%s1725_s9] sm:$0xff] %vm1128_vm2, %v1120_v44  ;;  %v1102_v45 = vpop.permute.xlu1 %1101 }
 0x189   : > { %v1123_v22 = vsel %vm1119_vm1, %v1082_v34, %v1102_v45 }
 0x18a   : > { %1132 = vst.msk [vmem:[%s1725_s9 + $0x18] sm:$0xff] %vm1128_vm2, %v1123_v22  ;;  %v1098_v37 = vpop.permute.xlu0 %1097 }
 0x18b   : > { %v1121_v46 = vsel %vm1119_vm1, %v1080_v47, %v1098_v37 }
 0x18c   : > { %1130 = vst.msk [vmem:[%s1725_s9 + $0x8] sm:$0xff] %vm1128_vm2, %v1121_v46 }
 0x18e   : > { %v1104_v51 = vpop.permute.xlu0 %1103 }
 0x18f   : > { %v1124_v60 = vsel %vm1119_vm1, %v1083_v49, %v1104_v51 }
 0x190   : > { %1133 = vst.msk [vmem:[%s1725_s9 + $0x20] sm:$0xff] %vm1128_vm2, %v1124_v60 }
 0x192   : > { %v1106_v63 = vpop.permute.xlu1 %1105  ;;  %v1108_v28 = vpop.permute.xlu0 %1107 }
 0x193   : > { %v1125_v43 = vsel %vm1119_vm1, %v1084_v38, %v1106_v63  ;;  %v1126_v48 = vsel %vm1119_vm1, %v1085_v62, %v1108_v28 }
 0x194   : > { %1134 = vst.msk [vmem:[%s1725_s9 + $0x28] sm:$0xff] %vm1128_vm2, %v1125_v43  ;;  %1135 = vst.msk [vmem:[%s1725_s9 + $0x30] sm:$0xff] %vm1128_vm2, %v1126_v48 }
 0x196   : > { %v1110_v1 = vpop.permute.xlu1 %1109 }
 0x197   : > { %v1127_v20 = vsel %vm1119_vm1, %v1086_v36, %v1110_v1 }
 0x198   : > { %1136 = vst.msk [vmem:[%s1725_s9 + $0x38] sm:$0xff] %vm1128_vm2, %v1127_v20 }
 0x199 PF: > { %s13_s12 = sadd.s32 1, %s1455_s12  }
 0x19a   : > { %p10_p4 = scmp.ge.s32.totalorder %s13_s12, 4  }
 0x19c   :  { %12 = sbr.rel (!%p10_p4) target bundleno = 1 (0x1), region = 67 }

// kernel: encoder_forward.16
= control target key start
LH: loop header
LB: loop body
LE: loop exit
PB: predicated region body
PF: predicated region fallthrough
CT: control target
= control target key end

     0   :  { %vm110_vm0 = vcmask 261120   ;;  %vm232_vm1 = vcmask 130048   ;;  %s496_s1 = inlined_call_operand.vmem [shape: f32[32,16], index: 1, kind: input, shape index: {}]   ;;  %s497_s0 = inlined_call_operand.vmem [shape: f32[128,32], index: 0, kind: input, shape index: {}]   ;;  %s498_s2 = inlined_call_operand.vmem [shape: f32[1,32], index: 2, kind: input, shape index: {}]   ;;  %s499_s3 = inlined_call_operand.vmem [shape: f32[1,32], index: 3, kind: input, shape index: {}]   ;;  %s500_s4 = inlined_call_operand.vmem [shape: f32[128,16], index: 4, kind: output, shape index: {}]  }
   0x1   :  { %v106_v0 = vld [vmem:[%s496_s1 + $0x10] sm:$0xff]  ;;  %v107_v1 = vld [vmem:[%s496_s1 + $0x18] sm:$0xff]  ;;  %v104_v2 = vld [vmem:[%s496_s1] sm:$0xff] }
   0x2   :  { %v109_v3 = vpack.c.bf16 %v107_v1, %v106_v0  ;;  %v105_v4 = vld [vmem:[%s496_s1 + $0x8] sm:$0xff]  ;;  %v18_v5 = vld [vmem:[%s497_s0] sm:$0xff]  ;;  %v20_v15 = vld [vmem:[%s497_s0 + $0x10] sm:$0xff] }
   0x3   :  { %v19_v6 = vld [vmem:[%s497_s0 + $0x8] sm:$0xff]  ;;  %v108_v7 = vpack.c.bf16 %v105_v4, %v104_v2  ;;  %v343_v8 = vld [vmem:[%s498_s2] ss:$0 sm:$0xff]  ;;  %v21_v16 = vld [vmem:[%s497_s0 + $0x18] sm:$0xff] }
   0x4   :  { %v348_v9 = vld [vmem:[%s499_s3] ss:$0 sm:$0xff]  ;;  %273 = vmatprep.subr.bf16.mxu0 %v109_v3  ;;  %293 = vmatprep.subr.bf16.mxu1 %v109_v3  ;;  %v41_v11 = vmul.f32 %v343_v8, %v18_v5  ;;  %v42_v12 = vmul.f32 %v343_v8, %v19_v6  ;;  %v27_v13 = vld [vmem:[%s497_s0 + $0x48] sm:$0xff]  ;;  %v43_v18 = vmul.f32 %v343_v8, %v20_v15  ;;  %v28_v20 = vld [vmem:[%s497_s0 + $0x50] sm:$0xff] }
   0x5   :  { %v26_v10 = vld [vmem:[%s497_s0 + $0x40] sm:$0xff]  ;;  %274 = vmatpush3.bf16.msra.mxu0 %v109_v3  ;;  %295 = vmatpush3.bf16.msra.mxu1 %v109_v3  ;;  %v50_v17 = vmul.f32 %v343_v8, %v27_v13  ;;  %v44_v19 = vmul.f32 %v343_v8, %v21_v16  ;;  %v29_v21 = vld [vmem:[%s497_s0 + $0x58] sm:$0xff]  ;;  %v51_v28 = vmul.f32 %v343_v8, %v28_v20  ;;  %v23_v30 = vld [vmem:[%s497_s0 + $0x28] sm:$0xff] }
   0x6   :  { %v49_v14 = vmul.f32 %v343_v8, %v26_v10  ;;  %275 = vmatprep.subr.bf16.mxu0 %v108_v7  ;;  %294 = vmatprep.subr.bf16.mxu1 %v108_v7  ;;  %v64_v22 = vadd.f32 %v348_v9, %v41_v11  ;;  %v65_v23 = vadd.f32 %v348_v9, %v42_v12  ;;  %v22_v29 = vld [vmem:[%s497_s0 + $0x20] sm:$0xff]  ;;  %v31_v40 = vld [vmem:[%s497_s0 + $0x68] sm:$0xff]  ;;  %v24_v45 = vld [vmem:[%s497_s0 + $0x30] sm:$0xff] }
   0x7   :  { %v73_v25 = vadd.f32 %v348_v9, %v50_v17  ;;  %v66_v26 = vadd.f32 %v348_v9, %v43_v18  ;;  %v67_v27 = vadd.f32 %v348_v9, %v44_v19  ;;  %v52_v34 = vmul.f32 %v343_v8, %v29_v21  ;;  %v30_v35 = vld [vmem:[%s497_s0 + $0x60] sm:$0xff]  ;;  %v25_v46 = vld [vmem:[%s497_s0 + $0x38] sm:$0xff]  ;;  %v32_v55 = vld [vmem:[%s497_s0 + $0x70] sm:$0xff] }
   0x8   :  { %v72_v24 = vadd.f32 %v348_v9, %v49_v14  ;;  %v80_v31 = vmax.f32 %v64_v22, 0.0  ;;  %v81_v32 = vmax.f32 %v65_v23, 0.0  ;;  %v74_v39 = vadd.f32 %v348_v9, %v51_v28  ;;  %v33_v59 = vld [vmem:[%s497_s0 + $0x78] sm:$0xff] }
   0x9   :  { %276 = vmatpush3.bf16.msra.mxu0 %v108_v7  ;;  %296 = vmatpush3.bf16.msra.mxu1 %v108_v7  ;;  %v89_v36 = vmax.f32 %v73_v25, 0.0  ;;  %v82_v37 = vmax.f32 %v66_v26, 0.0  ;;  %v83_v38 = vmax.f32 %v67_v27, 0.0  ;;  %v75_v42 = vadd.f32 %v348_v9, %v52_v34 }
   0xa   :  { %v88_v33 = vmax.f32 %v72_v24, 0.0  ;;  %v96_v41 = vpack.c.bf16 %v81_v32, %v80_v31  ;;  %v45_v43 = vmul.f32 %v343_v8, %v22_v29  ;;  %v46_v44 = vmul.f32 %v343_v8, %v23_v30 }
   0xb   :  { %v97_v48 = vpack.c.bf16 %v83_v38, %v82_v37  ;;  %v90_v49 = vmax.f32 %v74_v39, 0.0  ;;  %v53_v50 = vmul.f32 %v343_v8, %v30_v35  ;;  %v91_v51 = vmax.f32 %v75_v42, 0.0 }
   0xc   :  { %v100_v47 = vpack.c.bf16 %v89_v36, %v88_v33  ;;  %277 = vmatprep.mubr.msk.bf16.mxu0 %vm110_vm0, %v96_v41  ;;  %v68_v52 = vadd.f32 %v348_v9, %v45_v43  ;;  %v69_v53 = vadd.f32 %v348_v9, %v46_v44  ;;  %v54_v54 = vmul.f32 %v343_v8, %v31_v40 }
   0xd   :  { %278 = vmatmul.mubr.msk.bf16.vlgmr.msra.gmra.mxu0 %vm110_vm0, %v97_v48  ;;  %v76_v56 = vadd.f32 %v348_v9, %v53_v50  ;;  %v47_v57 = vmul.f32 %v343_v8, %v24_v45  ;;  %v48_v58 = vmul.f32 %v343_v8, %v25_v46  ;;  %v101_v60 = vpack.c.bf16 %v91_v51, %v90_v49 }
   0xe   :  { %285 = vmatprep.mubr.msk.bf16.mxu1 %vm110_vm0, %v100_v47  ;;  %v84_v61 = vmax.f32 %v68_v52, 0.0  ;;  %v85_v62 = vmax.f32 %v69_v53, 0.0  ;;  %v77_v63 = vadd.f32 %v348_v9, %v54_v54  ;;  %v55_v3 = vmul.f32 %v343_v8, %v32_v55 }
   0xf   :  { %v92_v0 = vmax.f32 %v76_v56, 0.0  ;;  %v70_v1 = vadd.f32 %v348_v9, %v47_v57  ;;  %v71_v2 = vadd.f32 %v348_v9, %v48_v58  ;;  %286 = vmatmul.mubr.msk.bf16.vlgmr.msra.gmra.mxu1 %vm110_vm0, %v101_v60  ;;  %v56_v6 = vmul.f32 %v343_v8, %v33_v59 }
  0x10   :  { %v98_v4 = vpack.c.bf16 %v85_v62, %v84_v61  ;;  %v93_v5 = vmax.f32 %v77_v63, 0.0  ;;  %v78_v11 = vadd.f32 %v348_v9, %v55_v3 }
  0x11   :  { %v86_v7 = vmax.f32 %v70_v1, 0.0  ;;  %v87_v10 = vmax.f32 %v71_v2, 0.0  ;;  %v79_v13 = vadd.f32 %v348_v9, %v56_v6 }
  0x12   :  { %281 = vmatprep.mubr.msk.bf16.mxu0 %vm110_vm0, %v98_v4  ;;  %v102_v12 = vpack.c.bf16 %v93_v5, %v92_v0  ;;  %v94_v15 = vmax.f32 %v78_v11, 0.0 }
  0x13   :  { %v99_v14 = vpack.c.bf16 %v87_v10, %v86_v7  ;;  %v95_v16 = vmax.f32 %v79_v13, 0.0 }
  0x14   :  { %289 = vmatprep.mubr.msk.bf16.mxu1 %vm110_vm0, %v102_v12 }
  0x15   :  { %282 = vmatmul.mubr.msk.bf16.gmra.mxu0 %vm110_vm0, %v99_v14  ;;  %v103_v17 = vpack.c.bf16 %v95_v16, %v94_v15 }
  0x17   :  { %290 = vmatmul.mubr.msk.bf16.gmra.mxu1 %vm110_vm0, %v103_v17 }
  0xcd   :  { %v279_v8 = vpop.f32.mrf.mxu0 }
  0xce   :  { %235 = vst.msk [vmem:[%s500_s4 + $0x10] sm:$0xff] %vm232_vm1, %v279_v8 }
  0xcf   :  { %v169_v18 = vpop.f32.mrf.mxu0  ;;  %v287_v19 = vpop.f32.mrf.mxu1 }
  0xd0   :  { %233 = vst.msk [vmem:[%s500_s4] sm:$0xff] %vm232_vm1, %v169_v18  ;;  %243 = vst.msk [vmem:[%s500_s4 + $0x50] sm:$0xff] %vm232_vm1, %v287_v19 }
  0xd1   :  { %v280_v9 = vpop.f32.mrf.mxu0  ;;  %v201_v20 = vpop.f32.mrf.mxu1 }
  0xd2   :  { %236 = vst.msk [vmem:[%s500_s4 + $0x18] sm:$0xff] %vm232_vm1, %v280_v9  ;;  %241 = vst.msk [vmem:[%s500_s4 + $0x40] sm:$0xff] %vm232_vm1, %v201_v20 }
  0xd3   :  { %v172_v21 = vpop.f32.mrf.mxu0  ;;  %v288_v22 = vpop.f32.mrf.mxu1 }
  0xd4   :  { %234 = vst.msk [vmem:[%s500_s4 + $0x8] sm:$0xff] %vm232_vm1, %v172_v21  ;;  %244 = vst.msk [vmem:[%s500_s4 + $0x58] sm:$0xff] %vm232_vm1, %v288_v22 }
  0xd5   :  { %v283_v23 = vpop.f32.mrf.mxu0  ;;  %v204_v24 = vpop.f32.mrf.mxu1 }
  0xd6   :  { %239 = vst.msk [vmem:[%s500_s4 + $0x30] sm:$0xff] %vm232_vm1, %v283_v23  ;;  %242 = vst.msk [vmem:[%s500_s4 + $0x48] sm:$0xff] %vm232_vm1, %v204_v24 }
  0xd7   :  { %v185_v25 = vpop.f32.mrf.mxu0  ;;  %v291_v26 = vpop.f32.mrf.mxu1 }
  0xd8   :  { %237 = vst.msk [vmem:[%s500_s4 + $0x20] sm:$0xff] %vm232_vm1, %v185_v25  ;;  %247 = vst.msk [vmem:[%s500_s4 + $0x70] sm:$0xff] %vm232_vm1, %v291_v26 }
  0xd9   :  { %v284_v27 = vpop.f32.mrf.mxu0  ;;  %v217_v28 = vpop.f32.mrf.mxu1 }
  0xda   :  { %240 = vst.msk [vmem:[%s500_s4 + $0x38] sm:$0xff] %vm232_vm1, %v284_v27  ;;  %245 = vst.msk [vmem:[%s500_s4 + $0x60] sm:$0xff] %vm232_vm1, %v217_v28 }
  0xdb   :  { %v188_v29 = vpop.f32.mrf.mxu0  ;;  %v292_v30 = vpop.f32.mrf.mxu1 }
  0xdc   :  { %238 = vst.msk [vmem:[%s500_s4 + $0x28] sm:$0xff] %vm232_vm1, %v188_v29  ;;  %248 = vst.msk [vmem:[%s500_s4 + $0x78] sm:$0xff] %vm232_vm1, %v292_v30 }
  0xdd   :  { %v220_v31 = vpop.f32.mrf.mxu1 }
  0xde   :  { %246 = vst.msk [vmem:[%s500_s4 + $0x68] sm:$0xff] %vm232_vm1, %v220_v31 }

// kernel: encoder_forward.17
= control target key start
LH: loop header
LB: loop body
LE: loop exit
PB: predicated region body
PF: predicated region fallthrough
CT: control target
= control target key end

     0   :  { %vm59_vm0 = vcmask 130048   ;;  %s247_s1 = inlined_call_operand.vmem [shape: f32[16,16], index: 1, kind: input, shape index: {}]   ;;  %s248_s0 = inlined_call_operand.vmem [shape: f32[32,16], index: 0, kind: input, shape index: {}]   ;;  %s249_s2 = inlined_call_operand.vmem [shape: f32[1,16], index: 2, kind: input, shape index: {}]   ;;  %s250_s3 = inlined_call_operand.vmem [shape: f32[1,16], index: 3, kind: input, shape index: {}]   ;;  %s251_s4 = inlined_call_operand.vmem [shape: f32[1,16], index: 4, kind: input, shape index: {}]   ;;  %s252_s5 = inlined_call_operand.vmem [shape: f32[1,16], index: 5, kind: input, shape index: {}]   ;;  %s253_s6 = inlined_call_operand.vmem [shape: f32[32,16], index: 6, kind: output, shape index: {}]  }
   0x1   :  { %v56_v0 = vld [vmem:[%s247_s1] sm:$0xff]  ;;  %v57_v1 = vld [vmem:[%s247_s1 + $0x8] sm:$0xff]  ;;  %v26_v9 = vld [vmem:[%s248_s0 + $0x10] sm:$0xff] }
   0x2   :  { %v24_v2 = vld [vmem:[%s248_s0] sm:$0xff]  ;;  %v58_v3 = vpack.c.bf16 %v57_v1, %v56_v0  ;;  %v25_v4 = vld [vmem:[%s248_s0 + $0x8] sm:$0xff]  ;;  %v27_v10 = vld [vmem:[%s248_s0 + $0x18] sm:$0xff] }
   0x3   :  { %v149_v5 = vld [vmem:[%s249_s2] ss:$0 sm:$0xff] }
   0x4   :  { %v150_v6 = vld [vmem:[%s250_s3] ss:$0 sm:$0xff]  ;;  %v35_v7 = vmul.f32 %v149_v5, %v24_v2  ;;  %v36_v8 = vmul.f32 %v149_v5, %v25_v4  ;;  %158 = vmatprep.subr.bf16.mxu0 %v58_v3  ;;  %v37_v11 = vmul.f32 %v149_v5, %v26_v9  ;;  %v38_v12 = vmul.f32 %v149_v5, %v27_v10 }
   0x5   :  { %159 = vmatpush3.bf16.msra.mxu0 %v58_v3  ;;  %v153_v23 = vld [vmem:[%s251_s4] ss:$0 sm:$0xff] }
   0x6   :  { %v46_v13 = vadd.f32 %v150_v6, %v35_v7  ;;  %v47_v14 = vadd.f32 %v150_v6, %v36_v8  ;;  %v48_v15 = vadd.f32 %v150_v6, %v37_v11  ;;  %v49_v16 = vadd.f32 %v150_v6, %v38_v12  ;;  %v154_v25 = vld [vmem:[%s252_s5] ss:$0 sm:$0xff] }
   0x8   :  { %v50_v17 = vmax.f32 %v46_v13, 0.0  ;;  %v51_v18 = vmax.f32 %v47_v14, 0.0  ;;  %v52_v19 = vmax.f32 %v48_v15, 0.0  ;;  %v53_v20 = vmax.f32 %v49_v16, 0.0 }
   0xa   :  { %v54_v21 = vpack.c.bf16 %v51_v18, %v50_v17  ;;  %v55_v22 = vpack.c.bf16 %v53_v20, %v52_v19 }
   0xc   :  { %160 = vmatprep.mubr.msk.bf16.mxu0 %vm59_vm0, %v54_v21 }
   0xd   :  { %161 = vmatmul.mubr.msk.bf16.vlgmr.msra.gmra.mxu0 %vm59_vm0, %v55_v22 }
  0xcd   :  { %v162_v24 = vpop.f32.mrf.mxu0 }
  0xce   :  { %v124_v26 = vmul.f32 %v162_v24, %v153_v23 }
  0xcf   :  { %v100_v27 = vpop.f32.mrf.mxu0 }
  0xd0   :  { %v135_v28 = vadd.f32 %v154_v25, %v124_v26  ;;  %v122_v29 = vmul.f32 %v153_v23, %v100_v27 }
  0xd1   :  { %v163_v30 = vpop.f32.mrf.mxu0 }
  0xd2   :  { %v139_v31 = vmax.f32 %v135_v28, 0.0  ;;  %v133_v32 = vadd.f32 %v154_v25, %v122_v29  ;;  %v125_v33 = vmul.f32 %v163_v30, %v153_v23 }
  0xd3   :  { %v103_v34 = vpop.f32.mrf.mxu0 }
  0xd4   :  { %143 = vst.msk [vmem:[%s253_s6 + $0x10] sm:$0xff] %vm59_vm0, %v139_v31  ;;  %v137_v35 = vmax.f32 %v133_v32, 0.0  ;;  %v136_v36 = vadd.f32 %v154_v25, %v125_v33  ;;  %v123_v37 = vmul.f32 %v153_v23, %v103_v34 }
  0xd6   :  { %141 = vst.msk [vmem:[%s253_s6] sm:$0xff] %vm59_vm0, %v137_v35  ;;  %v140_v38 = vmax.f32 %v136_v36, 0.0  ;;  %v134_v39 = vadd.f32 %v154_v25, %v123_v37 }
  0xd8   :  { %144 = vst.msk [vmem:[%s253_s6 + $0x18] sm:$0xff] %vm59_vm0, %v140_v38  ;;  %v138_v40 = vmax.f32 %v134_v39, 0.0 }
  0xda   :  { %142 = vst.msk [vmem:[%s253_s6 + $0x8] sm:$0xff] %vm59_vm0, %v138_v40 }

// kernel: encoder_forward.19
= control target key start
LH: loop header
LB: loop body
LE: loop exit
PB: predicated region body
PF: predicated region fallthrough
CT: control target
= control target key end

     0   :  { %vm68_vm0 = vcmask 1043456   ;;  %vm61_vm1 = vcmask 195584   ;;  %vm147_vm2 = vcmask 130048   ;;  %s255_s1 = inlined_call_operand.vmem [shape: f32[24,16], index: 1, kind: input, shape index: {}]   ;;  %s256_s0 = inlined_call_operand.vmem [shape: f32[32,24], index: 0, kind: input, shape index: {}]   ;;  %s257_s2 = inlined_call_operand.vmem [shape: f32[1,24], index: 2, kind: input, shape index: {}]   ;;  %s258_s3 = inlined_call_operand.vmem [shape: f32[1,24], index: 3, kind: input, shape index: {}]   ;;  %s259_s4 = inlined_call_operand.vmem [shape: f32[1,16], index: 4, kind: input, shape index: {}]   ;;  %s260_s5 = inlined_call_operand.vmem [shape: f32[1,16], index: 5, kind: input, shape index: {}]   ;;  %s261_s6 = inlined_call_operand.vmem [shape: f32[32,16], index: 6, kind: output, shape index: {}]  }
   0x1   :  { %v58_v0 = vld [vmem:[%s255_s1 + $0x10] sm:$0xff]  ;;  %v56_v1 = vld [vmem:[%s255_s1] sm:$0xff]  ;;  %v57_v2 = vld [vmem:[%s255_s1 + $0x8] sm:$0xff] }
   0x2   :  { %v60_v3 = vpack.c.bf16 %v58_v0, %v58_v0  ;;  %v59_v4 = vpack.c.bf16 %v57_v2, %v56_v1  ;;  %v24_v5 = vld [vmem:[%s256_s0] sm:$0xff]  ;;  %v25_v6 = vld [vmem:[%s256_s0 + $0x8] sm:$0xff]  ;;  %v26_v11 = vld [vmem:[%s256_s0 + $0x10] sm:$0xff] }
   0x3   :  { %v156_v7 = vld [vmem:[%s257_s2] ss:$0 sm:$0xff]  ;;  %v27_v12 = vld [vmem:[%s256_s0 + $0x18] sm:$0xff] }
   0x4   :  { %v35_v8 = vmul.f32 %v156_v7, %v24_v5  ;;  %v36_v9 = vmul.f32 %v156_v7, %v25_v6  ;;  %v157_v10 = vld [vmem:[%s258_s3] ss:$0 sm:$0xff]  ;;  %174 = vmatprep.subr.msk.bf16.mxu0 %vm68_vm0, %v60_v3  ;;  %v70_v13 = vsel %vm68_vm0, %v60_v3, 0  ;;  %v37_v14 = vmul.f32 %v156_v7, %v26_v11 }
   0x5   :  { %v38_v15 = vmul.f32 %v156_v7, %v27_v12  ;;  %167 = vmatpush3.bf16.msra.mxu0 %v70_v13  ;;  %v160_v26 = vld [vmem:[%s259_s4] ss:$0 sm:$0xff] }
   0x6   :  { %v46_v16 = vadd.f32 %v157_v10, %v35_v8  ;;  %v47_v17 = vadd.f32 %v157_v10, %v36_v9  ;;  %168 = vmatprep.subr.bf16.mxu0 %v59_v4  ;;  %v48_v18 = vadd.f32 %v157_v10, %v37_v14  ;;  %v161_v28 = vld [vmem:[%s260_s5] ss:$0 sm:$0xff] }
   0x7   :  { %v49_v19 = vadd.f32 %v157_v10, %v38_v15 }
   0x8   :  { %v50_v20 = vmax.f32 %v46_v16, 0.0  ;;  %v51_v21 = vmax.f32 %v47_v17, 0.0  ;;  %v52_v22 = vmax.f32 %v48_v18, 0.0 }
   0x9   :  { %v53_v23 = vmax.f32 %v49_v19, 0.0  ;;  %169 = vmatpush3.bf16.msra.mxu0 %v59_v4 }
   0xa   :  { %v54_v24 = vpack.c.bf16 %v51_v21, %v50_v20 }
   0xb   :  { %v55_v25 = vpack.c.bf16 %v53_v23, %v52_v22 }
   0xc   :  { %170 = vmatprep.mubr.msk.bf16.mxu0 %vm61_vm1, %v54_v24 }
   0xd   :  { %171 = vmatmul.mubr.msk.bf16.vlgmr.msra.gmra.mxu0 %vm61_vm1, %v55_v25 }
  0xcd   :  { %v172_v27 = vpop.f32.mrf.mxu0 }
  0xce   :  { %v130_v29 = vmul.f32 %v172_v27, %v160_v26 }
  0xcf   :  { %v106_v30 = vpop.f32.mrf.mxu0 }
  0xd0   :  { %v141_v31 = vadd.f32 %v161_v28, %v130_v29  ;;  %v128_v32 = vmul.f32 %v160_v26, %v106_v30 }
  0xd1   :  { %v173_v33 = vpop.f32.mrf.mxu0 }
  0xd2   :  { %v145_v34 = vmax.f32 %v141_v31, 0.0  ;;  %v139_v35 = vadd.f32 %v161_v28, %v128_v32  ;;  %v131_v36 = vmul.f32 %v173_v33, %v160_v26 }
  0xd3   :  { %v109_v37 = vpop.f32.mrf.mxu0 }
  0xd4   :  { %150 = vst.msk [vmem:[%s261_s6 + $0x10] sm:$0xff] %vm147_vm2, %v145_v34  ;;  %v143_v38 = vmax.f32 %v139_v35, 0.0  ;;  %v142_v39 = vadd.f32 %v161_v28, %v131_v36  ;;  %v129_v40 = vmul.f32 %v160_v26, %v109_v37 }
  0xd6   :  { %148 = vst.msk [vmem:[%s261_s6] sm:$0xff] %vm147_vm2, %v143_v38  ;;  %v146_v41 = vmax.f32 %v142_v39, 0.0  ;;  %v140_v42 = vadd.f32 %v161_v28, %v129_v40 }
  0xd8   :  { %151 = vst.msk [vmem:[%s261_s6 + $0x18] sm:$0xff] %vm147_vm2, %v146_v41  ;;  %v144_v43 = vmax.f32 %v140_v42, 0.0 }
  0xda   :  { %149 = vst.msk [vmem:[%s261_s6 + $0x8] sm:$0xff] %vm147_vm2, %v144_v43 }

// kernel: encoder_forward.21
= control target key start
LH: loop header
LB: loop body
LE: loop exit
PB: predicated region body
PF: predicated region fallthrough
CT: control target
= control target key end

     0   :  { %s154_s0 = inlined_call_operand.vmem [shape: f32[2,16,32], index: 0, kind: input, shape index: {}]   ;;  %s155_s1 = inlined_call_operand.vmem [shape: f32[1,1,32], index: 1, kind: input, shape index: {}]   ;;  %s156_s2 = inlined_call_operand.vmem [shape: f32[1,1,32], index: 2, kind: input, shape index: {}]   ;;  %s157_s3 = inlined_call_operand.hbm [shape: f32[2,32], index: 3, kind: output, shape index: {}]  }
   0x1   :  { %v15_v0 = vld [vmem:[%s154_s0] sm:$0xff]  ;;  %v16_v1 = vld [vmem:[%s154_s0 + $0x8] sm:$0xff]  ;;  %v17_v2 = vld [vmem:[%s154_s0 + $0x10] sm:$0xff] }
   0x2   :  { %v18_v3 = vld [vmem:[%s154_s0 + $0x18] sm:$0xff]  ;;  %v87_v4 = vld [vmem:[%s155_s1] ss:$0 sm:$0xff] }
   0x3   :  { %v88_v5 = vld [vmem:[%s156_s2] ss:$0 sm:$0xff]  ;;  %v26_v6 = vmul.f32 %v87_v4, %v15_v0  ;;  %v27_v7 = vmul.f32 %v87_v4, %v16_v1  ;;  %v28_v8 = vmul.f32 %v87_v4, %v17_v2  ;;  %v29_v9 = vmul.f32 %v87_v4, %v18_v3 }
   0x4   :  { %8 = vsyncpa [#allocation3], 0  ;;  %vm45_vm0 = vcmask 261120   ;;  %s112_s0 = smov [#allocation2]   ;;  %vm68_vm1 = vcmask 1041409   ;;  %vm71_vm2 = vcmask 254976  }
   0x5   :  { %v37_v10 = vadd.f32 %v88_v5, %v26_v6  ;;  %v38_v11 = vadd.f32 %v88_v5, %v27_v7  ;;  %v39_v12 = vadd.f32 %v88_v5, %v28_v8  ;;  %v40_v13 = vadd.f32 %v88_v5, %v29_v9  ;;  %s79_s1 = sshll.u32 %s112_s0, 4  ;;  %s80_s1 = int_to_ptr.vmem [resolvable:$true] %s79_s1 }
   0x6   :  { %s90_s2 = scalar_lea.vmem %s80_s1, 32  ;;  %p95_p1 = scmp.lt.s32.totalorder %s80_s1, %s80_s1 }
   0x7   :  { %v41_v14 = vmax.f32 %v37_v10, 0.0  ;;  %v42_v15 = vmax.f32 %v38_v11, 0.0  ;;  %v43_v16 = vmax.f32 %v39_v12, 0.0  ;;  %v44_v17 = vmax.f32 %v40_v13, 0.0  ;;  %p91_p0 = scmp.ne.s32.totalorder %s80_s1, %s90_s2  ;;  %p96_p2 = scmp.lt.s32.totalorder %s90_s2, %s90_s2 }
   0x9   :  { %v46_v18 = vsel %vm45_vm0, %v41_v14, 0.0  ;;  %v47_v19 = vsel %vm45_vm0, %v42_v15, 0.0  ;;  %v55_v20 = vsel %vm45_vm0, %v43_v16, 0.0  ;;  %v56_v21 = vsel %vm45_vm0, %v44_v17, 0.0  ;;  %p97_p3 = por %p96_p2, %p95_p1 }
   0xa   :  { %v48_v22 = vadd.f32 %v47_v19, %v46_v18  ;;  %v57_v23 = vadd.f32 %v56_v21, %v55_v20 }
   0xb   :  { %p98_p4 = pnand %p97_p3, %p91_p0 }
   0xc   :  { %v49_v24 = vrot.slane %v48_v22, 4  ;;  %v58_v25 = vrot.slane %v57_v23, 4 }
   0xe   :  { %v50_v26 = vadd.f32 %v49_v24, %v48_v22  ;;  %v59_v27 = vadd.f32 %v58_v25, %v57_v23 }
  0x10   :  { %v51_v28 = vrot.slane %v50_v26, 2  ;;  %v60_v29 = vrot.slane %v59_v27, 2 }
  0x12   :  { %v52_v30 = vadd.f32 %v51_v28, %v50_v26  ;;  %v61_v31 = vadd.f32 %v60_v29, %v59_v27 }
  0x14   :  { %v53_v32 = vrot.slane %v52_v30, 1  ;;  %v62_v33 = vrot.slane %v61_v31, 1 }
  0x16   :  { %v54_v34 = vadd.f32 %v53_v32, %v52_v30  ;;  %v63_v35 = vadd.f32 %v62_v33, %v61_v31 }
  0x18   :  { %v64_v36 = vmul.f32 0.0625, %v54_v34  ;;  %v65_v37 = vmul.f32 0.0625, %v63_v35 }
  0x1a   :  { %v69_v38 = vsel %vm68_vm1, %v65_v37, %v64_v36 }
  0x1b   :  { %72 = vst.msk [vmem:[#allocation2] sm:$0x3] %vm71_vm2, %v69_v38 }
  0x1c   :  { %101 = shalt.err (!%p98_p4)
}
  0x1d   :  { %82 = dma.vmem_to_hbm [thread:$0]  %s80_s1, 32, %s157_s3, [#allocation3]  }
  0x1e   :  { %110 = dma.done.wait [#allocation3], 32  }
  0x1f   :  { %111 = vsyncadd [#allocation3], 4294967264 }
  0x20   :  { %86 = vsyncpa [#allocation3], 1 }

// kernel: encoder_forward.20
= control target key start
LH: loop header
LB: loop body
LE: loop exit
PB: predicated region body
PF: predicated region fallthrough
CT: control target
= control target key end

     0   :  { %s1026_s12 = smov 0   ;;  %s1168_s0 = inlined_call_operand.vmem [shape: f32[2,4,4,24], index: 0, kind: input, shape index: {}]   ;;  %s1169_s1 = inlined_call_operand.vmem [shape: f32[2,6,6,16], index: 1, kind: input, shape index: {}]   ;;  %s1170_s2 = inlined_call_operand.vmem [shape: f32[3,3,16,8], index: 2, kind: input, shape index: {}]   ;;  %s1171_s3 = inlined_call_operand.vmem [shape: f32[2,4,4,32], index: 3, kind: output, shape index: {}]  }
   0x1 LB: > { %s846_s13 = sadd.s32 4294967295, %s1001_s12   ;;  %p850_p0 = scmp.ge.s32.totalorder %s1001_s12, 1  ;;  %s1001_s12 = sphi %s1026_s12, %s13_s12  }
   0x2   : > { %p147_p1 = scmp.lt.s32.totalorder %s1001_s12, 3 }
   0x4   : > { %p148_p2 = pnand %p850_p0, %p147_p1 }
   0x5   : > { %p176_p3 = scmp.lt.s32.totalorder (!%p148_p2), %s846_s13, 1 }
   0x6   : > { %151 = sbr.rel (%p148_p2) target bundleno = 370 (0x172), region = 32 }
   0xb   : > { %v194_v0 = vld [vmem:[%s1170_s2 + $0x10] sm:$0xff]  ;;  %v195_v1 = vld [vmem:[%s1170_s2 + $0x18] sm:$0xff]  ;;  %v192_v2 = vld [vmem:[%s1170_s2] sm:$0xff]  ;;  %v1003_v3 = vmov 0.0   ;;  %vm1004_vm0 = vmmov 0   ;;  %s1173_s13 = smov (!%p176_p3, %s846_s13), 1 }
   0xc   : > { %911 = vmatprep.subr.bf16.mxu0 %v1003_v3  ;;  %v211_v4 = vpack.c.bf16 %v195_v1, %v194_v0  ;;  %917 = vmatprep.subr.bf16.mxu1 %v1003_v3  ;;  %v193_v5 = vld [vmem:[%s1170_s2 + $0x8] sm:$0xff]  ;;  %s965_s22 = smul.u32 48, %s1173_s13  ;;  %v196_v7 = vld [vmem:[%s1170_s2 + $0x20] sm:$0xff]  ;;  %vm245_vm1 = vcmask 130048   ;;  %v198_v9 = vld [vmem:[%s1170_s2 + $0x30] sm:$0xff]  ;;  %s891_s30 = sshll.u32 %s1173_s13, 4 }
   0xd   : > { %v210_v6 = vpack.c.bf16 %v193_v5, %v192_v2  ;;  %913 = vmatprep.mubr.msk.bf16.mxu0 %vm1004_vm0, %v1003_v3  ;;  %919 = vmatprep.mubr.msk.bf16.mxu1 %vm1004_vm0, %v1003_v3  ;;  %v197_v8 = vld [vmem:[%s1170_s2 + $0x28] sm:$0xff]  ;;  %v199_v10 = vld [vmem:[%s1170_s2 + $0x38] sm:$0xff]  ;;  %v200_v21 = vld [vmem:[%s1170_s2 + $0x40] sm:$0xff]  ;;  %s180_s6 = scalar_lea.vmem %s1168_s0, %s891_s30  ;;  %vm769_vm2 = vcmask 195584   ;;  %vm774_vm3 = vcmask 257024   ;;  %s190_s9 = scalar_lea.vmem %s1171_s3, %s891_s30 }
   0xe   : > { %912 = vmatpush3.bf16.msra.mxu0 %v211_v4  ;;  %s1063_s27 = scalar_lea.vmem %s1169_s1, %s965_s22  ;;  %v212_v13 = vpack.c.bf16 %v197_v8, %v196_v7  ;;  %v213_v17 = vpack.c.bf16 %v199_v10, %v198_v9  ;;  %v201_v22 = vld [vmem:[%s1170_s2 + $0x48] sm:$0xff]  ;;  %v202_v26 = vld [vmem:[%s1170_s2 + $0x50] sm:$0xff]  ;;  %v203_v27 = vld [vmem:[%s1170_s2 + $0x58] sm:$0xff] }
   0xf   : > { %918 = vmatpush3.bf16.msra.mxu1 %v210_v6  ;;  %923 = vmatprep.subr.bf16.mxu0 %v1003_v3  ;;  %v977_v11 = vld [vmem:[%s1063_s27 + $0x1] ss:$8 sps:$4 sm:$0xff]   ;;  %v978_v12 = vld [vmem:[%s1063_s27 + $0x11] ss:$8 sps:$4 sm:$0xff]   ;;  %v214_v28 = vpack.c.bf16 %v201_v22, %v200_v21  ;;  %v215_v30 = vpack.c.bf16 %v203_v27, %v202_v26 }
  0x10   : > { %929 = vmatprep.subr.bf16.mxu1 %v1003_v3  ;;  %v244_v14 = vpack.c.bf16 %v978_v12, %v977_v11  ;;  %v979_v15 = vld [vmem:[%s1063_s27] ss:$8 sps:$4 sm:$0xff]   ;;  %v980_v16 = vld [vmem:[%s1063_s27 + $0x10] ss:$8 sps:$4 sm:$0xff]  }
  0x11   : > { %v231_v18 = vpack.c.bf16 %v980_v16, %v979_v15  ;;  %v981_v19 = vld [vmem:[%s1063_s27 + $0x2] ss:$8 sps:$4 sm:$0xff]   ;;  %v982_v20 = vld [vmem:[%s1063_s27 + $0x12] ss:$8 sps:$4 sm:$0xff]  }
  0x12   : > { %914 = vmatmul.mubr.msk.bf16.vlgmr.msra.gmra.mxu0 %vm245_vm1, %v244_v14  ;;  %v983_v23 = vld [vmem:[%s1063_s27 + $0x8] ss:$8 sps:$4 sm:$0xff]   ;;  %v984_v24 = vld [vmem:[%s1063_s27 + $0x18] ss:$8 sps:$4 sm:$0xff]   ;;  %v346_v25 = vpack.c.bf16 %v982_v20, %v981_v19 }
  0x13   : > { %924 = vmatpush3.bf16.msra.mxu0 %v212_v13  ;;  %925 = vmatprep.mubr.msk.bf16.mxu0 %vm1004_vm0, %v1003_v3  ;;  %v406_v29 = vpack.c.bf16 %v984_v24, %v983_v23  ;;  %v985_v31 = vld [vmem:[%s1063_s27 + $0x9] ss:$8 sps:$4 sm:$0xff]   ;;  %v986_v32 = vld [vmem:[%s1063_s27 + $0x19] ss:$8 sps:$4 sm:$0xff]  }
  0x14   : > { %920 = vmatmul.mubr.msk.bf16.vlgmr.msra.gmra.mxu1 %vm245_vm1, %v231_v18  ;;  %935 = vmatprep.subr.bf16.mxu0 %v1003_v3  ;;  %v204_v33 = vld [vmem:[%s1170_s2 + $0x60] sm:$0xff]  ;;  %v205_v34 = vld [vmem:[%s1170_s2 + $0x68] sm:$0xff]  ;;  %v465_v37 = vpack.c.bf16 %v986_v32, %v985_v31  ;;  %v206_v38 = vld [vmem:[%s1170_s2 + $0x70] sm:$0xff] }
  0x15   : > { %930 = vmatpush3.bf16.msra.mxu1 %v213_v17  ;;  %931 = vmatprep.mubr.msk.bf16.mxu1 %vm1004_vm0, %v1003_v3  ;;  %v987_v35 = vld [vmem:[%s1063_s27 + $0xa] ss:$8 sps:$4 sm:$0xff]   ;;  %v988_v36 = vld [vmem:[%s1063_s27 + $0x1a] ss:$8 sps:$4 sm:$0xff]   ;;  %v216_v40 = vpack.c.bf16 %v205_v34, %v204_v33 }
  0x16   : > { %941 = vmatprep.subr.bf16.mxu1 %v1003_v3  ;;  %v207_v39 = vld [vmem:[%s1170_s2 + $0x78] sm:$0xff]  ;;  %v524_v41 = vpack.c.bf16 %v988_v36, %v987_v35  ;;  %v990_v44 = vld [vmem:[%s1063_s27 + $0x20] ss:$8 sps:$4 sm:$0xff]  }
  0x17   : > { %v217_v42 = vpack.c.bf16 %v207_v39, %v206_v38  ;;  %v989_v43 = vld [vmem:[%s1063_s27 + $0x10] ss:$8 sps:$4 sm:$0xff]   ;;  %v208_v45 = vld [vmem:[%s1170_s2 + $0x80] sm:$0xff]  ;;  %v209_v48 = vld [vmem:[%s1170_s2 + $0x88] sm:$0xff] }
  0x18   : > { %v991_v46 = vld [vmem:[%s1063_s27 + $0x11] ss:$8 sps:$4 sm:$0xff]   ;;  %v992_v47 = vld [vmem:[%s1063_s27 + $0x21] ss:$8 sps:$4 sm:$0xff]   ;;  %v584_v49 = vpack.c.bf16 %v990_v44, %v989_v43  ;;  %v218_v50 = vpack.c.bf16 %v209_v48, %v208_v45 }
  0x19   : > { %v643_v51 = vpack.c.bf16 %v992_v47, %v991_v46  ;;  %v993_v52 = vld [vmem:[%s1063_s27 + $0x12] ss:$8 sps:$4 sm:$0xff]   ;;  %v994_v53 = vld [vmem:[%s1063_s27 + $0x22] ss:$8 sps:$4 sm:$0xff]   ;;  %s1005_s27 = smov 24  }
  0x1a   : > { %926 = vmatmul.mubr.msk.bf16.vlgmr.msra.gmra.mxu0 %vm245_vm1, %v346_v25  ;;  %v702_v54 = vpack.c.bf16 %v994_v53, %v993_v52  ;;  %v753_v45 = vld [vmem:[%s180_s6] sm:$0xf]  ;;  %v754_v48 = vld [vmem:[%s180_s6 + $0x4] sm:$0xf] }
  0x1b   : > { %936 = vmatpush3.bf16.msra.mxu0 %v214_v28  ;;  %937 = vmatprep.mubr.msk.bf16.mxu0 %vm1004_vm0, %v1003_v3 }
  0x1c   : > { %932 = vmatmul.mubr.msk.bf16.vlgmr.msra.gmra.mxu1 %vm245_vm1, %v406_v29  ;;  %947 = vmatprep.subr.bf16.mxu0 %v1003_v3 }
  0x1d   : > { %942 = vmatpush3.bf16.msra.mxu1 %v215_v30  ;;  %943 = vmatprep.mubr.msk.bf16.mxu1 %vm1004_vm0, %v1003_v3 }
  0x1e   : > { %953 = vmatprep.subr.bf16.mxu1 %v1003_v3 }
  0x22   : > { %938 = vmatmul.mubr.msk.bf16.vlgmr.msra.gmra.mxu0 %vm245_vm1, %v465_v37 }
  0x23   : > { %948 = vmatpush3.bf16.msra.mxu0 %v216_v40  ;;  %949 = vmatprep.mubr.msk.bf16.mxu0 %vm1004_vm0, %v1003_v3 }
  0x24   : > { %944 = vmatmul.mubr.msk.bf16.vlgmr.msra.gmra.mxu1 %vm245_vm1, %v524_v41  ;;  %959 = vmatprep.subr.bf16.mxu0 %v1003_v3 }
  0x25   : > { %954 = vmatpush3.bf16.msra.mxu1 %v217_v42  ;;  %955 = vmatprep.mubr.msk.bf16.mxu1 %vm1004_vm0, %v1003_v3 }
  0x2a   : > { %950 = vmatmul.mubr.msk.bf16.vlgmr.msra.gmra.mxu0 %vm245_vm1, %v584_v49  ;;  %v755_v49 = vld [vmem:[%s180_s6 + $0x8] sm:$0xf] }
  0x2b   : > { %960 = vmatpush3.bf16.msra.mxu0 %v218_v50  ;;  %961 = vmatprep.mubr.msk.bf16.mxu0 %vm1004_vm0, %v1003_v3 }
  0x2c   : > { %956 = vmatmul.mubr.msk.bf16.vlgmr.msra.gmra.mxu1 %vm245_vm1, %v643_v51 }
  0x32   : > { %962 = vmatmul.mubr.msk.bf16.vlgmr.msra.gmra.mxu0 %vm245_vm1, %v702_v54  ;;  %v756_v54 = vld [vmem:[%s180_s6 + $0xc] sm:$0xf] }
  0xd2   : > { %v283_v55 = vpop.f32.mrf.mxu0 }
  0xd4   : > { %v327_v56 = vpop.f32.mrf.mxu1  ;;  %v915_v57 = vpop.f32.mrf.mxu0 }
  0xd5   : > { %v328_v5 = vadd.f32 %v327_v56, %v283_v55 }
  0xd6   : > { %v921_v58 = vpop.f32.mrf.mxu1  ;;  %v286_v59 = vpop.f32.mrf.mxu0 }
  0xd8   : > { %v330_v60 = vpop.f32.mrf.mxu1  ;;  %v916_v61 = vpop.f32.mrf.mxu0 }
  0xd9   : > { %v331_v10 = vadd.f32 %v330_v60, %v286_v59 }
  0xda   : > { %v922_v62 = vpop.f32.mrf.mxu1  ;;  %v384_v63 = vpop.f32.mrf.mxu0 }
  0xdb   : > { %v391_v7 = vadd.f32 %v384_v63, %v328_v5 }
  0xdc   : > { %v444_v0 = vpop.f32.mrf.mxu1  ;;  %v927_v1 = vpop.f32.mrf.mxu0 }
  0xdd   : > { %v451_v13 = vadd.f32 %v444_v0, %v391_v7 }
  0xde   : > { %v933_v2 = vpop.f32.mrf.mxu1  ;;  %v387_v4 = vpop.f32.mrf.mxu0 }
  0xdf   : > { %v392_v14 = vadd.f32 %v387_v4, %v331_v10 }
  0xe0   : > { %v447_v3 = vpop.f32.mrf.mxu1  ;;  %v928_v6 = vpop.f32.mrf.mxu0 }
  0xe1   : > { %v452_v20 = vadd.f32 %v447_v3, %v392_v14 }
  0xe2   : > { %v934_v8 = vpop.f32.mrf.mxu1  ;;  %v503_v9 = vpop.f32.mrf.mxu0 }
  0xe3   : > { %v510_v17 = vadd.f32 %v503_v9, %v451_v13 }
  0xe4   : > { %v562_v11 = vpop.f32.mrf.mxu1  ;;  %v939_v12 = vpop.f32.mrf.mxu0 }
  0xe5   : > { %v569_v23 = vadd.f32 %v562_v11, %v510_v17 }
  0xe6   : > { %v945_v15 = vpop.f32.mrf.mxu1  ;;  %v506_v16 = vpop.f32.mrf.mxu0 }
  0xe7   : > { %v511_v24 = vadd.f32 %v506_v16, %v452_v20 }
  0xe8   : > { %v565_v18 = vpop.f32.mrf.mxu1  ;;  %v940_v19 = vpop.f32.mrf.mxu0 }
  0xe9   : > { %v570_v30 = vadd.f32 %v565_v18, %v511_v24 }
  0xea   : > { %v946_v21 = vpop.f32.mrf.mxu1  ;;  %v622_v22 = vpop.f32.mrf.mxu0 }
  0xeb   : > { %v629_v27 = vadd.f32 %v622_v22, %v569_v23 }
  0xec   : > { %v681_v25 = vpop.f32.mrf.mxu1  ;;  %v951_v26 = vpop.f32.mrf.mxu0 }
  0xed   : > { %v688_v33 = vadd.f32 %v681_v25, %v629_v27 }
  0xee   : > { %v957_v28 = vpop.f32.mrf.mxu1  ;;  %v625_v29 = vpop.f32.mrf.mxu0 }
  0xef   : > { %v630_v34 = vadd.f32 %v625_v29, %v570_v30 }
  0xf0   : > { %v684_v31 = vpop.f32.mrf.mxu1  ;;  %v952_v32 = vpop.f32.mrf.mxu0 }
  0xf1   : > { %v689_v39 = vadd.f32 %v684_v31, %v630_v34 }
  0xf2   : > { %v958_v35 = vpop.f32.mrf.mxu1  ;;  %v740_v36 = vpop.f32.mrf.mxu0 }
  0xf3   : > { %v747_v37 = vadd.f32 %v740_v36, %v688_v33 }
  0xf4   : > { %v963_v38 = vpop.f32.mrf.mxu0 }
  0xf5   : > { %757 = vrot.lane.b32.xlu0 %v747_v37, %s1005_s27  ;;  %v751_v41 = vcombine.high %v747_v37, %v747_v37 }
  0xf6   : > { %v743_v40 = vpop.f32.mrf.mxu0 }
  0xf7   : > { %v748_v42 = vadd.f32 %v743_v40, %v689_v39 }
  0xf8   : > { %v964_v43 = vpop.f32.mrf.mxu0 }
  0xf9   : > { %759 = vrot.lane.b32.xlu0 %v751_v41, %s1005_s27  ;;  %761 = vrot.lane.b32.xlu1 %v748_v42, %s1005_s27  ;;  %v752_v44 = vcombine.high %v748_v42, %v748_v42 }
  0xfd   : > { %763 = vrot.lane.b32.xlu1 %v752_v44, %s1005_s27 }
 0x167   : > { %v758_v46 = vpop.permute.xlu0 %757 }
 0x168   : > { %v770_v47 = vsel %vm769_vm2, %v753_v45, %v758_v46 }
 0x169   : > { %775 = vst.msk [vmem:[%s190_s9] sm:$0xf] %vm774_vm3, %v770_v47 }
 0x16b   : > { %v760_v50 = vpop.permute.xlu0 %759  ;;  %v762_v51 = vpop.permute.xlu1 %761 }
 0x16c   : > { %v771_v52 = vsel %vm769_vm2, %v754_v48, %v760_v50  ;;  %v772_v53 = vsel %vm769_vm2, %v755_v49, %v762_v51 }
 0x16d   : > { %776 = vst.msk [vmem:[%s190_s9 + $0x4] sm:$0xf] %vm774_vm3, %v771_v52  ;;  %777 = vst.msk [vmem:[%s190_s9 + $0x8] sm:$0xf] %vm774_vm3, %v772_v53 }
 0x16f   : > { %v764_v55 = vpop.permute.xlu1 %763 }
 0x170   : > { %v773_v56 = vsel %vm769_vm2, %v756_v54, %v764_v55 }
 0x171   : > { %778 = vst.msk [vmem:[%s190_s9 + $0xc] sm:$0xf] %vm774_vm3, %v773_v56 }
 0x172 PF: > { %s13_s12 = sadd.s32 1, %s1001_s12  }
 0x173   : > { %p10_p4 = scmp.ge.s32.totalorder %s13_s12, 4  }
 0x175   :  { %12 = sbr.rel (!%p10_p4) target bundleno = 1 (0x1), region = 67 }

// kernel: encoder_forward.18
= control target key start
LH: loop header
LB: loop body
LE: loop exit
PB: predicated region body
PF: predicated region fallthrough
CT: control target
= control target key end

     0   :  { %s1025_s12 = smov 0   ;;  %s1167_s0 = inlined_call_operand.vmem [shape: f32[2,4,4,16], index: 0, kind: input, shape index: {}]   ;;  %s1168_s1 = inlined_call_operand.vmem [shape: f32[2,6,6,16], index: 1, kind: input, shape index: {}]   ;;  %s1169_s2 = inlined_call_operand.vmem [shape: f32[3,3,16,8], index: 2, kind: input, shape index: {}]   ;;  %s1170_s3 = inlined_call_operand.vmem [shape: f32[2,4,4,24], index: 3, kind: output, shape index: {}]  }
   0x1 LB: > { %s845_s13 = sadd.s32 4294967295, %s1000_s12   ;;  %p849_p0 = scmp.ge.s32.totalorder %s1000_s12, 1  ;;  %s1000_s12 = sphi %s1025_s12, %s13_s12  }
   0x2   : > { %p147_p1 = scmp.lt.s32.totalorder %s1000_s12, 3 }
   0x4   : > { %p148_p2 = pnand %p849_p0, %p147_p1 }
   0x5   : > { %p176_p3 = scmp.lt.s32.totalorder (!%p148_p2), %s845_s13, 1 }
   0x6   : > { %151 = sbr.rel (%p148_p2) target bundleno = 370 (0x172), region = 32 }
   0xb   : > { %v194_v0 = vld [vmem:[%s1169_s2 + $0x10] sm:$0xff]  ;;  %v195_v1 = vld [vmem:[%s1169_s2 + $0x18] sm:$0xff]  ;;  %v192_v2 = vld [vmem:[%s1169_s2] sm:$0xff]  ;;  %v1002_v3 = vmov 0.0   ;;  %vm1003_vm0 = vmmov 0   ;;  %s1172_s13 = smov (!%p176_p3, %s845_s13), 1 }
   0xc   : > { %910 = vmatprep.subr.bf16.mxu0 %v1002_v3  ;;  %v211_v4 = vpack.c.bf16 %v195_v1, %v194_v0  ;;  %916 = vmatprep.subr.bf16.mxu1 %v1002_v3  ;;  %v193_v5 = vld [vmem:[%s1169_s2 + $0x8] sm:$0xff]  ;;  %s964_s22 = smul.u32 48, %s1172_s13  ;;  %v196_v7 = vld [vmem:[%s1169_s2 + $0x20] sm:$0xff]  ;;  %vm245_vm1 = vcmask 130048   ;;  %v198_v9 = vld [vmem:[%s1169_s2 + $0x30] sm:$0xff]  ;;  %s890_s30 = sshll.u32 %s1172_s13, 4 }
   0xd   : > { %v210_v6 = vpack.c.bf16 %v193_v5, %v192_v2  ;;  %912 = vmatprep.mubr.msk.bf16.mxu0 %vm1003_vm0, %v1002_v3  ;;  %918 = vmatprep.mubr.msk.bf16.mxu1 %vm1003_vm0, %v1002_v3  ;;  %v197_v8 = vld [vmem:[%s1169_s2 + $0x28] sm:$0xff]  ;;  %v199_v10 = vld [vmem:[%s1169_s2 + $0x38] sm:$0xff]  ;;  %v200_v21 = vld [vmem:[%s1169_s2 + $0x40] sm:$0xff]  ;;  %s180_s6 = scalar_lea.vmem %s1167_s0, %s890_s30  ;;  %vm773_vm2 = vcmask 191488   ;;  %s190_s9 = scalar_lea.vmem %s1170_s3, %s890_s30 }
   0xe   : > { %911 = vmatpush3.bf16.msra.mxu0 %v211_v4  ;;  %s1062_s27 = scalar_lea.vmem %s1168_s1, %s964_s22  ;;  %v212_v13 = vpack.c.bf16 %v197_v8, %v196_v7  ;;  %v213_v17 = vpack.c.bf16 %v199_v10, %v198_v9  ;;  %v201_v22 = vld [vmem:[%s1169_s2 + $0x48] sm:$0xff]  ;;  %v202_v26 = vld [vmem:[%s1169_s2 + $0x50] sm:$0xff]  ;;  %v203_v27 = vld [vmem:[%s1169_s2 + $0x58] sm:$0xff] }
   0xf   : > { %917 = vmatpush3.bf16.msra.mxu1 %v210_v6  ;;  %922 = vmatprep.subr.bf16.mxu0 %v1002_v3  ;;  %v976_v11 = vld [vmem:[%s1062_s27 + $0x1] ss:$8 sps:$4 sm:$0xff]   ;;  %v977_v12 = vld [vmem:[%s1062_s27 + $0x11] ss:$8 sps:$4 sm:$0xff]   ;;  %v214_v28 = vpack.c.bf16 %v201_v22, %v200_v21  ;;  %v215_v30 = vpack.c.bf16 %v203_v27, %v202_v26 }
  0x10   : > { %928 = vmatprep.subr.bf16.mxu1 %v1002_v3  ;;  %v244_v14 = vpack.c.bf16 %v977_v12, %v976_v11  ;;  %v978_v15 = vld [vmem:[%s1062_s27] ss:$8 sps:$4 sm:$0xff]   ;;  %v979_v16 = vld [vmem:[%s1062_s27 + $0x10] ss:$8 sps:$4 sm:$0xff]  }
  0x11   : > { %v231_v18 = vpack.c.bf16 %v979_v16, %v978_v15  ;;  %v980_v19 = vld [vmem:[%s1062_s27 + $0x2] ss:$8 sps:$4 sm:$0xff]   ;;  %v981_v20 = vld [vmem:[%s1062_s27 + $0x12] ss:$8 sps:$4 sm:$0xff]  }
  0x12   : > { %913 = vmatmul.mubr.msk.bf16.vlgmr.msra.gmra.mxu0 %vm245_vm1, %v244_v14  ;;  %v982_v23 = vld [vmem:[%s1062_s27 + $0x8] ss:$8 sps:$4 sm:$0xff]   ;;  %v983_v24 = vld [vmem:[%s1062_s27 + $0x18] ss:$8 sps:$4 sm:$0xff]   ;;  %v346_v25 = vpack.c.bf16 %v981_v20, %v980_v19 }
  0x13   : > { %923 = vmatpush3.bf16.msra.mxu0 %v212_v13  ;;  %924 = vmatprep.mubr.msk.bf16.mxu0 %vm1003_vm0, %v1002_v3  ;;  %v406_v29 = vpack.c.bf16 %v983_v24, %v982_v23  ;;  %v984_v31 = vld [vmem:[%s1062_s27 + $0x9] ss:$8 sps:$4 sm:$0xff]   ;;  %v985_v32 = vld [vmem:[%s1062_s27 + $0x19] ss:$8 sps:$4 sm:$0xff]  }
  0x14   : > { %919 = vmatmul.mubr.msk.bf16.vlgmr.msra.gmra.mxu1 %vm245_vm1, %v231_v18  ;;  %934 = vmatprep.subr.bf16.mxu0 %v1002_v3  ;;  %v204_v33 = vld [vmem:[%s1169_s2 + $0x60] sm:$0xff]  ;;  %v205_v34 = vld [vmem:[%s1169_s2 + $0x68] sm:$0xff]  ;;  %v465_v37 = vpack.c.bf16 %v985_v32, %v984_v31  ;;  %v206_v38 = vld [vmem:[%s1169_s2 + $0x70] sm:$0xff] }
  0x15   : > { %929 = vmatpush3.bf16.msra.mxu1 %v213_v17  ;;  %930 = vmatprep.mubr.msk.bf16.mxu1 %vm1003_vm0, %v1002_v3  ;;  %v986_v35 = vld [vmem:[%s1062_s27 + $0xa] ss:$8 sps:$4 sm:$0xff]   ;;  %v987_v36 = vld [vmem:[%s1062_s27 + $0x1a] ss:$8 sps:$4 sm:$0xff]   ;;  %v216_v40 = vpack.c.bf16 %v205_v34, %v204_v33 }
  0x16   : > { %940 = vmatprep.subr.bf16.mxu1 %v1002_v3  ;;  %v207_v39 = vld [vmem:[%s1169_s2 + $0x78] sm:$0xff]  ;;  %v524_v41 = vpack.c.bf16 %v987_v36, %v986_v35  ;;  %v989_v44 = vld [vmem:[%s1062_s27 + $0x20] ss:$8 sps:$4 sm:$0xff]  }
  0x17   : > { %v217_v42 = vpack.c.bf16 %v207_v39, %v206_v38  ;;  %v988_v43 = vld [vmem:[%s1062_s27 + $0x10] ss:$8 sps:$4 sm:$0xff]   ;;  %v208_v45 = vld [vmem:[%s1169_s2 + $0x80] sm:$0xff]  ;;  %v209_v48 = vld [vmem:[%s1169_s2 + $0x88] sm:$0xff] }
  0x18   : > { %v990_v46 = vld [vmem:[%s1062_s27 + $0x11] ss:$8 sps:$4 sm:$0xff]   ;;  %v991_v47 = vld [vmem:[%s1062_s27 + $0x21] ss:$8 sps:$4 sm:$0xff]   ;;  %v584_v49 = vpack.c.bf16 %v989_v44, %v988_v43  ;;  %v218_v50 = vpack.c.bf16 %v209_v48, %v208_v45 }
  0x19   : > { %v643_v51 = vpack.c.bf16 %v991_v47, %v990_v46  ;;  %v992_v52 = vld [vmem:[%s1062_s27 + $0x12] ss:$8 sps:$4 sm:$0xff]   ;;  %v993_v53 = vld [vmem:[%s1062_s27 + $0x22] ss:$8 sps:$4 sm:$0xff]   ;;  %s1004_s27 = smov 16  }
  0x1a   : > { %925 = vmatmul.mubr.msk.bf16.vlgmr.msra.gmra.mxu0 %vm245_vm1, %v346_v25  ;;  %v702_v54 = vpack.c.bf16 %v993_v53, %v992_v52  ;;  %v753_v45 = vld [vmem:[%s180_s6] sm:$0xf]  ;;  %v754_v48 = vld [vmem:[%s180_s6 + $0x4] sm:$0xf] }
  0x1b   : > { %935 = vmatpush3.bf16.msra.mxu0 %v214_v28  ;;  %936 = vmatprep.mubr.msk.bf16.mxu0 %vm1003_vm0, %v1002_v3 }
  0x1c   : > { %931 = vmatmul.mubr.msk.bf16.vlgmr.msra.gmra.mxu1 %vm245_vm1, %v406_v29  ;;  %946 = vmatprep.subr.bf16.mxu0 %v1002_v3 }
  0x1d   : > { %941 = vmatpush3.bf16.msra.mxu1 %v215_v30  ;;  %942 = vmatprep.mubr.msk.bf16.mxu1 %vm1003_vm0, %v1002_v3 }
  0x1e   : > { %952 = vmatprep.subr.bf16.mxu1 %v1002_v3 }
  0x22   : > { %937 = vmatmul.mubr.msk.bf16.vlgmr.msra.gmra.mxu0 %vm245_vm1, %v465_v37 }
  0x23   : > { %947 = vmatpush3.bf16.msra.mxu0 %v216_v40  ;;  %948 = vmatprep.mubr.msk.bf16.mxu0 %vm1003_vm0, %v1002_v3 }
  0x24   : > { %943 = vmatmul.mubr.msk.bf16.vlgmr.msra.gmra.mxu1 %vm245_vm1, %v524_v41  ;;  %958 = vmatprep.subr.bf16.mxu0 %v1002_v3 }
  0x25   : > { %953 = vmatpush3.bf16.msra.mxu1 %v217_v42  ;;  %954 = vmatprep.mubr.msk.bf16.mxu1 %vm1003_vm0, %v1002_v3 }
  0x2a   : > { %949 = vmatmul.mubr.msk.bf16.vlgmr.msra.gmra.mxu0 %vm245_vm1, %v584_v49  ;;  %v755_v49 = vld [vmem:[%s180_s6 + $0x8] sm:$0xf] }
  0x2b   : > { %959 = vmatpush3.bf16.msra.mxu0 %v218_v50  ;;  %960 = vmatprep.mubr.msk.bf16.mxu0 %vm1003_vm0, %v1002_v3 }
  0x2c   : > { %955 = vmatmul.mubr.msk.bf16.vlgmr.msra.gmra.mxu1 %vm245_vm1, %v643_v51 }
  0x32   : > { %961 = vmatmul.mubr.msk.bf16.vlgmr.msra.gmra.mxu0 %vm245_vm1, %v702_v54  ;;  %v756_v54 = vld [vmem:[%s180_s6 + $0xc] sm:$0xf] }
  0xd2   : > { %v283_v55 = vpop.f32.mrf.mxu0 }
  0xd4   : > { %v327_v56 = vpop.f32.mrf.mxu1  ;;  %v914_v57 = vpop.f32.mrf.mxu0 }
  0xd5   : > { %v328_v5 = vadd.f32 %v327_v56, %v283_v55 }
  0xd6   : > { %v920_v58 = vpop.f32.mrf.mxu1  ;;  %v286_v59 = vpop.f32.mrf.mxu0 }
  0xd8   : > { %v330_v60 = vpop.f32.mrf.mxu1  ;;  %v915_v61 = vpop.f32.mrf.mxu0 }
  0xd9   : > { %v331_v10 = vadd.f32 %v330_v60, %v286_v59 }
  0xda   : > { %v921_v62 = vpop.f32.mrf.mxu1  ;;  %v384_v63 = vpop.f32.mrf.mxu0 }
  0xdb   : > { %v391_v7 = vadd.f32 %v384_v63, %v328_v5 }
  0xdc   : > { %v444_v0 = vpop.f32.mrf.mxu1  ;;  %v926_v1 = vpop.f32.mrf.mxu0 }
  0xdd   : > { %v451_v13 = vadd.f32 %v444_v0, %v391_v7 }
  0xde   : > { %v932_v2 = vpop.f32.mrf.mxu1  ;;  %v387_v4 = vpop.f32.mrf.mxu0 }
  0xdf   : > { %v392_v14 = vadd.f32 %v387_v4, %v331_v10 }
  0xe0   : > { %v447_v3 = vpop.f32.mrf.mxu1  ;;  %v927_v6 = vpop.f32.mrf.mxu0 }
  0xe1   : > { %v452_v20 = vadd.f32 %v447_v3, %v392_v14 }
  0xe2   : > { %v933_v8 = vpop.f32.mrf.mxu1  ;;  %v503_v9 = vpop.f32.mrf.mxu0 }
  0xe3   : > { %v510_v17 = vadd.f32 %v503_v9, %v451_v13 }
  0xe4   : > { %v562_v11 = vpop.f32.mrf.mxu1  ;;  %v938_v12 = vpop.f32.mrf.mxu0 }
  0xe5   : > { %v569_v23 = vadd.f32 %v562_v11, %v510_v17 }
  0xe6   : > { %v944_v15 = vpop.f32.mrf.mxu1  ;;  %v506_v16 = vpop.f32.mrf.mxu0 }
  0xe7   : > { %v511_v24 = vadd.f32 %v506_v16, %v452_v20 }
  0xe8   : > { %v565_v18 = vpop.f32.mrf.mxu1  ;;  %v939_v19 = vpop.f32.mrf.mxu0 }
  0xe9   : > { %v570_v30 = vadd.f32 %v565_v18, %v511_v24 }
  0xea   : > { %v945_v21 = vpop.f32.mrf.mxu1  ;;  %v622_v22 = vpop.f32.mrf.mxu0 }
  0xeb   : > { %v629_v27 = vadd.f32 %v622_v22, %v569_v23 }
  0xec   : > { %v681_v25 = vpop.f32.mrf.mxu1  ;;  %v950_v26 = vpop.f32.mrf.mxu0 }
  0xed   : > { %v688_v33 = vadd.f32 %v681_v25, %v629_v27 }
  0xee   : > { %v956_v28 = vpop.f32.mrf.mxu1  ;;  %v625_v29 = vpop.f32.mrf.mxu0 }
  0xef   : > { %v630_v34 = vadd.f32 %v625_v29, %v570_v30 }
  0xf0   : > { %v684_v31 = vpop.f32.mrf.mxu1  ;;  %v951_v32 = vpop.f32.mrf.mxu0 }
  0xf1   : > { %v689_v39 = vadd.f32 %v684_v31, %v630_v34 }
  0xf2   : > { %v957_v35 = vpop.f32.mrf.mxu1  ;;  %v740_v36 = vpop.f32.mrf.mxu0 }
  0xf3   : > { %v747_v37 = vadd.f32 %v740_v36, %v688_v33 }
  0xf4   : > { %v962_v38 = vpop.f32.mrf.mxu0 }
  0xf5   : > { %757 = vrot.lane.b32.xlu0 %v747_v37, %s1004_s27  ;;  %v751_v41 = vcombine.high %v747_v37, %v747_v37 }
  0xf6   : > { %v743_v40 = vpop.f32.mrf.mxu0 }
  0xf7   : > { %v748_v42 = vadd.f32 %v743_v40, %v689_v39 }
  0xf8   : > { %v963_v43 = vpop.f32.mrf.mxu0 }
  0xf9   : > { %759 = vrot.lane.b32.xlu0 %v751_v41, %s1004_s27  ;;  %761 = vrot.lane.b32.xlu1 %v748_v42, %s1004_s27  ;;  %v752_v44 = vcombine.high %v748_v42, %v748_v42 }
  0xfd   : > { %763 = vrot.lane.b32.xlu1 %v752_v44, %s1004_s27 }
 0x167   : > { %v758_v46 = vpop.permute.xlu0 %757 }
 0x168   : > { %v769_v47 = vsel %vm245_vm1, %v753_v45, %v758_v46 }
 0x169   : > { %774 = vst.msk [vmem:[%s190_s9] sm:$0xf] %vm773_vm2, %v769_v47 }
 0x16b   : > { %v760_v50 = vpop.permute.xlu0 %759  ;;  %v762_v51 = vpop.permute.xlu1 %761 }
 0x16c   : > { %v770_v52 = vsel %vm245_vm1, %v754_v48, %v760_v50  ;;  %v771_v53 = vsel %vm245_vm1, %v755_v49, %v762_v51 }
 0x16d   : > { %775 = vst.msk [vmem:[%s190_s9 + $0x4] sm:$0xf] %vm773_vm2, %v770_v52  ;;  %776 = vst.msk [vmem:[%s190_s9 + $0x8] sm:$0xf] %vm773_vm2, %v771_v53 }
 0x16f   : > { %v764_v55 = vpop.permute.xlu1 %763 }
 0x170   : > { %v772_v56 = vsel %vm245_vm1, %v756_v54, %v764_v55 }
 0x171   : > { %777 = vst.msk [vmem:[%s190_s9 + $0xc] sm:$0xf] %vm773_vm2, %v772_v56 }
 0x172 PF: > { %s13_s12 = sadd.s32 1, %s1000_s12  }
 0x173   : > { %p10_p4 = scmp.ge.s32.totalorder %s13_s12, 4  }
 0x175   :  { %12 = sbr.rel (!%p10_p4) target bundleno = 1 (0x1), region = 67 }

</bundles_post_ra>
